<compile_context>
chip_gen: v5e
topology: v5e:2x2
jax: 0.10.0
libtpu: 0.0.40
codegen_flags: <defaults>
</compile_context>

<pallas_src>
import math
import jax
import jax.numpy as jnp
from jax.experimental import pallas as pl
from jax.experimental.pallas import tpu as pltpu

# Use full-precision matmuls everywhere so the Pallas kernel and the pure-JAX
# reference agree tightly.
jax.config.update("jax_default_matmul_precision", "highest")

# ---------------- small config, structurally faithful to Mixer-B/16 ----------------
B = 2              # batch
C_IN = 1           # stem.proj replaced with Conv2d(1, D, kernel=16, stride=16)
IMG = 32           # image H = W
PATCH = 16         # patch size (kernel == stride -> conv is a plain matmul)
N_TOK = (IMG // PATCH) ** 2    # 4 tokens
DIM = 64           # embedding dim (768 in the real model, shrunk)
TOK_HID = 32       # token-mixing MLP hidden dim
CH_HID = 128       # channel-mixing MLP hidden dim
DEPTH = 2          # mixer blocks (12 in the real model)
NUM_CLASSES = 10
EPS = 1e-6         # timm Mixer uses LayerNorm(eps=1e-6)
LANES = 128        # TPU vreg lane width

_SQRT2 = math.sqrt(2.0)


# ---------------- packed-parameter slab layout (all static Python ints) ----------------
def _round8(n):
    return ((n + 7) // 8) * 8


def _build_layout():
    """One lane-aligned f32 slab of shape (_SLAB_ROWS, 128) holding every parameter.

    Each entry occupies an 8-row-aligned row range; columns beyond its width are
    zero padding. Offsets are compile-time constants shared by the packer and the
    kernel.
    """
    entries = [
        ("stem_w", C_IN * PATCH * PATCH, DIM),      # conv-as-matmul weight (in, out)
        ("stem_b", 1, DIM),
    ]
    for d in range(DEPTH):
        entries += [
            (f"b{d}_ln1_g", 1, DIM), (f"b{d}_ln1_b", 1, DIM),
            # token-mix weights, pre-transposed and replicated block-diagonally
            # over the batch so the whole batch is one matmul with no transposes.
            (f"b{d}_tok_bd1", B * TOK_HID, B * N_TOK),
            (f"b{d}_tok_b1", B * TOK_HID, 1),
            (f"b{d}_tok_bd2", B * N_TOK, B * TOK_HID),
            (f"b{d}_tok_b2", B * N_TOK, 1),
            (f"b{d}_ln2_g", 1, DIM), (f"b{d}_ln2_b", 1, DIM),
            (f"b{d}_ch_w1", DIM, CH_HID), (f"b{d}_ch_b1", 1, CH_HID),
            (f"b{d}_ch_w2", CH_HID, DIM), (f"b{d}_ch_b2", 1, DIM),
        ]
    entries += [
        ("norm_g", 1, DIM), ("norm_b", 1, DIM),
        ("pool", B, B * N_TOK),                     # per-batch token mean-pool matrix
        ("head_w", DIM, LANES),                     # head weight padded to 128 classes
        ("head_b", 1, LANES),
    ]
    layout = {}
    off = 0
    for name, r, c in entries:
        layout[name] = (off, r, c)
        off += _round8(r)
    return layout, _round8(off)


_LAYOUT, _SLAB_ROWS = _build_layout()


# ---------------- in-kernel math helpers ----------------
def _gelu(x):
    # exact (erf-based) GELU, matching torch.nn.GELU() default
    return 0.5 * x * (1.0 + jax.lax.erf(x / _SQRT2))


def _layernorm(x, gamma, beta):
    mu = jnp.mean(x, axis=-1, keepdims=True)
    xc = x - mu
    var = jnp.mean(xc * xc, axis=-1, keepdims=True)
    return xc * jax.lax.rsqrt(var + EPS) * gamma + beta


# ---------------- the single fused kernel ----------------
def _fused_mixer_kernel(xp_ref, slab_ref, o_ref):
    # xp:   (B*N, C*P*P)  patches, row-major tokens for the whole batch
    # slab: (_SLAB_ROWS, 128) packed parameters
    # o:    (B, 128) lane-dense padded logits
    def g(name):
        off, r, c = _LAYOUT[name]
        return slab_ref[off:off + r, :c]           # static, 8-row-aligned slices

    # ---- stem: 16x16/stride-16 conv == patch matmul, whole batch at once ----
    y = jnp.dot(xp_ref[...], g("stem_w"),
                preferred_element_type=jnp.float32) + g("stem_b")   # (B*N, D)

    # ---- mixer blocks (statically unrolled) ----
    for d in range(DEPTH):
        # token mixing: y = y + Mlp(norm1(y)^T)^T, expressed with block-diagonal
        # weights so the batch is handled in one matmul and D stays on lanes.
        h = _layernorm(y, g(f"b{d}_ln1_g"), g(f"b{d}_ln1_b"))        # (B*N, D)
        u = jnp.dot(g(f"b{d}_tok_bd1"), h,
                    preferred_element_type=jnp.float32) + g(f"b{d}_tok_b1")  # (B*H, D)
        u = _gelu(u)
        v = jnp.dot(g(f"b{d}_tok_bd2"), u,
                    preferred_element_type=jnp.float32) + g(f"b{d}_tok_b2")  # (B*N, D)
        y = y + v

        # channel mixing: y = y + Mlp(norm2(y)), full batch in one matmul pair
        h2 = _layernorm(y, g(f"b{d}_ln2_g"), g(f"b{d}_ln2_b"))
        c = jnp.dot(h2, g(f"b{d}_ch_w1"),
                    preferred_element_type=jnp.float32) + g(f"b{d}_ch_b1")   # (B*N, CH)
        c = _gelu(c)
        c = jnp.dot(c, g(f"b{d}_ch_w2"),
                    preferred_element_type=jnp.float32) + g(f"b{d}_ch_b2")   # (B*N, D)
        y = y + c

    # ---- head: final norm, per-batch mean pool (as a matmul), padded logits ----
    hn = _layernorm(y, g("norm_g"), g("norm_b"))                     # (B*N, D)
    pooled = jnp.dot(g("pool"), hn, preferred_element_type=jnp.float32)  # (B, D)
    o_ref[...] = (jnp.dot(pooled, g("head_w"),
                          preferred_element_type=jnp.float32) + g("head_b"))  # (B, 128)


# ---------------- wrapper ----------------
def mixer_forward(x, slab):
    Bz, C, H, W = x.shape
    assert Bz == B and C == C_IN and H == IMG and W == IMG, x.shape
    gh, gw = H // PATCH, W // PATCH
    # extract non-overlapping patches in (c, kh, kw) order (conv weight layout);
    # this is pure layout plumbing, left to XLA.
    xp = x.reshape(Bz, C, gh, PATCH, gw, PATCH)
    xp = jnp.transpose(xp, (0, 2, 4, 1, 3, 5)).reshape(Bz * gh * gw,
                                                       C * PATCH * PATCH)
    logits_pad = pl.pallas_call(
        _fused_mixer_kernel,
        out_shape=jax.ShapeDtypeStruct((Bz, LANES), jnp.float32),
    )(xp, slab)
    return logits_pad[:, :NUM_CLASSES]             # (B, num_classes)


# ---------------- parameter packing ----------------
def _block_diag(m):
    r, c = m.shape
    out = jnp.zeros((B * r, B * c), jnp.float32)
    for b in range(B):
        out = out.at[b * r:(b + 1) * r, b * c:(b + 1) * c].set(m)
    return out


def pack_params(p):
    """Pack the PyTorch-layout parameter pytree into one lane-aligned VMEM slab."""
    slab = jnp.zeros((_SLAB_ROWS, LANES), jnp.float32)

    def put(s, name, arr):
        off, r, c = _LAYOUT[name]
        arr = jnp.asarray(arr, jnp.float32)
        assert arr.shape == (r, c), (name, arr.shape, (r, c))
        return s.at[off:off + r, :c].set(arr)

    slab = put(slab, "stem_w", p["stem_w"])
    slab = put(slab, "stem_b", p["stem_b"])
    for d, blk in enumerate(p["blocks"]):
        slab = put(slab, f"b{d}_ln1_g", blk["ln1_g"])
        slab = put(slab, f"b{d}_ln1_b", blk["ln1_b"])
        slab = put(slab, f"b{d}_tok_bd1", _block_diag(blk["tok_w1"].T))      # (B*H, B*N)
        slab = put(slab, f"b{d}_tok_b1",
                   jnp.tile(blk["tok_b1"].reshape(TOK_HID, 1), (B, 1)))      # (B*H, 1)
        slab = put(slab, f"b{d}_tok_bd2", _block_diag(blk["tok_w2"].T))      # (B*N, B*H)
        slab = put(slab, f"b{d}_tok_b2",
                   jnp.tile(blk["tok_b2"].reshape(N_TOK, 1), (B, 1)))        # (B*N, 1)
        slab = put(slab, f"b{d}_ln2_g", blk["ln2_g"])
        slab = put(slab, f"b{d}_ln2_b", blk["ln2_b"])
        slab = put(slab, f"b{d}_ch_w1", blk["ch_w1"])
        slab = put(slab, f"b{d}_ch_b1", blk["ch_b1"])
        slab = put(slab, f"b{d}_ch_w2", blk["ch_w2"])
        slab = put(slab, f"b{d}_ch_b2", blk["ch_b2"])
    slab = put(slab, "norm_g", p["norm_g"])
    slab = put(slab, "norm_b", p["norm_b"])
    slab = put(slab, "pool",
               _block_diag(jnp.full((1, N_TOK), 1.0 / N_TOK, jnp.float32)))  # (B, B*N)
    head_w = jnp.zeros((DIM, LANES), jnp.float32).at[:, :NUM_CLASSES].set(p["head_w"])
    head_b = jnp.zeros((1, LANES), jnp.float32).at[:, :NUM_CLASSES].set(p["head_b"])
    slab = put(slab, "head_w", head_w)
    slab = put(slab, "head_b", head_b)
    return slab


# ---------------- deterministic parameter init ----------------
def init_params(key):
    ks = jax.random.split(key, 8 + DEPTH)

    def w(k, shape, scale=0.02):
        return (scale * jax.random.normal(k, shape)).astype(jnp.float32)

    params = {
        "stem_w": w(ks[0], (C_IN * PATCH * PATCH, DIM)),   # conv weight as matmul (in, out)
        "stem_b": w(ks[1], (1, DIM)),
        "norm_g": 1.0 + w(ks[2], (1, DIM), 0.05),
        "norm_b": w(ks[3], (1, DIM)),
        "head_w": w(ks[4], (DIM, NUM_CLASSES)),
        "head_b": w(ks[5], (1, NUM_CLASSES)),
        "blocks": [],
    }
    for d in range(DEPTH):
        bk = jax.random.split(ks[6 + d], 12)
        params["blocks"].append({
            "ln1_g": 1.0 + w(bk[0], (1, DIM), 0.05),
            "ln1_b": w(bk[1], (1, DIM)),
            "tok_w1": w(bk[2], (N_TOK, TOK_HID)),
            "tok_b1": w(bk[3], (1, TOK_HID)),
            "tok_w2": w(bk[4], (TOK_HID, N_TOK)),
            "tok_b2": w(bk[5], (1, N_TOK)),
            "ln2_g": 1.0 + w(bk[6], (1, DIM), 0.05),
            "ln2_b": w(bk[7], (1, DIM)),
            "ch_w1": w(bk[8], (DIM, CH_HID)),
            "ch_b1": w(bk[9], (1, CH_HID)),
            "ch_w2": w(bk[10], (CH_HID, DIM)),
            "ch_b2": w(bk[11], (1, DIM)),
        })
    return params


# ---------------- pure-JAX reference (original per-batch transpose formulation) ----------------
def mixer_reference(x, params):
    Bz = x.shape[0]
    xp = x.reshape(Bz, C_IN, IMG // PATCH, PATCH, IMG // PATCH, PATCH)
    xp = jnp.transpose(xp, (0, 2, 4, 1, 3, 5)).reshape(Bz, N_TOK, C_IN * PATCH * PATCH)
    tok = jnp.einsum("bnp,pd->bnd", xp, params["stem_w"]) + params["stem_b"]

    def ln(t, g, b):
        mu = jnp.mean(t, -1, keepdims=True)
        var = jnp.mean((t - mu) ** 2, -1, keepdims=True)
        return (t - mu) * jax.lax.rsqrt(var + EPS) * g + b

    def gelu(t):
        return 0.5 * t * (1.0 + jax.lax.erf(t / _SQRT2))

    for p in params["blocks"]:
        h = ln(tok, p["ln1_g"], p["ln1_b"])
        ht = jnp.swapaxes(h, 1, 2)                                    # (B, D, N)
        t = gelu(ht @ p["tok_w1"] + p["tok_b1"]) @ p["tok_w2"] + p["tok_b2"]
        tok = tok + jnp.swapaxes(t, 1, 2)
        h2 = ln(tok, p["ln2_g"], p["ln2_b"])
        c = gelu(h2 @ p["ch_w1"] + p["ch_b1"]) @ p["ch_w2"] + p["ch_b2"]
        tok = tok + c
    hn = ln(tok, params["norm_g"], params["norm_b"])
    pooled = jnp.mean(hn, axis=1)
    return pooled @ params["head_w"] + params["head_b"]


if __name__ == "__main__":
    key = jax.random.PRNGKey(0)
    kx, kp = jax.random.split(key)
    x = jax.random.normal(kx, (B, C_IN, IMG, IMG), jnp.float32)
    params = init_params(kp)
    slab = pack_params(params)

    out = jax.jit(mixer_forward)(x, slab)
    out = jax.block_until_ready(out)
    assert out.shape == (B, NUM_CLASSES), out.shape
    assert bool(jnp.all(jnp.isfinite(out)))

    ref = mixer_reference(x, params)
    assert bool(jnp.allclose(out, ref, rtol=5e-3, atol=1e-3)), (
        "max abs diff vs reference: %g" % float(jnp.max(jnp.abs(out - ref))))

    print("KERNEL_OK")
</pallas_src>

<mosaic_0001>
module attributes {stable_mosaic.version = 11 : i64} {
  func.func @_fused_mixer_kernel(%arg0: memref<8x256xf32, #tpu.memory_space<vmem>>, %arg1: memref<1128x128xf32, #tpu.memory_space<vmem>>, %arg2: memref<2x128xf32, #tpu.memory_space<vmem>>) attributes {dimension_semantics = [], scalar_prefetch = 0 : i64, scratch_operands = 0 : i64, tpu.core_type = #tpu.core_type<tc>} {
    %c0 = arith.constant 0 : index
    %c0_0 = arith.constant 0 : index
    %0 = vector.load %arg0[%c0, %c0_0] : memref<8x256xf32, #tpu.memory_space<vmem>>, vector<8x256xf32>
    %c0_1 = arith.constant 0 : index
    %c0_2 = arith.constant 0 : index
    %1 = vector.load %arg1[%c0_1, %c0_2] : memref<1128x128xf32, #tpu.memory_space<vmem>>, vector<256x64xf32>
    %cst = arith.constant dense<0.000000e+00> : vector<8x64xf32>
    %2 = tpu.matmul %0, %1, %cst {dimension_numbers = #tpu.dot_dimension_numbers<[1], [0], [0], [1], [0, 0, 1, 1], [], []>, precision = #tpu.contract_precision<fp32>} : vector<8x256xf32>, vector<256x64xf32>, vector<8x64xf32> -> vector<8x64xf32>
    %c256 = arith.constant 256 : index
    %c0_3 = arith.constant 0 : index
    %3 = vector.load %arg1[%c256, %c0_3] : memref<1128x128xf32, #tpu.memory_space<vmem>>, vector<1x64xf32>
    %4 = vector.broadcast %3 : vector<1x64xf32> to vector<8x64xf32>
    %5 = arith.addf %2, %4 : vector<8x64xf32>
    %c264 = arith.constant 264 : index
    %c0_4 = arith.constant 0 : index
    %6 = vector.load %arg1[%c264, %c0_4] : memref<1128x128xf32, #tpu.memory_space<vmem>>, vector<1x64xf32>
    %c272 = arith.constant 272 : index
    %c0_5 = arith.constant 0 : index
    %7 = vector.load %arg1[%c272, %c0_5] : memref<1128x128xf32, #tpu.memory_space<vmem>>, vector<1x64xf32>
    %cst_6 = arith.constant dense<0.000000e+00> : vector<8xf32>
    %8 = vector.multi_reduction <add>, %5, %cst_6 [1] : vector<8x64xf32> to vector<8xf32>
    %9 = vector.shape_cast %8 : vector<8xf32> to vector<8x1xf32>
    %cst_7 = arith.constant 6.400000e+01 : f32
    %10 = vector.broadcast %cst_7 : f32 to vector<8x1xf32>
    %11 = arith.divf %9, %10 : vector<8x1xf32>
    %12 = vector.broadcast %11 : vector<8x1xf32> to vector<8x64xf32>
    %13 = arith.subf %5, %12 : vector<8x64xf32>
    %14 = arith.mulf %13, %13 : vector<8x64xf32>
    %cst_8 = arith.constant dense<0.000000e+00> : vector<8xf32>
    %15 = vector.multi_reduction <add>, %14, %cst_8 [1] : vector<8x64xf32> to vector<8xf32>
    %16 = vector.shape_cast %15 : vector<8xf32> to vector<8x1xf32>
    %cst_9 = arith.constant 6.400000e+01 : f32
    %17 = vector.broadcast %cst_9 : f32 to vector<8x1xf32>
    %18 = arith.divf %16, %17 : vector<8x1xf32>
    %cst_10 = arith.constant 9.99999997E-7 : f32
    %19 = vector.broadcast %cst_10 : f32 to vector<8x1xf32>
    %20 = arith.addf %18, %19 : vector<8x1xf32>
    %21 = math.rsqrt %20 : vector<8x1xf32>
    %22 = vector.broadcast %21 : vector<8x1xf32> to vector<8x64xf32>
    %23 = arith.mulf %13, %22 : vector<8x64xf32>
    %24 = vector.broadcast %6 : vector<1x64xf32> to vector<8x64xf32>
    %25 = arith.mulf %23, %24 : vector<8x64xf32>
    %26 = vector.broadcast %7 : vector<1x64xf32> to vector<8x64xf32>
    %27 = arith.addf %25, %26 : vector<8x64xf32>
    %c280 = arith.constant 280 : index
    %c0_11 = arith.constant 0 : index
    %28 = vector.load %arg1[%c280, %c0_11] : memref<1128x128xf32, #tpu.memory_space<vmem>>, vector<64x8xf32>
    %cst_12 = arith.constant dense<0.000000e+00> : vector<64x64xf32>
    %29 = tpu.matmul %28, %27, %cst_12 {dimension_numbers = #tpu.dot_dimension_numbers<[1], [0], [0], [1], [0, 0, 1, 1], [], []>, precision = #tpu.contract_precision<fp32>} : vector<64x8xf32>, vector<8x64xf32>, vector<64x64xf32> -> vector<64x64xf32>
    %c344 = arith.constant 344 : index
    %c0_13 = arith.constant 0 : index
    %30 = vector.load %arg1[%c344, %c0_13] : memref<1128x128xf32, #tpu.memory_space<vmem>>, vector<64x1xf32>
    %31 = vector.broadcast %30 : vector<64x1xf32> to vector<64x64xf32>
    %32 = arith.addf %29, %31 : vector<64x64xf32>
    %cst_14 = arith.constant 5.000000e-01 : f32
    %33 = vector.broadcast %cst_14 : f32 to vector<64x64xf32>
    %34 = arith.mulf %33, %32 : vector<64x64xf32>
    %cst_15 = arith.constant 1.41421354 : f32
    %35 = vector.broadcast %cst_15 : f32 to vector<64x64xf32>
    %36 = arith.divf %32, %35 : vector<64x64xf32>
    %37 = math.erf %36 : vector<64x64xf32>
    %cst_16 = arith.constant 1.000000e+00 : f32
    %38 = vector.broadcast %cst_16 : f32 to vector<64x64xf32>
    %39 = arith.addf %38, %37 : vector<64x64xf32>
    %40 = arith.mulf %34, %39 : vector<64x64xf32>
    %c408 = arith.constant 408 : index
    %c0_17 = arith.constant 0 : index
    %41 = vector.load %arg1[%c408, %c0_17] : memref<1128x128xf32, #tpu.memory_space<vmem>>, vector<8x64xf32>
    %cst_18 = arith.constant dense<0.000000e+00> : vector<8x64xf32>
    %42 = tpu.matmul %41, %40, %cst_18 {dimension_numbers = #tpu.dot_dimension_numbers<[1], [0], [0], [1], [0, 0, 1, 1], [], []>, precision = #tpu.contract_precision<fp32>} : vector<8x64xf32>, vector<64x64xf32>, vector<8x64xf32> -> vector<8x64xf32>
    %c416 = arith.constant 416 : index
    %c0_19 = arith.constant 0 : index
    %43 = vector.load %arg1[%c416, %c0_19] : memref<1128x128xf32, #tpu.memory_space<vmem>>, vector<8x1xf32>
    %44 = vector.broadcast %43 : vector<8x1xf32> to vector<8x64xf32>
    %45 = arith.addf %42, %44 : vector<8x64xf32>
    %46 = arith.addf %5, %45 : vector<8x64xf32>
    %c424 = arith.constant 424 : index
    %c0_20 = arith.constant 0 : index
    %47 = vector.load %arg1[%c424, %c0_20] : memref<1128x128xf32, #tpu.memory_space<vmem>>, vector<1x64xf32>
    %c432 = arith.constant 432 : index
    %c0_21 = arith.constant 0 : index
    %48 = vector.load %arg1[%c432, %c0_21] : memref<1128x128xf32, #tpu.memory_space<vmem>>, vector<1x64xf32>
    %cst_22 = arith.constant dense<0.000000e+00> : vector<8xf32>
    %49 = vector.multi_reduction <add>, %46, %cst_22 [1] : vector<8x64xf32> to vector<8xf32>
    %50 = vector.shape_cast %49 : vector<8xf32> to vector<8x1xf32>
    %cst_23 = arith.constant 6.400000e+01 : f32
    %51 = vector.broadcast %cst_23 : f32 to vector<8x1xf32>
    %52 = arith.divf %50, %51 : vector<8x1xf32>
    %53 = vector.broadcast %52 : vector<8x1xf32> to vector<8x64xf32>
    %54 = arith.subf %46, %53 : vector<8x64xf32>
    %55 = arith.mulf %54, %54 : vector<8x64xf32>
    %cst_24 = arith.constant dense<0.000000e+00> : vector<8xf32>
    %56 = vector.multi_reduction <add>, %55, %cst_24 [1] : vector<8x64xf32> to vector<8xf32>
    %57 = vector.shape_cast %56 : vector<8xf32> to vector<8x1xf32>
    %cst_25 = arith.constant 6.400000e+01 : f32
    %58 = vector.broadcast %cst_25 : f32 to vector<8x1xf32>
    %59 = arith.divf %57, %58 : vector<8x1xf32>
    %cst_26 = arith.constant 9.99999997E-7 : f32
    %60 = vector.broadcast %cst_26 : f32 to vector<8x1xf32>
    %61 = arith.addf %59, %60 : vector<8x1xf32>
    %62 = math.rsqrt %61 : vector<8x1xf32>
    %63 = vector.broadcast %62 : vector<8x1xf32> to vector<8x64xf32>
    %64 = arith.mulf %54, %63 : vector<8x64xf32>
    %65 = vector.broadcast %47 : vector<1x64xf32> to vector<8x64xf32>
    %66 = arith.mulf %64, %65 : vector<8x64xf32>
    %67 = vector.broadcast %48 : vector<1x64xf32> to vector<8x64xf32>
    %68 = arith.addf %66, %67 : vector<8x64xf32>
    %c440 = arith.constant 440 : index
    %c0_27 = arith.constant 0 : index
    %69 = vector.load %arg1[%c440, %c0_27] : memref<1128x128xf32, #tpu.memory_space<vmem>>, vector<64x128xf32>
    %cst_28 = arith.constant dense<0.000000e+00> : vector<8x128xf32>
    %70 = tpu.matmul %68, %69, %cst_28 {dimension_numbers = #tpu.dot_dimension_numbers<[1], [0], [0], [1], [0, 0, 1, 1], [], []>, precision = #tpu.contract_precision<fp32>} : vector<8x64xf32>, vector<64x128xf32>, vector<8x128xf32> -> vector<8x128xf32>
    %c504 = arith.constant 504 : index
    %c0_29 = arith.constant 0 : index
    %71 = vector.load %arg1[%c504, %c0_29] : memref<1128x128xf32, #tpu.memory_space<vmem>>, vector<1x128xf32>
    %72 = vector.broadcast %71 : vector<1x128xf32> to vector<8x128xf32>
    %73 = arith.addf %70, %72 : vector<8x128xf32>
    %cst_30 = arith.constant 5.000000e-01 : f32
    %74 = vector.broadcast %cst_30 : f32 to vector<8x128xf32>
    %75 = arith.mulf %74, %73 : vector<8x128xf32>
    %cst_31 = arith.constant 1.41421354 : f32
    %76 = vector.broadcast %cst_31 : f32 to vector<8x128xf32>
    %77 = arith.divf %73, %76 : vector<8x128xf32>
    %78 = math.erf %77 : vector<8x128xf32>
    %cst_32 = arith.constant 1.000000e+00 : f32
    %79 = vector.broadcast %cst_32 : f32 to vector<8x128xf32>
    %80 = arith.addf %79, %78 : vector<8x128xf32>
    %81 = arith.mulf %75, %80 : vector<8x128xf32>
    %c512 = arith.constant 512 : index
    %c0_33 = arith.constant 0 : index
    %82 = vector.load %arg1[%c512, %c0_33] : memref<1128x128xf32, #tpu.memory_space<vmem>>, vector<128x64xf32>
    %cst_34 = arith.constant dense<0.000000e+00> : vector<8x64xf32>
    %83 = tpu.matmul %81, %82, %cst_34 {dimension_numbers = #tpu.dot_dimension_numbers<[1], [0], [0], [1], [0, 0, 1, 1], [], []>, precision = #tpu.contract_precision<fp32>} : vector<8x128xf32>, vector<128x64xf32>, vector<8x64xf32> -> vector<8x64xf32>
    %c640 = arith.constant 640 : index
    %c0_35 = arith.constant 0 : index
    %84 = vector.load %arg1[%c640, %c0_35] : memref<1128x128xf32, #tpu.memory_space<vmem>>, vector<1x64xf32>
    %85 = vector.broadcast %84 : vector<1x64xf32> to vector<8x64xf32>
    %86 = arith.addf %83, %85 : vector<8x64xf32>
    %87 = arith.addf %46, %86 : vector<8x64xf32>
    %c648 = arith.constant 648 : index
    %c0_36 = arith.constant 0 : index
    %88 = vector.load %arg1[%c648, %c0_36] : memref<1128x128xf32, #tpu.memory_space<vmem>>, vector<1x64xf32>
    %c656 = arith.constant 656 : index
    %c0_37 = arith.constant 0 : index
    %89 = vector.load %arg1[%c656, %c0_37] : memref<1128x128xf32, #tpu.memory_space<vmem>>, vector<1x64xf32>
    %cst_38 = arith.constant dense<0.000000e+00> : vector<8xf32>
    %90 = vector.multi_reduction <add>, %87, %cst_38 [1] : vector<8x64xf32> to vector<8xf32>
    %91 = vector.shape_cast %90 : vector<8xf32> to vector<8x1xf32>
    %cst_39 = arith.constant 6.400000e+01 : f32
    %92 = vector.broadcast %cst_39 : f32 to vector<8x1xf32>
    %93 = arith.divf %91, %92 : vector<8x1xf32>
    %94 = vector.broadcast %93 : vector<8x1xf32> to vector<8x64xf32>
    %95 = arith.subf %87, %94 : vector<8x64xf32>
    %96 = arith.mulf %95, %95 : vector<8x64xf32>
    %cst_40 = arith.constant dense<0.000000e+00> : vector<8xf32>
    %97 = vector.multi_reduction <add>, %96, %cst_40 [1] : vector<8x64xf32> to vector<8xf32>
    %98 = vector.shape_cast %97 : vector<8xf32> to vector<8x1xf32>
    %cst_41 = arith.constant 6.400000e+01 : f32
    %99 = vector.broadcast %cst_41 : f32 to vector<8x1xf32>
    %100 = arith.divf %98, %99 : vector<8x1xf32>
    %cst_42 = arith.constant 9.99999997E-7 : f32
    %101 = vector.broadcast %cst_42 : f32 to vector<8x1xf32>
    %102 = arith.addf %100, %101 : vector<8x1xf32>
    %103 = math.rsqrt %102 : vector<8x1xf32>
    %104 = vector.broadcast %103 : vector<8x1xf32> to vector<8x64xf32>
    %105 = arith.mulf %95, %104 : vector<8x64xf32>
    %106 = vector.broadcast %88 : vector<1x64xf32> to vector<8x64xf32>
    %107 = arith.mulf %105, %106 : vector<8x64xf32>
    %108 = vector.broadcast %89 : vector<1x64xf32> to vector<8x64xf32>
    %109 = arith.addf %107, %108 : vector<8x64xf32>
    %c664 = arith.constant 664 : index
    %c0_43 = arith.constant 0 : index
    %110 = vector.load %arg1[%c664, %c0_43] : memref<1128x128xf32, #tpu.memory_space<vmem>>, vector<64x8xf32>
    %cst_44 = arith.constant dense<0.000000e+00> : vector<64x64xf32>
    %111 = tpu.matmul %110, %109, %cst_44 {dimension_numbers = #tpu.dot_dimension_numbers<[1], [0], [0], [1], [0, 0, 1, 1], [], []>, precision = #tpu.contract_precision<fp32>} : vector<64x8xf32>, vector<8x64xf32>, vector<64x64xf32> -> vector<64x64xf32>
    %c728 = arith.constant 728 : index
    %c0_45 = arith.constant 0 : index
    %112 = vector.load %arg1[%c728, %c0_45] : memref<1128x128xf32, #tpu.memory_space<vmem>>, vector<64x1xf32>
    %113 = vector.broadcast %112 : vector<64x1xf32> to vector<64x64xf32>
    %114 = arith.addf %111, %113 : vector<64x64xf32>
    %cst_46 = arith.constant 5.000000e-01 : f32
    %115 = vector.broadcast %cst_46 : f32 to vector<64x64xf32>
    %116 = arith.mulf %115, %114 : vector<64x64xf32>
    %cst_47 = arith.constant 1.41421354 : f32
    %117 = vector.broadcast %cst_47 : f32 to vector<64x64xf32>
    %118 = arith.divf %114, %117 : vector<64x64xf32>
    %119 = math.erf %118 : vector<64x64xf32>
    %cst_48 = arith.constant 1.000000e+00 : f32
    %120 = vector.broadcast %cst_48 : f32 to vector<64x64xf32>
    %121 = arith.addf %120, %119 : vector<64x64xf32>
    %122 = arith.mulf %116, %121 : vector<64x64xf32>
    %c792 = arith.constant 792 : index
    %c0_49 = arith.constant 0 : index
    %123 = vector.load %arg1[%c792, %c0_49] : memref<1128x128xf32, #tpu.memory_space<vmem>>, vector<8x64xf32>
    %cst_50 = arith.constant dense<0.000000e+00> : vector<8x64xf32>
    %124 = tpu.matmul %123, %122, %cst_50 {dimension_numbers = #tpu.dot_dimension_numbers<[1], [0], [0], [1], [0, 0, 1, 1], [], []>, precision = #tpu.contract_precision<fp32>} : vector<8x64xf32>, vector<64x64xf32>, vector<8x64xf32> -> vector<8x64xf32>
    %c800 = arith.constant 800 : index
    %c0_51 = arith.constant 0 : index
    %125 = vector.load %arg1[%c800, %c0_51] : memref<1128x128xf32, #tpu.memory_space<vmem>>, vector<8x1xf32>
    %126 = vector.broadcast %125 : vector<8x1xf32> to vector<8x64xf32>
    %127 = arith.addf %124, %126 : vector<8x64xf32>
    %128 = arith.addf %87, %127 : vector<8x64xf32>
    %c808 = arith.constant 808 : index
    %c0_52 = arith.constant 0 : index
    %129 = vector.load %arg1[%c808, %c0_52] : memref<1128x128xf32, #tpu.memory_space<vmem>>, vector<1x64xf32>
    %c816 = arith.constant 816 : index
    %c0_53 = arith.constant 0 : index
    %130 = vector.load %arg1[%c816, %c0_53] : memref<1128x128xf32, #tpu.memory_space<vmem>>, vector<1x64xf32>
    %cst_54 = arith.constant dense<0.000000e+00> : vector<8xf32>
    %131 = vector.multi_reduction <add>, %128, %cst_54 [1] : vector<8x64xf32> to vector<8xf32>
    %132 = vector.shape_cast %131 : vector<8xf32> to vector<8x1xf32>
    %cst_55 = arith.constant 6.400000e+01 : f32
    %133 = vector.broadcast %cst_55 : f32 to vector<8x1xf32>
    %134 = arith.divf %132, %133 : vector<8x1xf32>
    %135 = vector.broadcast %134 : vector<8x1xf32> to vector<8x64xf32>
    %136 = arith.subf %128, %135 : vector<8x64xf32>
    %137 = arith.mulf %136, %136 : vector<8x64xf32>
    %cst_56 = arith.constant dense<0.000000e+00> : vector<8xf32>
    %138 = vector.multi_reduction <add>, %137, %cst_56 [1] : vector<8x64xf32> to vector<8xf32>
    %139 = vector.shape_cast %138 : vector<8xf32> to vector<8x1xf32>
    %cst_57 = arith.constant 6.400000e+01 : f32
    %140 = vector.broadcast %cst_57 : f32 to vector<8x1xf32>
    %141 = arith.divf %139, %140 : vector<8x1xf32>
    %cst_58 = arith.constant 9.99999997E-7 : f32
    %142 = vector.broadcast %cst_58 : f32 to vector<8x1xf32>
    %143 = arith.addf %141, %142 : vector<8x1xf32>
    %144 = math.rsqrt %143 : vector<8x1xf32>
    %145 = vector.broadcast %144 : vector<8x1xf32> to vector<8x64xf32>
    %146 = arith.mulf %136, %145 : vector<8x64xf32>
    %147 = vector.broadcast %129 : vector<1x64xf32> to vector<8x64xf32>
    %148 = arith.mulf %146, %147 : vector<8x64xf32>
    %149 = vector.broadcast %130 : vector<1x64xf32> to vector<8x64xf32>
    %150 = arith.addf %148, %149 : vector<8x64xf32>
    %c824 = arith.constant 824 : index
    %c0_59 = arith.constant 0 : index
    %151 = vector.load %arg1[%c824, %c0_59] : memref<1128x128xf32, #tpu.memory_space<vmem>>, vector<64x128xf32>
    %cst_60 = arith.constant dense<0.000000e+00> : vector<8x128xf32>
    %152 = tpu.matmul %150, %151, %cst_60 {dimension_numbers = #tpu.dot_dimension_numbers<[1], [0], [0], [1], [0, 0, 1, 1], [], []>, precision = #tpu.contract_precision<fp32>} : vector<8x64xf32>, vector<64x128xf32>, vector<8x128xf32> -> vector<8x128xf32>
    %c888 = arith.constant 888 : index
    %c0_61 = arith.constant 0 : index
    %153 = vector.load %arg1[%c888, %c0_61] : memref<1128x128xf32, #tpu.memory_space<vmem>>, vector<1x128xf32>
    %154 = vector.broadcast %153 : vector<1x128xf32> to vector<8x128xf32>
    %155 = arith.addf %152, %154 : vector<8x128xf32>
    %cst_62 = arith.constant 5.000000e-01 : f32
    %156 = vector.broadcast %cst_62 : f32 to vector<8x128xf32>
    %157 = arith.mulf %156, %155 : vector<8x128xf32>
    %cst_63 = arith.constant 1.41421354 : f32
    %158 = vector.broadcast %cst_63 : f32 to vector<8x128xf32>
    %159 = arith.divf %155, %158 : vector<8x128xf32>
    %160 = math.erf %159 : vector<8x128xf32>
    %cst_64 = arith.constant 1.000000e+00 : f32
    %161 = vector.broadcast %cst_64 : f32 to vector<8x128xf32>
    %162 = arith.addf %161, %160 : vector<8x128xf32>
    %163 = arith.mulf %157, %162 : vector<8x128xf32>
    %c896 = arith.constant 896 : index
    %c0_65 = arith.constant 0 : index
    %164 = vector.load %arg1[%c896, %c0_65] : memref<1128x128xf32, #tpu.memory_space<vmem>>, vector<128x64xf32>
    %cst_66 = arith.constant dense<0.000000e+00> : vector<8x64xf32>
    %165 = tpu.matmul %163, %164, %cst_66 {dimension_numbers = #tpu.dot_dimension_numbers<[1], [0], [0], [1], [0, 0, 1, 1], [], []>, precision = #tpu.contract_precision<fp32>} : vector<8x128xf32>, vector<128x64xf32>, vector<8x64xf32> -> vector<8x64xf32>
    %c1024 = arith.constant 1024 : index
    %c0_67 = arith.constant 0 : index
    %166 = vector.load %arg1[%c1024, %c0_67] : memref<1128x128xf32, #tpu.memory_space<vmem>>, vector<1x64xf32>
    %167 = vector.broadcast %166 : vector<1x64xf32> to vector<8x64xf32>
    %168 = arith.addf %165, %167 : vector<8x64xf32>
    %169 = arith.addf %128, %168 : vector<8x64xf32>
    %c1032 = arith.constant 1032 : index
    %c0_68 = arith.constant 0 : index
    %170 = vector.load %arg1[%c1032, %c0_68] : memref<1128x128xf32, #tpu.memory_space<vmem>>, vector<1x64xf32>
    %c1040 = arith.constant 1040 : index
    %c0_69 = arith.constant 0 : index
    %171 = vector.load %arg1[%c1040, %c0_69] : memref<1128x128xf32, #tpu.memory_space<vmem>>, vector<1x64xf32>
    %cst_70 = arith.constant dense<0.000000e+00> : vector<8xf32>
    %172 = vector.multi_reduction <add>, %169, %cst_70 [1] : vector<8x64xf32> to vector<8xf32>
    %173 = vector.shape_cast %172 : vector<8xf32> to vector<8x1xf32>
    %cst_71 = arith.constant 6.400000e+01 : f32
    %174 = vector.broadcast %cst_71 : f32 to vector<8x1xf32>
    %175 = arith.divf %173, %174 : vector<8x1xf32>
    %176 = vector.broadcast %175 : vector<8x1xf32> to vector<8x64xf32>
    %177 = arith.subf %169, %176 : vector<8x64xf32>
    %178 = arith.mulf %177, %177 : vector<8x64xf32>
    %cst_72 = arith.constant dense<0.000000e+00> : vector<8xf32>
    %179 = vector.multi_reduction <add>, %178, %cst_72 [1] : vector<8x64xf32> to vector<8xf32>
    %180 = vector.shape_cast %179 : vector<8xf32> to vector<8x1xf32>
    %cst_73 = arith.constant 6.400000e+01 : f32
    %181 = vector.broadcast %cst_73 : f32 to vector<8x1xf32>
    %182 = arith.divf %180, %181 : vector<8x1xf32>
    %cst_74 = arith.constant 9.99999997E-7 : f32
    %183 = vector.broadcast %cst_74 : f32 to vector<8x1xf32>
    %184 = arith.addf %182, %183 : vector<8x1xf32>
    %185 = math.rsqrt %184 : vector<8x1xf32>
    %186 = vector.broadcast %185 : vector<8x1xf32> to vector<8x64xf32>
    %187 = arith.mulf %177, %186 : vector<8x64xf32>
    %188 = vector.broadcast %170 : vector<1x64xf32> to vector<8x64xf32>
    %189 = arith.mulf %187, %188 : vector<8x64xf32>
    %190 = vector.broadcast %171 : vector<1x64xf32> to vector<8x64xf32>
    %191 = arith.addf %189, %190 : vector<8x64xf32>
    %c1048 = arith.constant 1048 : index
    %c0_75 = arith.constant 0 : index
    %192 = vector.load %arg1[%c1048, %c0_75] : memref<1128x128xf32, #tpu.memory_space<vmem>>, vector<2x8xf32>
    %cst_76 = arith.constant dense<0.000000e+00> : vector<2x64xf32>
    %193 = tpu.matmul %192, %191, %cst_76 {dimension_numbers = #tpu.dot_dimension_numbers<[1], [0], [0], [1], [0, 0, 1, 1], [], []>, precision = #tpu.contract_precision<fp32>} : vector<2x8xf32>, vector<8x64xf32>, vector<2x64xf32> -> vector<2x64xf32>
    %c1056 = arith.constant 1056 : index
    %c0_77 = arith.constant 0 : index
    %194 = vector.load %arg1[%c1056, %c0_77] : memref<1128x128xf32, #tpu.memory_space<vmem>>, vector<64x128xf32>
    %cst_78 = arith.constant dense<0.000000e+00> : vector<2x128xf32>
    %195 = tpu.matmul %193, %194, %cst_78 {dimension_numbers = #tpu.dot_dimension_numbers<[1], [0], [0], [1], [0, 0, 1, 1], [], []>, precision = #tpu.contract_precision<fp32>} : vector<2x64xf32>, vector<64x128xf32>, vector<2x128xf32> -> vector<2x128xf32>
    %c1120 = arith.constant 1120 : index
    %c0_79 = arith.constant 0 : index
    %196 = vector.load %arg1[%c1120, %c0_79] : memref<1128x128xf32, #tpu.memory_space<vmem>>, vector<1x128xf32>
    %197 = vector.broadcast %196 : vector<1x128xf32> to vector<2x128xf32>
    %198 = arith.addf %195, %197 : vector<2x128xf32>
    %c0_80 = arith.constant 0 : index
    %c0_81 = arith.constant 0 : index
    %199 = vector.load %arg2[%c0_80, %c0_81] : memref<2x128xf32, #tpu.memory_space<vmem>>, vector<2x128xf32>
    tpu.vector_store %arg2[%c0_80, %c0_81], %198 {strides = array<i32>} : memref<2x128xf32, #tpu.memory_space<vmem>>, vector<2x128xf32>,
    return
  }
}

</mosaic_0001>

<bundles_post_ra>
// kernel: mixer_forward.1
= control target key start
LH: loop header
LB: loop body
LE: loop exit
PB: predicated region body
PF: predicated region fallthrough
CT: control target
= control target key end

     0   :  { %7 = vsyncpa [#allocation3], 0  ;;  %s7285_s0 = inlined_call_operand.vmem [shape: f32[8,256], index: 0, kind: input, shape index: {}]   ;;  %s7286_s1 = inlined_call_operand.hbm [shape: f32[1128,128], index: 1, kind: input, shape index: {}]   ;;  %s7287_s2 = inlined_call_operand.hbm [shape: f32[2,128], index: 2, kind: output, shape index: {}]  }
   0x1   :  { %8 = vsyncpa [#allocation4], 0  ;;  %s15_s11 = sshll.u32 %s7286_s1, 4  ;;  %s4860_s12 = smov [#allocation2]   ;;  %s16_s11 = int_to_ptr.hbm [resolvable:$true] %s15_s11 }
   0x2   :  { %s17_s13 = sshll.u32 %s4860_s12, 4  ;;  %s4861_s14 = smov 128   ;;  %s18_s13 = int_to_ptr.vmem [resolvable:$true] %s17_s13 }
   0x3   :  { %s4862_s15 = smov 8  }
   0x4   :  { %23 = dma.hbm_to_vmem [thread:$0]  %s16_s11, 18048, %s18_s13, [#allocation3], %s4861_s14, %s4861_s14, %s4862_s15  }
   0x5   :  { %4856 = dma.done.wait [#allocation3], 18048  }
   0x6   :  { %4857 = vsyncadd [#allocation3], 4294949248  ;;  %v45_v0 = vld [vmem:[#allocation2 + $0x78] sm:$0xff]  ;;  %v44_v1 = vld [vmem:[#allocation2 + $0x70] sm:$0xff]  ;;  %vm7312_vm0 = vcmask 523264   ;;  %vm7311_vm2 = vcmask 64512  }
   0x7   :  { %v43_v2 = vld [vmem:[#allocation2 + $0x68] sm:$0xff]  ;;  %v4885_v3 = vand.u32 4294901760, %v45_v0  ;;  %v4887_v4 = vand.u32 4294901760, %v44_v1  ;;  %v42_v6 = vld [vmem:[#allocation2 + $0x60] sm:$0xff]  ;;  %v41_v7 = vld [vmem:[#allocation2 + $0x58] sm:$0xff]  ;;  %s4704_s22 = sshll.u32 %s7287_s2, 4  ;;  %s4705_s22 = int_to_ptr.hbm [resolvable:$true] %s4704_s22 }
   0x8   :  { %v4889_v5 = vand.u32 4294901760, %v43_v2  ;;  %v40_v8 = vld [vmem:[#allocation2 + $0x50] sm:$0xff]  ;;  %v4891_v9 = vand.u32 4294901760, %v42_v6  ;;  %v4893_v10 = vand.u32 4294901760, %v41_v7  ;;  %v39_v12 = vld [vmem:[#allocation2 + $0x48] sm:$0xff]  ;;  %v38_v13 = vld [vmem:[#allocation2 + $0x40] sm:$0xff] }
   0x9   :  { %v4895_v11 = vand.u32 4294901760, %v40_v8  ;;  %65 = vmatpush.msra.mxu0 %v4885_v3  ;;  %v4899_v14 = vsub.f32 %v45_v0, %v4885_v3  ;;  %v4902_v15 = vsub.f32 %v44_v1, %v4887_v4  ;;  %261 = vmatpush.msra.mxu3 %v4885_v3  ;;  %v4908_v17 = vand.u32 4294901760, %v39_v12  ;;  %v37_v21 = vld [vmem:[#allocation2 + $0x38] sm:$0xff]  ;;  %v36_v26 = vld [vmem:[#allocation2 + $0x30] sm:$0xff]  ;;  %v35_v34 = vld [vmem:[#allocation2 + $0x28] sm:$0xff] }
   0xa   :  { %v4906_v16 = vsub.f32 %v43_v2, %v4889_v5  ;;  %v4911_v18 = vsub.f32 %v42_v6, %v4891_v9  ;;  %v4914_v19 = vsub.f32 %v41_v7, %v4893_v10  ;;  %v4924_v25 = vand.u32 4294901760, %v38_v13  ;;  %v34_v42 = vld [vmem:[#allocation2 + $0x20] sm:$0xff]  ;;  %v33_v47 = vld [vmem:[#allocation2 + $0x18] sm:$0xff]  ;;  %v32_v54 = vld [vmem:[#allocation2 + $0x10] sm:$0xff] }
   0xb   :  { %v4917_v20 = vsub.f32 %v40_v8, %v4895_v11  ;;  %67 = vmatpush.msra.mxu0 %v4887_v4  ;;  %208 = vmatpush.msra.mxu2 %v4899_v14  ;;  %v107_v22 = vand.u32 4294901760, %v4899_v14  ;;  %v7303_v23 = vand.u32 4294901760, %v4902_v15  ;;  %v4930_v29 = vsub.f32 %v39_v12, %v4908_v17  ;;  %v61_v59 = vld [vmem:[#allocation2 + $0xf8] sm:$0xff]  ;;  %v31_v61 = vld [vmem:[#allocation2 + $0x8] sm:$0xff]  ;;  %v30_v2 = vld [vmem:[#allocation2] sm:$0xff] }
   0xc   :  { %v7301_v24 = vand.u32 4294901760, %v4906_v16  ;;  %263 = vmatpush.msra.mxu3 %v4887_v4  ;;  %v7300_v27 = vand.u32 4294901760, %v4911_v18  ;;  %v7297_v28 = vand.u32 4294901760, %v4914_v19  ;;  %v4943_v33 = vand.u32 4294901760, %v37_v21  ;;  %v60_v6 = vld [vmem:[#allocation2 + $0xf0] sm:$0xff] }
   0xd   :  { %69 = vmatpush.msra.mxu0 %v4889_v5  ;;  %211 = vmatpush.msra.mxu2 %v4902_v15  ;;  %v108_v30 = vsub.f32 %v4899_v14, %v107_v22  ;;  %v114_v31 = vsub.f32 %v4902_v15, %v7303_v23  ;;  %v4946_v35 = vand.u32 4294901760, %v36_v26  ;;  %v7295_v36 = vand.u32 4294901760, %v4917_v20 }
   0xe   :  { %v120_v32 = vsub.f32 %v4906_v16, %v7301_v24  ;;  %265 = vmatpush.msra.mxu3 %v4889_v5  ;;  %v126_v39 = vsub.f32 %v4911_v18, %v7300_v27  ;;  %v4955_v40 = vsub.f32 %v38_v13, %v4924_v25  ;;  %v132_v41 = vsub.f32 %v4914_v19, %v7297_v28 }
   0xf   :  { %71 = vmatpush.msra.mxu0 %v4891_v9  ;;  %v109_v37 = vand.u32 4294901760, %v108_v30  ;;  %214 = vmatpush.msra.mxu2 %v4906_v16  ;;  %v115_v38 = vand.u32 4294901760, %v114_v31  ;;  %v4962_v44 = vand.u32 4294901760, %v35_v34  ;;  %v7294_v45 = vand.u32 4294901760, %v4930_v29 }
  0x10   :  { %267 = vmatpush.msra.mxu3 %v4891_v9  ;;  %v121_v43 = vand.u32 4294901760, %v120_v32  ;;  %v4966_v46 = vsub.f32 %v37_v21, %v4943_v33  ;;  %v138_v48 = vsub.f32 %v4917_v20, %v7295_v36  ;;  %v127_v49 = vand.u32 4294901760, %v126_v39  ;;  %v59_v32 = vld [vmem:[#allocation2 + $0xe8] sm:$0xff] }
  0x11   :  { %73 = vmatpush.msra.mxu0 %v4893_v10  ;;  %110 = vmatpush.msra.mxu1 %v109_v37  ;;  %v4974_v50 = vand.u32 4294901760, %v34_v42  ;;  %v7293_v51 = vand.u32 4294901760, %v4955_v40  ;;  %v4978_v52 = vsub.f32 %v36_v26, %v4946_v35  ;;  %v4982_v53 = vand.u32 4294901760, %v33_v47 }
  0x12   :  { %217 = vmatpush.msra.mxu2 %v4911_v18  ;;  %269 = vmatpush.msra.mxu3 %v4893_v10  ;;  %v133_v55 = vand.u32 4294901760, %v132_v41  ;;  %v144_v56 = vsub.f32 %v4930_v29, %v7294_v45  ;;  %v7292_v57 = vand.u32 4294901760, %v4966_v46  ;;  %v4990_v58 = vsub.f32 %v35_v34, %v4962_v44  ;;  %v54_v45 = vld [vmem:[#allocation2 + $0xc0] sm:$0xff] }
  0x13   :  { %75 = vmatpush.msra.mxu0 %v4895_v11  ;;  %116 = vmatpush.msra.mxu1 %v115_v38  ;;  %v139_v60 = vand.u32 4294901760, %v138_v48  ;;  %v150_v62 = vsub.f32 %v4955_v40, %v7293_v51  ;;  %v4998_v63 = vand.u32 4294901760, %v32_v54  ;;  %v7291_v0 = vand.u32 4294901760, %v4978_v52 }
  0x14   :  { %220 = vmatpush.msra.mxu2 %v4914_v19  ;;  %271 = vmatpush.msra.mxu3 %v4895_v11  ;;  %v5002_v1 = vsub.f32 %v34_v42, %v4974_v50  ;;  %v5007_v7 = vsub.f32 %v33_v47, %v4982_v53  ;;  %v5009_v8 = vand.u32 4294901760, %v61_v59  ;;  %v145_v12 = vand.u32 4294901760, %v144_v56 }
  0x15   :  { %77 = vmatpush.msra.mxu0 %v4908_v17  ;;  %122 = vmatpush.msra.mxu1 %v121_v43  ;;  %v156_v13 = vsub.f32 %v4966_v46, %v7292_v57  ;;  %v5015_v21 = vand.u32 4294901760, %v31_v61  ;;  %v7289_v26 = vand.u32 4294901760, %v4990_v58  ;;  %v5020_v30 = vand.u32 4294901760, %v30_v2  ;;  %v58_v43 = vld [vmem:[#allocation2 + $0xe0] sm:$0xff]  ;;  %v55_v57 = vld [vmem:[#allocation2 + $0xc8] sm:$0xff] }
  0x16   :  { %223 = vmatpush.msra.mxu2 %v4917_v20  ;;  %273 = vmatpush.msra.mxu3 %v4908_v17  ;;  %v5022_v31 = vand.u32 4294901760, %v60_v6  ;;  %v151_v34 = vand.u32 4294901760, %v150_v62  ;;  %v162_v37 = vsub.f32 %v4978_v52, %v7291_v0  ;;  %v7288_v38 = vand.u32 4294901760, %v5002_v1 }
  0x17   :  { %79 = vmatpush.msra.mxu0 %v4924_v25  ;;  %128 = vmatpush.msra.mxu1 %v127_v49  ;;  %7314 = vst [vmem:[#allocation8_spill] sm:$0xff] %v5020_v30  ;;  %v5030_v39 = vsub.f32 %v32_v54, %v4998_v63  ;;  %v7290_v41 = vand.u32 4294901760, %v5007_v7  ;;  %v5036_v42 = vsub.f32 %v61_v59, %v5009_v8  ;;  %v157_v47 = vand.u32 4294901760, %v156_v13  ;;  %v57_v59 = vld [vmem:[#allocation2 + $0xd8] sm:$0xff]  ;;  %v56_v13 = vld [vmem:[#allocation2 + $0xd0] sm:$0xff] }
  0x18   :  { %226 = vmatpush.msra.mxu2 %v4930_v29  ;;  %275 = vmatpush.msra.mxu3 %v4924_v25  ;;  %v168_v48 = vsub.f32 %v4990_v58, %v7289_v26  ;;  %v5043_v49 = vsub.f32 %v31_v61, %v5015_v21  ;;  %v5045_v54 = vand.u32 4294901760, %v59_v32  ;;  %v5053_v56 = vsub.f32 %v60_v6, %v5022_v31 }
  0x19   :  { %81 = vmatpush.msra.mxu0 %v4943_v33  ;;  %134 = vmatpush.msra.mxu1 %v133_v55  ;;  %v5050_v55 = vsub.f32 %v30_v2, %v5020_v30  ;;  %v174_v61 = vsub.f32 %v5002_v1, %v7288_v38  ;;  %v7296_v62 = vand.u32 4294901760, %v5030_v39  ;;  %v180_v2 = vsub.f32 %v5007_v7, %v7290_v41 }
  0x1a   :  { %229 = vmatpush.msra.mxu2 %v4955_v40  ;;  %277 = vmatpush.msra.mxu3 %v4943_v33  ;;  %v7298_v6 = vand.u32 4294901760, %v5036_v42  ;;  %v5071_v38 = vsub.f32 %v59_v32, %v5045_v54  ;;  %v5073_v26 = vand.u32 4294901760, %v57_v59  ;;  %v7302_v0 = vand.u32 4294901760, %v5053_v56 }
  0x1b   :  { %83 = vmatpush.msra.mxu0 %v4946_v35  ;;  %140 = vmatpush.msra.mxu1 %v139_v60  ;;  %v163_v60 = vand.u32 4294901760, %v162_v37  ;;  %v7299_v37 = vand.u32 4294901760, %v5043_v49  ;;  %v7304_v41 = vand.u32 4294901760, %v5050_v55  ;;  %v186_v32 = vsub.f32 %v5030_v39, %v7296_v62 }
  0x1c   :  { %232 = vmatpush.msra.mxu2 %v4966_v46  ;;  %279 = vmatpush.msra.mxu3 %v4946_v35  ;;  %v5086_v51 = vand.u32 4294901760, %v56_v13  ;;  %v181_v36 = vand.u32 4294901760, %v180_v2  ;;  %v5099_v62 = vsub.f32 %v57_v59, %v5073_v26  ;;  %v5101_v28 = vand.u32 4294901760, %v55_v57  ;;  %v53_v2 = vld [vmem:[#allocation2 + $0xb8] sm:$0xff] }
  0x1d   :  { %85 = vmatpush.msra.mxu0 %v4962_v44  ;;  %146 = vmatpush.msra.mxu1 %v145_v12  ;;  %v5060_v12 = vand.u32 4294901760, %v58_v43  ;;  %v198_v59 = vsub.f32 %v5050_v55, %v7304_v41  ;;  %v5121_v23 = vand.u32 4294901760, %v53_v2  ;;  %v7316_v14 = vand.u32 4294901760, %v4902_v15 }
  0x1e   :  { %235 = vmatpush.msra.mxu2 %v4978_v52  ;;  %281 = vmatpush.msra.mxu3 %v4962_v44  ;;  %v5116_v24 = vsub.f32 %v56_v13, %v5086_v51  ;;  %v5129_v27 = vsub.f32 %v55_v57, %v5101_v28  ;;  %v7318_v15 = vand.u32 4294901760, %v4906_v16  ;;  %v7320_v16 = vand.u32 4294901760, %v4911_v18 }
  0x1f   :  { %87 = vmatpush.msra.mxu0 %v4974_v50  ;;  %152 = vmatpush.msra.mxu1 %v151_v34  ;;  %v169_v34 = vand.u32 4294901760, %v168_v48  ;;  %v5084_v48 = vsub.f32 %v58_v43, %v5060_v12  ;;  %v192_v43 = vsub.f32 %v5043_v49, %v7299_v37  ;;  %v187_v37 = vand.u32 4294901760, %v186_v32 }
  0x20   :  { %238 = vmatpush.msra.mxu2 %v4990_v58  ;;  %283 = vmatpush.msra.mxu3 %v4974_v50  ;;  %v7315_v32 = vand.u32 4294901760, %v5071_v38  ;;  %v7322_v18 = vand.u32 4294901760, %v4914_v19 }
  0x21   :  { %89 = vmatpush.msra.mxu0 %v4982_v53  ;;  %158 = vmatpush.msra.mxu1 %v157_v47  ;;  %v175_v47 = vand.u32 4294901760, %v174_v61  ;;  %v52_v61 = vld [vmem:[#allocation2 + $0xb0] sm:$0xff] }
  0x22   :  { %241 = vmatpush.msra.mxu2 %v5002_v1  ;;  %285 = vmatpush.msra.mxu3 %v4982_v53  ;;  %v461_v41 = vsub.f32 %v5071_v38, %v7315_v32  ;;  %v7317_v32 = vand.u32 4294901760, %v5084_v48 }
  0x23   :  { %91 = vmatpush.msra.mxu0 %v4998_v63  ;;  %164 = vmatpush.msra.mxu1 %v163_v60  ;;  %v449_v60 = vsub.f32 %v5036_v42, %v7298_v6  ;;  %v5108_v6 = vand.u32 4294901760, %v54_v45 }
  0x24   :  { %244 = vmatpush.msra.mxu2 %v5007_v7  ;;  %287 = vmatpush.msra.mxu3 %v4998_v63  ;;  %v467_v13 = vsub.f32 %v5084_v48, %v7317_v32 }
  0x25   :  { %93 = vmatpush.msra.mxu0 %v5015_v21  ;;  %170 = vmatpush.msra.mxu1 %v169_v34  ;;  %v455_v34 = vsub.f32 %v5053_v56, %v7302_v0  ;;  %v450_v0 = vand.u32 4294901760, %v449_v60  ;;  %v51_v60 = vld [vmem:[#allocation2 + $0xa8] sm:$0xff] }
  0x26   :  { %247 = vmatpush.msra.mxu2 %v5030_v39  ;;  %289 = vmatpush.msra.mxu3 %v5015_v21  ;;  %v5154_v57 = vand.u32 4294901760, %v51_v60 }
  0x27   :  { %95 = vmatpush.msra.mxu0 %v5020_v30  ;;  %176 = vmatpush.msra.mxu1 %v175_v47  ;;  %v193_v47 = vand.u32 4294901760, %v192_v43  ;;  %v199_v43 = vand.u32 4294901760, %v198_v59  ;;  %v7319_v59 = vand.u32 4294901760, %v5099_v62 }
  0x28   :  { %250 = vmatpush.msra.mxu2 %v5043_v49  ;;  %291 = vmatpush.msra.mxu3 %v5020_v30  ;;  %v5142_v30 = vand.u32 4294901760, %v52_v61 }
  0x29   :  { %302 = vmatpush.msrb.mxu0 %v107_v22  ;;  %182 = vmatpush.msra.mxu1 %v181_v36  ;;  %v456_v22 = vand.u32 4294901760, %v455_v34  ;;  %v5135_v36 = vsub.f32 %v54_v45, %v5108_v6  ;;  %v5147_v45 = vsub.f32 %v53_v2, %v5121_v23  ;;  %v50_v34 = vld [vmem:[#allocation2 + $0xa0] sm:$0xff]  ;;  %v49_v2 = vld [vmem:[#allocation2 + $0x98] sm:$0xff] }
  0x2a   :  { %253 = vmatpush.msra.mxu2 %v5050_v55  ;;  %451 = vmatpush.msrb.mxu3 %v450_v0  ;;  %v5166_v32 = vand.u32 4294901760, %v50_v34  ;;  %v5182_v19 = vand.u32 4294901760, %v49_v2 }
  0x2b   :  { %306 = vmatpush.msrb.mxu0 %v7316_v14  ;;  %188 = vmatpush.msra.mxu1 %v187_v37  ;;  %v462_v37 = vand.u32 4294901760, %v461_v41  ;;  %v473_v14 = vsub.f32 %v5099_v62, %v7319_v59  ;;  %v7306_v0 = vand.u32 4294901760, %v5135_v36  ;;  %v7321_v41 = vand.u32 4294901760, %v5116_v24 }
  0x2c   :  { %406 = vmatpush.msrb.mxu2 %v5009_v8  ;;  %457 = vmatpush.msrb.mxu3 %v456_v22  ;;  %v5164_v59 = vsub.f32 %v52_v61, %v5142_v30  ;;  %v7323_v61 = vand.u32 4294901760, %v5129_v27 }
  0x2d   :  { %310 = vmatpush.msrb.mxu0 %v7318_v15  ;;  %194 = vmatpush.msra.mxu1 %v193_v47  ;;  %v468_v47 = vand.u32 4294901760, %v467_v13  ;;  %v479_v15 = vsub.f32 %v5116_v24, %v7321_v41  ;;  %v28_v13 = vld [vmem:[%s7285_s0] sm:$0xff]  ;;  %v5180_v41 = vsub.f32 %v51_v60, %v5154_v57  ;;  %v5193_v60 = vsub.f32 %v50_v34, %v5166_v32 }
  0x2e   :  { %408 = vmatpush.msrb.mxu2 %v5022_v31  ;;  %463 = vmatpush.msrb.mxu3 %v462_v37  ;;  %v48_v37 = vld [vmem:[#allocation2 + $0x90] sm:$0xff]  ;;  %v5195_v22 = vand.u32 4294901760, %v28_v13 }
  0x2f   :  { %314 = vmatpush.msrb.mxu0 %v7320_v16  ;;  %200 = vmatpush.msra.mxu1 %v199_v43  ;;  %v474_v43 = vand.u32 4294901760, %v473_v14  ;;  %v485_v16 = vsub.f32 %v5129_v27, %v7323_v61  ;;  %v480_v14 = vand.u32 4294901760, %v479_v15  ;;  %v5205_v34 = vand.u32 4294901760, %v48_v37 }
  0x30   :  { %410 = vmatpush.msrb.mxu2 %v5045_v54  ;;  %469 = vmatpush.msrb.mxu3 %v468_v47  ;;  %v5208_v61 = vsub.f32 %v49_v2, %v5182_v19  ;;  %v5219_v15 = vsub.f32 %v28_v13, %v5195_v22 }
  0x31   :  { %318 = vmatpush.msrb.mxu0 %v7322_v18  ;;  %369 = vmatpush.msrb.mxu1 %v4885_v3  ;;  %v7324_v3 = vand.u32 4294901760, %v4917_v20  ;;  %v491_v18 = vsub.f32 %v5135_v36, %v7306_v0  ;;  %v7325_v20 = vand.u32 4294901760, %v4930_v29  ;;  %v47_v0 = vld [vmem:[#allocation2 + $0x88] sm:$0xff]  ;;  %v486_v47 = vand.u32 4294901760, %v485_v16 }
  0x32   :  { %412 = vmatpush.msrb.mxu2 %v5060_v12  ;;  %475 = vmatpush.msrb.mxu3 %v474_v43  ;;  %v7327_v29 = vand.u32 4294901760, %v4955_v40  ;;  %v7328_v43 = vand.u32 4294901760, %v5164_v59  ;;  %v5221_v2 = vand.u32 4294901760, %v47_v0  ;;  %v7329_v40 = vand.u32 4294901760, %v4966_v46 }
  0x33   :  { %322 = vmatpush.msrb.mxu0 %v7324_v3  ;;  %371 = vmatpush.msrb.mxu1 %v4887_v4  ;;  %v7326_v4 = vand.u32 4294901760, %v5147_v45  ;;  %v5232_v13 = vsub.f32 %v48_v37, %v5205_v34  ;;  %v7331_v46 = vand.u32 4294901760, %v4978_v52 }
  0x34   :  { %414 = vmatpush.msrb.mxu2 %v5073_v26  ;;  %481 = vmatpush.msrb.mxu3 %v480_v14  ;;  %v503_v16 = vsub.f32 %v5164_v59, %v7328_v43  ;;  %v5245_v37 = vsub.f32 %v47_v0, %v5221_v2  ;;  %v7333_v0 = vand.u32 4294901760, %v5002_v1 }
  0x35   :  { %326 = vmatpush.msrb.mxu0 %v7325_v20  ;;  %373 = vmatpush.msrb.mxu1 %v4889_v5  ;;  %v497_v3 = vsub.f32 %v5147_v45, %v7326_v4  ;;  %v492_v5 = vand.u32 4294901760, %v491_v18  ;;  %v46_v20 = vld [vmem:[#allocation2 + $0x80] sm:$0xff]  ;;  %v514_v4 = vand.u32 4294901760, %v5193_v60  ;;  %v7330_v18 = vand.u32 4294901760, %v5180_v41 }
  0x36   :  { %416 = vmatpush.msrb.mxu2 %v5086_v51  ;;  %487 = vmatpush.msrb.mxu3 %v486_v47  ;;  %v5234_v43 = vand.u32 4294901760, %v46_v20  ;;  %v98_v47 = vand.u32 4294901760, %v5219_v15 }
  0x37   :  { %330 = vmatpush.msrb.mxu0 %v7327_v29  ;;  %375 = vmatpush.msrb.mxu1 %v4891_v9  ;;  %v498_v9 = vand.u32 4294901760, %v497_v3  ;;  %v509_v14 = vsub.f32 %v5180_v41, %v7330_v18  ;;  %v520_v29 = vand.u32 4294901760, %v5208_v61  ;;  %v515_v3 = vsub.f32 %v5193_v60, %v514_v4 }
  0x38   :  { %418 = vmatpush.msrb.mxu2 %v5101_v28  ;;  %493 = vmatpush.msrb.mxu3 %v492_v5  ;;  %v526_v5 = vand.u32 4294901760, %v5232_v13  ;;  %v532_v18 = vand.u32 4294901760, %v5245_v37 }
  0x39   :  { %334 = vmatpush.msrb.mxu0 %v7329_v40  ;;  %377 = vmatpush.msrb.mxu1 %v4893_v10  ;;  %v504_v10 = vand.u32 4294901760, %v503_v16  ;;  %v7332_v40 = vand.u32 4294901760, %v4990_v58  ;;  %v521_v52 = vsub.f32 %v5208_v61, %v520_v29  ;;  %v5256_v16 = vsub.f32 %v46_v20, %v5234_v43 }
  0x3a   :  { %420 = vmatpush.msrb.mxu2 %v5108_v6  ;;  %499 = vmatpush.msrb.mxu3 %v498_v9  ;;  %v516_v58 = vand.u32 4294901760, %v515_v3  ;;  %v99_v9 = vsub.f32 %v5219_v15, %v98_v47  ;;  %v7334_v20 = vand.u32 4294901760, %v5007_v7  ;;  %v527_v1 = vsub.f32 %v5232_v13, %v526_v5 }
  0x3b   :  { %338 = vmatpush.msrb.mxu0 %v7331_v46  ;;  %379 = vmatpush.msrb.mxu1 %v4895_v11  ;;  %v510_v11 = vand.u32 4294901760, %v509_v14  ;;  %v538_v14 = vand.u32 4294901760, %v5256_v16  ;;  %v533_v7 = vsub.f32 %v5245_v37, %v532_v18  ;;  %v7336_v3 = vand.u32 4294901760, %v5043_v49 }
  0x3c   :  { %422 = vmatpush.msrb.mxu2 %v5121_v23  ;;  %505 = vmatpush.msrb.mxu3 %v504_v10  ;;  %v7335_v10 = vand.u32 4294901760, %v5030_v39  ;;  %v528_v39 = vand.u32 4294901760, %v527_v1 }
  0x3d   :  { %342 = vmatpush.msrb.mxu0 %v7332_v40  ;;  %381 = vmatpush.msrb.mxu1 %v4908_v17  ;;  %v29_v17 = vld [vmem:[%s7285_s0 + $0x8] sm:$0xff]  ;;  %s4866_s0 = smov [#allocation5]  }
  0x3e   :  { %424 = vmatpush.msrb.mxu2 %v5142_v30  ;;  %511 = vmatpush.msrb.mxu3 %v510_v11  ;;  %v5275_v46 = vand.u32 4294901760, %v29_v17  ;;  %v7337_v11 = vand.u32 4294901760, %v5050_v55  ;;  %v7340_v55 = vld [vmem:[#allocation8_spill] sm:$0xff]  ;;  %s4702_s19 = sshll.u32 %s4866_s0, 4  ;;  %s4703_s19 = int_to_ptr.vmem [resolvable:$true] %s4702_s19 }
  0x3f   :  { %346 = vmatpush.msrb.mxu0 %v7333_v0  ;;  %383 = vmatpush.msrb.mxu1 %v4924_v25  ;;  %v522_v25 = vand.u32 4294901760, %v521_v52 }
  0x40   :  { %426 = vmatpush.msrb.mxu2 %v5154_v57  ;;  %517 = vmatpush.msrb.mxu3 %v516_v58  ;;  %v5292_v40 = vsub.f32 %v29_v17, %v5275_v46 }
  0x41   :  { %350 = vmatpush.msrb.mxu0 %v7334_v20  ;;  %385 = vmatpush.msrb.mxu1 %v4943_v33  ;;  %v100_v33 = vand.u32 4294901760, %v99_v9 }
  0x42   :  { %428 = vmatpush.msrb.mxu2 %v5166_v32  ;;  %523 = vmatpush.msrb.mxu3 %v522_v25  ;;  %v439_v52 = vand.u32 4294901760, %v5292_v40 }
  0x43   :  { %354 = vmatpush.msrb.mxu0 %v7335_v10  ;;  %387 = vmatpush.msrb.mxu1 %v4946_v35  ;;  %v539_v35 = vsub.f32 %v5256_v16, %v538_v14  ;;  %v4864_v10 = vmov 0  }
  0x44   :  { %430 = vmatpush.msrb.mxu2 %v5182_v19  ;;  %101 = vmatmul.f32.vlgmr.msra.gmra.mxu0 %v100_v33 }
  0x45   :  { %358 = vmatpush.msrb.mxu0 %v7336_v3  ;;  %389 = vmatpush.msrb.mxu1 %v4962_v44  ;;  %v534_v44 = vand.u32 4294901760, %v533_v7  ;;  %v540_v49 = vand.u32 4294901760, %v539_v35  ;;  %v796_v7 = vld [vmem:[#allocation2 + $0x188] sm:$0xff]  ;;  %v782_v35 = vld [vmem:[#allocation2 + $0x118] sm:$0xff] }
  0x46   :  { %432 = vmatpush.msrb.mxu2 %v5205_v34  ;;  %529 = vmatpush.msrb.mxu3 %v528_v39 }
  0x47   :  { %362 = vmatpush.msrb.mxu0 %v7337_v11  ;;  %391 = vmatpush.msrb.mxu1 %v4974_v50  ;;  %v7338_v50 = vand.u32 4294901760, %v5036_v42  ;;  %v792_v11 = vld [vmem:[#allocation2 + $0x168] sm:$0xff] }
  0x48   :  { %434 = vmatpush.msrb.mxu2 %v5221_v2  ;;  %535 = vmatpush.msrb.mxu3 %v534_v44 }
  0x49   :  { %549 = vmatpush.msra.mxu0 %v5036_v42  ;;  %393 = vmatpush.msrb.mxu1 %v4982_v53  ;;  %v440_v53 = vsub.f32 %v5292_v40, %v439_v52 }
  0x4a   :  { %436 = vmatpush.msrb.mxu2 %v5234_v43  ;;  %541 = vmatpush.msrb.mxu3 %v540_v49 }
  0x4b   :  { %552 = vmatpush.msra.mxu0 %v5053_v56  ;;  %395 = vmatpush.msrb.mxu1 %v4998_v63  ;;  %v7339_v63 = vand.u32 4294901760, %v5053_v56  ;;  %v441_v42 = vand.u32 4294901760, %v440_v53  ;;  %v7342_v56 = vand.u32 4294901760, %v5084_v48  ;;  %v783_v53 = vld [vmem:[#allocation2 + $0x120] sm:$0xff] }
  0x4c   :  { %256 = vmatmul.f32.vlgmr.msra.gmra.mxu2 %v5219_v15  ;;  %295 = vmatmul.f32.vlgmr.msra.gmra.mxu3 %v98_v47 }
  0x4d   :  { %555 = vmatpush.msra.mxu0 %v5071_v38  ;;  %643 = vmatpush.msra.mxu2 %v7338_v50 }
  0x4e   :  { %397 = vmatpush.msrb.mxu1 %v5015_v21  ;;  %710 = vmatpush.msra.mxu3 %v5009_v8  ;;  %v7341_v21 = vand.u32 4294901760, %v5071_v38  ;;  %v7343_v38 = vand.u32 4294901760, %v5099_v62 }
  0x4f   :  { %558 = vmatpush.msra.mxu0 %v5084_v48  ;;  %647 = vmatpush.msra.mxu2 %v7339_v63 }
  0x50   :  { %399 = vmatpush.msrb.mxu1 %v7340_v55  ;;  %712 = vmatpush.msra.mxu3 %v5022_v31 }
  0x51   :  { %561 = vmatpush.msra.mxu0 %v5099_v62  ;;  %202 = vmatmul.f32.vlgmr.msra.gmra.mxu1 %v5195_v22 }
  0x52   :  { %651 = vmatpush.msra.mxu2 %v7341_v21  ;;  %602 = vmatpush.msra.mxu1 %v5009_v8  ;;  %v7344_v8 = vand.u32 4294901760, %v5116_v24  ;;  %v790_v21 = vld [vmem:[#allocation2 + $0x158] sm:$0xff] }
  0x53   :  { %564 = vmatpush.msra.mxu0 %v5116_v24  ;;  %714 = vmatpush.msra.mxu3 %v5045_v54  ;;  %v7346_v24 = vand.u32 4294901760, %v5135_v36 }
  0x54   :  { %655 = vmatpush.msra.mxu2 %v7342_v56  ;;  %604 = vmatpush.msra.mxu1 %v5022_v31  ;;  %v7345_v31 = vand.u32 4294901760, %v5129_v27 }
  0x55   :  { %442 = vmatmul.f32.vlgmr.msrb.gmra.mxu2 %v441_v42  ;;  %567 = vmatpush.msra.mxu0 %v5129_v27  ;;  %v7348_v27 = vand.u32 4294901760, %v5164_v59  ;;  %v843_v42 = vsel %vm7311_vm2, %v783_v53, 0 }
  0x56   :  { %606 = vmatpush.msra.mxu1 %v5045_v54  ;;  %659 = vmatpush.msra.mxu2 %v7343_v38 }
  0x57   :  { %716 = vmatpush.msra.mxu3 %v5060_v12  ;;  %364 = vmatmul.f32.vlgmr.msrb.gmra.mxu0 %v5195_v22 }
  0x58   :  { %543 = vmatmul.f32.vlgmr.msrb.gmra.mxu3 %v5275_v46  ;;  %570 = vmatpush.msra.mxu0 %v5135_v36 }
  0x59   :  { %608 = vmatpush.msra.mxu1 %v5060_v12  ;;  %663 = vmatpush.msra.mxu2 %v7344_v8 }
  0x5a   :  { %718 = vmatpush.msra.mxu3 %v5073_v26  ;;  %401 = vmatmul.f32.vlgmr.msrb.gmra.mxu1 %v5195_v22 }
  0x5b   :  { %573 = vmatpush.msra.mxu0 %v5147_v45  ;;  %610 = vmatpush.msra.mxu1 %v5073_v26  ;;  %v7347_v26 = vand.u32 4294901760, %v5147_v45 }
  0x5c   :  { %667 = vmatpush.msra.mxu2 %v7345_v31  ;;  %720 = vmatpush.msra.mxu3 %v5086_v51  ;;  %v5412_v31 = vand.u32 4294901760, %v843_v42 }
  0x5d   :  { %576 = vmatpush.msra.mxu0 %v5164_v59  ;;  %612 = vmatpush.msra.mxu1 %v5086_v51 }
  0x5e   :  { %671 = vmatpush.msra.mxu2 %v7346_v24  ;;  %722 = vmatpush.msra.mxu3 %v5101_v28  ;;  %v4743_v24 = vld [vmem:[#allocation2 + $0x108] ss:$0 sm:$0xff] }
  0x5f   :  { %579 = vmatpush.msra.mxu0 %v5180_v41  ;;  %614 = vmatpush.msra.mxu1 %v5101_v28  ;;  %v7349_v28 = vand.u32 4294901760, %v5180_v41 }
  0x60   :  { %675 = vmatpush.msra.mxu2 %v7347_v26  ;;  %724 = vmatpush.msra.mxu3 %v5108_v6 }
  0x61   :  { %582 = vmatpush.msra.mxu0 %v5193_v60  ;;  %616 = vmatpush.msra.mxu1 %v5108_v6 }
  0x62   :  { %679 = vmatpush.msra.mxu2 %v7348_v27  ;;  %726 = vmatpush.msra.mxu3 %v5121_v23  ;;  %v784_v27 = vld [vmem:[#allocation2 + $0x128] sm:$0xff] }
  0x63   :  { %585 = vmatpush.msra.mxu0 %v5208_v61  ;;  %618 = vmatpush.msra.mxu1 %v5121_v23  ;;  %v4742_v23 = vld [vmem:[#allocation2 + $0x100] ss:$0 sm:$0xff] }
  0x64   :  { %683 = vmatpush.msra.mxu2 %v7349_v28  ;;  %728 = vmatpush.msra.mxu3 %v5142_v30 }
  0x65   :  { %588 = vmatpush.msra.mxu0 %v5232_v13  ;;  %620 = vmatpush.msra.mxu1 %v5142_v30 }
  0x66   :  { %687 = vmatpush.msra.mxu2 %v514_v4  ;;  %730 = vmatpush.msra.mxu3 %v5154_v57 }
  0x67   :  { %591 = vmatpush.msra.mxu0 %v5245_v37  ;;  %622 = vmatpush.msra.mxu1 %v5154_v57  ;;  %v4863_v37 = vmov 64.0  }
  0x68   :  { %691 = vmatpush.msra.mxu2 %v520_v29  ;;  %732 = vmatpush.msra.mxu3 %v5166_v32  ;;  %4758 = vrcp.f32 %v4863_v37  ;;  %v794_v37 = vld [vmem:[#allocation2 + $0x178] sm:$0xff] }
  0x69   :  { %594 = vmatpush.msra.mxu0 %v5256_v16  ;;  %624 = vmatpush.msra.mxu1 %v5166_v32 }
  0x6a   :  { %695 = vmatpush.msra.mxu2 %v526_v5  ;;  %734 = vmatpush.msra.mxu3 %v5182_v19 }
  0x6b   :  { %597 = vmatmul.f32.vlgmr.msra.gmra.mxu0 %v5292_v40  ;;  %626 = vmatpush.msra.mxu1 %v5182_v19  ;;  %v840_v40 = vsel %vm7311_vm2, %v782_v35, 0 }
  0x6c   :  { %699 = vmatpush.msra.mxu2 %v532_v18  ;;  %736 = vmatpush.msra.mxu3 %v5205_v34 }
  0x6d   :  { %628 = vmatpush.msra.mxu1 %v5205_v34  ;;  %4739 = vset.pattern.permute.xlu1 %v4864_v10 }
  0x6e   :  { %703 = vmatpush.msra.mxu2 %v538_v14  ;;  %738 = vmatpush.msra.mxu3 %v5221_v2  ;;  %v4759_v5 = vpop.eup %4758 }
  0x6f   :  { %705 = vmatmul.f32.vlgmr.msra.gmra.mxu2 %v5275_v46  ;;  %630 = vmatpush.msra.mxu1 %v5221_v2  ;;  %v753_v16 = vmul.f32 64.0, %v4759_v5  ;;  %vm757_vm1 = vweird.f32 %v4759_v5 }
  0x70   :  { %740 = vmatpush.msra.mxu3 %v5234_v43  ;;  %4740 = vset.pattern.permute.xlu2 %v4864_v10 }
  0x71   :  { %742 = vmatmul.f32.vlgmr.msra.gmra.mxu3 %v5275_v46  ;;  %632 = vmatpush.msra.mxu1 %v5234_v43  ;;  %v754_v0 = vsub.f32 1.0, %v753_v16  ;;  %v797_v46 = vld [vmem:[#allocation2 + $0x190] sm:$0xff] }
  0x72   :  { %636 = vmatmul.f32.vlgmr.msra.gmra.mxu1 %v439_v52  ;;  %835 = vperm.xlu1 %4739, %v797_v46   ;;  %v5408_v52 = vand.u32 4294901760, %v840_v40 }
  0x73   :  { %v755_v17 = vmul.f32 %v4759_v5, %v754_v0  ;;  %4741 = vset.pattern.permute.xlu0 %v4864_v10 }
  0x74   :  { %v881_v55 = vsub.f32 %v840_v40, %v5408_v52 }
  0x75   :  { %v756_v58 = vadd.f32 %v4759_v5, %v755_v17 }
  0x76   :  { %v882_v8 = vand.u32 4294901760, %v881_v55 }
  0x77   :  { %v5401_v9 = vsel %vm757_vm1, %v4759_v5, %v756_v58  ;;  %v793_v5 = vld [vmem:[#allocation2 + $0x170] sm:$0xff] }
  0x78   :  { %7351 = vst [vmem:[#allocation9_spill] sm:$0xff] %v5401_v9 }
  0x7a   :  { %830 = vperm.xlu1 %4739, %v796_v7   ;;  %v788_v7 = vld [vmem:[#allocation2 + $0x148] sm:$0xff] }
  0x7b   :  { %v858_v35 = vsel %vm7311_vm2, %v788_v7, 0 }
  0x82   :  { %810 = vperm.xlu1 %4739, %v792_v11  }
  0x8a   :  { %800 = vperm.xlu1 %4739, %v790_v21  }
  0xc1   :  { %v102_v51 = vpop.f32.mrf.mxu0 }
  0xc2   :  { %v103_v30 = vadd.f32 %v4742_v23, %v102_v51  ;;  %v4744_v23 = vld [vmem:[#allocation2 + $0x110] ss:$0 sm:$0xff]  ;;  %v883_v51 = vsub.f32 %v881_v55, %v882_v8 }
  0xce   :  { %v203_v54 = vpop.f32.mrf.mxu1 }
  0xcf   :  { %v204_v62 = vadd.f32 %v203_v54, %v103_v30  ;;  %v257_v12 = vpop.f32.mrf.mxu2  ;;  %v296_v48 = vpop.f32.mrf.mxu3  ;;  %v889_v30 = vsub.f32 %v843_v42, %v5412_v31 }
  0xd1   :  { %v258_v6 = vadd.f32 %v257_v12, %v204_v62  ;;  %v846_v62 = vsel %vm7311_vm2, %v784_v27, 0 }
  0xd3   :  { %v297_v36 = vadd.f32 %v296_v48, %v258_v6  ;;  %v884_v6 = vand.u32 4294901760, %v883_v51  ;;  %v890_v48 = vand.u32 4294901760, %v889_v30 }
  0xd4   :  { %v365_v57 = vpop.f32.mrf.mxu0 }
  0xd5   :  { %v366_v45 = vadd.f32 %v365_v57, %v297_v36  ;;  %v5416_v36 = vand.u32 4294901760, %v846_v62 }
  0xd7   :  { %v402_v32 = vpop.f32.mrf.mxu1 }
  0xd8   :  { %v403_v59 = vadd.f32 %v402_v32, %v366_v45  ;;  %v443_v22 = vpop.f32.mrf.mxu2  ;;  %v785_v45 = vld [vmem:[#allocation2 + $0x130] sm:$0xff] }
  0xda   :  { %v444_v41 = vadd.f32 %v443_v22, %v403_v59  ;;  %v891_v59 = vsub.f32 %v889_v30, %v890_v48  ;;  %v897_v22 = vsub.f32 %v846_v62, %v5416_v36 }
  0xdb   :  { %v544_v19 = vpop.f32.mrf.mxu3 }
  0xdc   :  { %v545_v60 = vadd.f32 %v544_v19, %v444_v41  ;;  %v795_v41 = vld [vmem:[#allocation2 + $0x180] sm:$0xff] }
  0xdd   :  { %825 = vperm.xlu2 %4740, %v795_v41  }
  0xe5   :  { %820 = vperm.xlu2 %4740, %v794_v37  }
  0xe8   :  { %v598_v61 = vpop.f32.mrf.mxu0 }
  0xe9   :  { %v599_v15 = vadd.f32 %v598_v61, %v545_v60  ;;  %v849_v61 = vsel %vm7311_vm2, %v785_v45, 0 }
  0xef   :  { %v637_v34 = vpop.f32.mrf.mxu1 }
  0xf0   :  { %v638_v4 = vadd.f32 %v637_v34, %v599_v15  ;;  %v892_v15 = vand.u32 4294901760, %v891_v59  ;;  %v898_v34 = vand.u32 4294901760, %v897_v22 }
  0xf2   :  { %v706_v2 = vpop.f32.mrf.mxu2 }
  0xf3   :  { %v707_v29 = vadd.f32 %v706_v2, %v638_v4  ;;  %v5420_v4 = vand.u32 4294901760, %v849_v61 }
  0xf4   :  { %v743_v13 = vpop.f32.mrf.mxu3 }
  0xf5   :  { %v5397_v43 = vadd.f32 %v743_v13, %v707_v29  ;;  %v786_v29 = vld [vmem:[#allocation2 + $0x138] sm:$0xff]  ;;  %v899_v13 = vsub.f32 %v897_v22, %v898_v34 }
  0xf6   :  { %v852_v16 = vsel %vm7311_vm2, %v786_v29, 0 }
  0xf7   :  { %7350 = vst [vmem:[#allocation8_spill] sm:$0xff] %v5397_v43  ;;  %v749_v47 = vsel %vm7312_vm0, %v5397_v43, 0.0  ;;  %v900_v0 = vand.u32 4294901760, %v899_v13  ;;  %v5425_v58 = vand.u32 4294901760, %v852_v16 }
  0xf8   :  { %750 = vadd.xlane.f32.xlu0 %v749_v47  ;;  %v905_v47 = vsub.f32 %v849_v61, %v5420_v4 }
  0xfa   :  { %v906_v17 = vand.u32 4294901760, %v905_v47 }
 0x16b   :  { %v751_v18 = vpop.xlane.xlu0 %750 }
 0x16c   :  { %v759_v20 = vmul.f32 %v5401_v9, %v751_v18  ;;  %v787_v18 = vld [vmem:[#allocation2 + $0x140] sm:$0xff] }
 0x16e   :  { %v760_v25 = vsub.f32 %v5397_v43, %v759_v20  ;;  %v907_v20 = vsub.f32 %v905_v47, %v906_v17 }
 0x170   :  { %v761_v1 = vmul.f32 %v760_v25, %v760_v25  ;;  %v908_v46 = vand.u32 4294901760, %v907_v20 }
 0x172   :  { %v762_v14 = vsel %vm7312_vm0, %v761_v1, 0.0  ;;  %v791_v1 = vld [vmem:[#allocation2 + $0x160] sm:$0xff] }
 0x173   :  { %763 = vadd.xlane.f32.xlu0 %v762_v14  ;;  %v855_v14 = vsel %vm7311_vm2, %v787_v18, 0  ;;  %805 = vperm.xlu2 %4740, %v791_v1  }
 0x187   :  { %815 = vperm.xlu0 %4741, %v793_v5  }
 0x1e6   :  { %v764_v33 = vpop.xlane.xlu0 %763 }
 0x1e7   :  { %v765_v3 = vmul.f32 %v764_v33, %v5401_v9  ;;  %v920_v33 = vand.u32 4294901760, %v855_v14 }
 0x1e9   :  { %v766_v39 = vadd.f32 1e-06, %v765_v3 }
 0x1eb   :  { %4760 = vrsqrt.f32 %v766_v39  ;;  %vm773_vm4 = vweird.f32 %v766_v39 }
 0x1f1   :  { %v4761_v44 = vpop.eup %4760 }
 0x1f2   :  { %v768_v49 = vmul.f32 %v4761_v44, %v766_v39  ;;  %vm774_vm3 = vweird.f32 %v4761_v44  ;;  %v921_v39 = vsub.f32 %v855_v14, %v920_v33 }
 0x1f3   :  { %vm775_vm5 = vmor %vm773_vm4, %vm774_vm3 }
 0x1f4   :  { %v769_v50 = vmul.f32 %v4761_v44, %v768_v49  ;;  %v922_v11 = vand.u32 4294901760, %v921_v39  ;;  %v789_v49 = vld [vmem:[#allocation2 + $0x150] sm:$0xff] }
 0x1f6   :  { %v770_v63 = vmul.f32 0.5, %v769_v50  ;;  %v923_v50 = vsub.f32 %v921_v39, %v922_v11 }
 0x1f8   :  { %v771_v56 = vsub.f32 1.5, %v770_v63  ;;  %v861_v63 = vsel %vm7311_vm2, %v789_v49, 0 }
 0x1f9   :  { %v936_v42 = vand.u32 4294901760, %v861_v63 }
 0x1fa   :  { %v772_v38 = vmul.f32 %v4761_v44, %v771_v56 }
 0x1fc   :  { %v776_v26 = vsel %vm775_vm5, %v4761_v44, %v772_v38  ;;  %v928_v44 = vand.u32 4294901760, %v858_v35  ;;  %v937_v38 = vsub.f32 %v861_v63, %v936_v42  ;;  %v816_v63 = vpop.permute.xlu0 %815 }
 0x1fd   :  { %v777_v28 = vmul.f32 %v776_v26, %v760_v25  ;;  %v913_v25 = vsub.f32 %v852_v16, %v5425_v58 }
 0x1fe   :  { %v929_v53 = vsub.f32 %v858_v35, %v928_v44 }
 0x1ff   :  { %v779_v54 = vmul.f32 %v4743_v24, %v777_v28  ;;  %v914_v10 = vand.u32 4294901760, %v913_v25  ;;  %v938_v24 = vand.u32 4294901760, %v937_v38  ;;  %v1586_v28 = vld [vmem:[#allocation2 + $0x1a0] sm:$0xff] }
 0x200   :  { %v930_v21 = vand.u32 4294901760, %v929_v53  ;;  %1589 = vperm.xlu2 %4740, %v1586_v28  }
 0x201   :  { %v781_v12 = vadd.f32 %v4744_v23, %v779_v54  ;;  %v915_v3 = vsub.f32 %v913_v25, %v914_v10  ;;  %v939_v26 = vsub.f32 %v937_v38, %v938_v24 }
 0x202   :  { %v931_v56 = vsub.f32 %v929_v53, %v930_v21 }
 0x203   :  { %v878_v57 = vand.u32 4294901760, %v781_v12  ;;  %v916_v40 = vand.u32 4294901760, %v915_v3  ;;  %v940_v27 = vand.u32 4294901760, %v939_v26 }
 0x205   :  { %879 = vmatpush.msrb.mxu0 %v878_v57  ;;  %1074 = vmatpush.msrb.mxu3 %v878_v57  ;;  %v961_v32 = vsub.f32 %v781_v12, %v878_v57  ;;  %v5445_v12 = vpop.permute.xlu1 %835 }
 0x206   :  { %885 = vmatmul.f32.vlgmr.msrb.gmra.mxu0 %v884_v6  ;;  %1078 = vmatmul.f32.vlgmr.msrb.gmra.mxu3 %v882_v8  ;;  %v932_v8 = vand.u32 4294901760, %v931_v56 }
 0x207   :  { %1016 = vmatpush.msrb.mxu2 %v961_v32  ;;  %v962_v19 = vand.u32 4294901760, %v961_v32 }
 0x208   :  { %1019 = vmatmul.f32.vlgmr.msrb.gmra.mxu2 %v881_v55  ;;  %v924_v55 = vand.u32 4294901760, %v923_v50 }
 0x209   :  { %1142 = vmatpush.msra.mxu0 %v962_v19  ;;  %v963_v60 = vsub.f32 %v961_v32, %v962_v19  ;;  %v5453_v32 = vpop.permute.xlu2 %825  ;;  %v4865_v19 = vmov 1.4142135  }
 0x20a   :  { %4762 = vrcp.f32 %v4865_v19 }
 0x20b   :  { %v964_v2 = vand.u32 4294901760, %v963_v60 }
 0x20d   :  { %965 = vmatpush.msrb.mxu1 %v964_v2 }
 0x20e   :  { %893 = vmatmul.f32.gmra.mxu0 %v892_v15  ;;  %967 = vmatmul.f32.vlgmr.msrb.gmra.mxu1 %v5408_v52 }
 0x20f   :  { %1192 = vmatpush.msra.mxu1 %v878_v57  ;;  %1084 = vmatmul.f32.gmra.mxu3 %v890_v48 }
 0x210   :  { %1024 = vmatmul.f32.gmra.mxu2 %v889_v30 }
 0x211   :  { %v821_v60 = vpop.permute.xlu2 %820 }
 0x216   :  { %901 = vmatmul.f32.gmra.mxu0 %v900_v0  ;;  %971 = vmatmul.f32.gmra.mxu1 %v5412_v31 }
 0x217   :  { %1090 = vmatmul.f32.gmra.mxu3 %v898_v34  ;;  %v4763_v34 = vpop.eup %4762 }
 0x218   :  { %1029 = vmatmul.f32.gmra.mxu2 %v897_v22  ;;  %vm1239_vm6 = vweird.f32 %v4763_v34 }
 0x21e   :  { %909 = vmatmul.f32.gmra.mxu0 %v908_v46  ;;  %975 = vmatmul.f32.gmra.mxu1 %v5416_v36 }
 0x21f   :  { %1096 = vmatmul.f32.gmra.mxu3 %v906_v17 }
 0x220   :  { %1034 = vmatmul.f32.gmra.mxu2 %v905_v47  ;;  %v1235_v47 = vmul.f32 1.4142135, %v4763_v34 }
 0x222   :  { %v1236_v16 = vsub.f32 1.0, %v1235_v47 }
 0x224   :  { %v1237_v20 = vmul.f32 %v4763_v34, %v1236_v16 }
 0x226   :  { %917 = vmatmul.f32.gmra.mxu0 %v916_v40  ;;  %979 = vmatmul.f32.gmra.mxu1 %v5420_v4  ;;  %v1238_v46 = vadd.f32 %v4763_v34, %v1237_v20 }
 0x227   :  { %1102 = vmatmul.f32.gmra.mxu3 %v914_v10 }
 0x228   :  { %1039 = vmatmul.f32.gmra.mxu2 %v913_v25 }
 0x22e   :  { %925 = vmatmul.f32.gmra.mxu0 %v924_v55  ;;  %983 = vmatmul.f32.gmra.mxu1 %v5425_v58 }
 0x22f   :  { %1108 = vmatmul.f32.gmra.mxu3 %v922_v11  ;;  %v5467_v11 = vsel %vm1239_vm6, %v4763_v34, %v1238_v46 }
 0x230   :  { %1044 = vmatmul.f32.gmra.mxu2 %v921_v39  ;;  %7352 = vst [vmem:[#allocation10_spill] sm:$0xff] %v5467_v11 }
 0x236   :  { %933 = vmatmul.f32.gmra.mxu0 %v932_v8  ;;  %987 = vmatmul.f32.gmra.mxu1 %v920_v33 }
 0x237   :  { %1114 = vmatmul.f32.gmra.mxu3 %v930_v21 }
 0x238   :  { %1049 = vmatmul.f32.gmra.mxu2 %v929_v53 }
 0x23e   :  { %941 = vmatmul.f32.gmra.mxu0 %v940_v27  ;;  %991 = vmatmul.f32.gmra.mxu1 %v928_v44 }
 0x23f   :  { %1120 = vmatmul.f32.gmra.mxu3 %v938_v24 }
 0x240   :  { %1054 = vmatmul.f32.gmra.mxu2 %v937_v38 }
 0x246   :  { %995 = vmatmul.f32.gmra.mxu1 %v936_v42  ;;  %1144 = vmatmul.f32.vlgmr.msra.gmra.mxu0 %v5408_v52 }
 0x24e   :  { %1148 = vmatmul.f32.gmra.mxu0 %v5412_v31  ;;  %1194 = vmatmul.f32.vlgmr.msra.gmra.mxu1 %v5408_v52 }
 0x256   :  { %1152 = vmatmul.f32.gmra.mxu0 %v5416_v36  ;;  %1198 = vmatmul.f32.gmra.mxu1 %v5412_v31 }
 0x25e   :  { %1156 = vmatmul.f32.gmra.mxu0 %v5420_v4  ;;  %1202 = vmatmul.f32.gmra.mxu1 %v5416_v36  ;;  %v5447_v36 = vpop.permute.xlu1 %830 }
 0x266   :  { %1160 = vmatmul.f32.gmra.mxu0 %v5425_v58  ;;  %1206 = vmatmul.f32.gmra.mxu1 %v5420_v4  ;;  %v811_v59 = vpop.permute.xlu1 %810 }
 0x26e   :  { %1164 = vmatmul.f32.gmra.mxu0 %v920_v33  ;;  %1210 = vmatmul.f32.gmra.mxu1 %v5425_v58  ;;  %v801_v15 = vpop.permute.xlu1 %800  ;;  %v806_v58 = vpop.permute.xlu2 %805 }
 0x276   :  { %1168 = vmatmul.f32.gmra.mxu0 %v928_v44  ;;  %1214 = vmatmul.f32.gmra.mxu1 %v920_v33 }
 0x27e   :  { %1172 = vmatmul.f32.gmra.mxu0 %v936_v42  ;;  %1218 = vmatmul.f32.gmra.mxu1 %v928_v44 }
 0x283   :  { %v886_v52 = vpop.f32.mrf.mxu0 }
 0x284   :  { %v887_v29 = vadd.f32 %v886_v52, %v801_v15 }
 0x286   :  { %1222 = vmatmul.f32.gmra.mxu1 %v936_v42 }
 0x289   :  { %v1079_v13 = vpop.f32.mrf.mxu3 }
 0x28b   :  { %v894_v31 = vpop.f32.mrf.mxu0  ;;  %v968_v23 = vpop.f32.mrf.mxu1 }
 0x28c   :  { %v1020_v61 = vpop.f32.mrf.mxu2  ;;  %v969_v37 = vadd.f32 %v968_v23, %v887_v29  ;;  %v895_v25 = vadd.f32 %v894_v31, %v806_v58 }
 0x28e   :  { %v1021_v18 = vadd.f32 %v1020_v61, %v969_v37 }
 0x290   :  { %v1080_v14 = vadd.f32 %v1079_v13, %v1021_v18 }
 0x292   :  { %v1085_v1 = vpop.f32.mrf.mxu3 }
 0x293   :  { %v902_v51 = vpop.f32.mrf.mxu0  ;;  %v972_v30 = vpop.f32.mrf.mxu1 }
 0x294   :  { %v1025_v5 = vpop.f32.mrf.mxu2  ;;  %v973_v10 = vadd.f32 %v972_v30, %v895_v25  ;;  %v903_v35 = vadd.f32 %v902_v51, %v811_v59 }
 0x296   :  { %v1026_v44 = vadd.f32 %v1025_v5, %v973_v10 }
 0x298   :  { %v1086_v55 = vadd.f32 %v1085_v1, %v1026_v44 }
 0x29a   :  { %v1091_v53 = vpop.f32.mrf.mxu3 }
 0x29b   :  { %v910_v54 = vpop.f32.mrf.mxu0  ;;  %v976_v62 = vpop.f32.mrf.mxu1 }
 0x29c   :  { %v1030_v39 = vpop.f32.mrf.mxu2  ;;  %v977_v49 = vadd.f32 %v976_v62, %v903_v35  ;;  %v911_v38 = vadd.f32 %v910_v54, %v816_v63 }
 0x29e   :  { %v1031_v56 = vadd.f32 %v1030_v39, %v977_v49 }
 0x2a0   :  { %v1092_v28 = vadd.f32 %v1091_v53, %v1031_v56 }
 0x2a2   :  { %v1097_v62 = vpop.f32.mrf.mxu3 }
 0x2a3   :  { %v918_v6 = vpop.f32.mrf.mxu0  ;;  %v980_v48 = vpop.f32.mrf.mxu1 }
 0x2a4   :  { %v1035_v26 = vpop.f32.mrf.mxu2  ;;  %v981_v52 = vadd.f32 %v980_v48, %v911_v38  ;;  %v919_v59 = vadd.f32 %v918_v6, %v821_v60 }
 0x2a6   :  { %v1036_v54 = vadd.f32 %v1035_v26, %v981_v52 }
 0x2a8   :  { %v1098_v29 = vadd.f32 %v1097_v62, %v1036_v54 }
 0x2aa   :  { %v1103_v20 = vpop.f32.mrf.mxu3 }
 0x2ab   :  { %v5449_v57 = vpop.f32.mrf.mxu0  ;;  %v5451_v45 = vpop.f32.mrf.mxu1 }
 0x2ac   :  { %v1040_v48 = vpop.f32.mrf.mxu2  ;;  %v985_v13 = vadd.f32 %v5451_v45, %v919_v59  ;;  %v927_v49 = vadd.f32 %v5449_v57, %v5453_v32 }
 0x2ae   :  { %v1041_v16 = vadd.f32 %v1040_v48, %v985_v13 }
 0x2b0   :  { %v1104_v46 = vadd.f32 %v1103_v20, %v1041_v16 }
 0x2b3   :  { %v5455_v22 = vpop.f32.mrf.mxu0  ;;  %v5457_v41 = vpop.f32.mrf.mxu1 }
 0x2b4   :  { %v935_v59 = vadd.f32 %v5455_v22, %v5447_v36 }
 0x2bb   :  { %v5459_v4 = vpop.f32.mrf.mxu0  ;;  %v5461_v2 = vpop.f32.mrf.mxu1 }
 0x2bc   :  { %v993_v36 = vadd.f32 %v5461_v2, %v935_v59 }
 0x2c3   :  { %v5463_v0 = vpop.f32.mrf.mxu1  ;;  %v1145_v17 = vpop.f32.mrf.mxu0 }
 0x2c4   :  { %v1146_v33 = vadd.f32 %v1145_v17, %v1080_v14 }
 0x2cb   :  { %v1149_v7 = vpop.f32.mrf.mxu0  ;;  %v1195_v3 = vpop.f32.mrf.mxu1 }
 0x2cc   :  { %v5465_v40 = vadd.f32 %v1195_v3, %v1146_v33  ;;  %v1150_v8 = vadd.f32 %v1149_v7, %v1086_v55  ;;  %v1045_v7 = vpop.f32.mrf.mxu2 }
 0x2ce   :  { %v5471_v50 = vmul.f32 %v5467_v11, %v5465_v40 }
 0x2d0   :  { %v1249_v24 = vmul.f32 %v5471_v50, %v5471_v50 }
 0x2d2   :  { %v5477_v31 = vmin.f32 %v1249_v24, 16.0  ;;  %v1109_v24 = vpop.f32.mrf.mxu3 }
 0x2d3   :  { %v1199_v21 = vpop.f32.mrf.mxu1  ;;  %v1153_v42 = vpop.f32.mrf.mxu0 }
 0x2d4   :  { %v5475_v27 = vadd.f32 %v1199_v21, %v1150_v8  ;;  %v1154_v23 = vadd.f32 %v1153_v42, %v1092_v28  ;;  %v1262_v19 = vmul.f32 3.8918573e-05, %v5477_v31  ;;  %v1251_v1 = vmul.f32 2.1237322e-06, %v5477_v31 }
 0x2d5   :  { %v989_v8 = vadd.f32 %v5457_v41, %v927_v49 }
 0x2d6   :  { %v5481_v51 = vmul.f32 %v5467_v11, %v5475_v27  ;;  %v1263_v47 = vadd.f32 0.001143296, %v1262_v19  ;;  %v1252_v53 = vadd.f32 0.00028619796, %v1251_v1  ;;  %v1050_v19 = vpop.f32.mrf.mxu2 }
 0x2d7   :  { %v1046_v54 = vadd.f32 %v1045_v7, %v989_v8 }
 0x2d8   :  { %v1289_v34 = vmul.f32 %v5481_v51, %v5481_v51  ;;  %v1264_v17 = vmul.f32 %v1263_v47, %v5477_v31  ;;  %v1253_v26 = vmul.f32 %v1252_v53, %v5477_v31 }
 0x2d9   :  { %v1110_v16 = vadd.f32 %v1109_v24, %v1046_v54 }
 0x2da   :  { %v5493_v5 = vmin.f32 %v1289_v34, 16.0  ;;  %v1265_v10 = vadd.f32 0.014752088, %v1264_v17  ;;  %v1254_v41 = vadd.f32 0.0036580483, %v1253_v26  ;;  %v943_v17 = vadd.f32 %v5459_v4, %v5445_v12 }
 0x2db   :  { %v1203_v30 = vpop.f32.mrf.mxu1  ;;  %v1157_v15 = vpop.f32.mrf.mxu0 }
 0x2dc   :  { %v5484_v61 = vadd.f32 %v1203_v30, %v1154_v23  ;;  %v1158_v6 = vadd.f32 %v1157_v15, %v1098_v29  ;;  %v1302_v45 = vmul.f32 3.8918573e-05, %v5493_v5  ;;  %v1266_v63 = vmul.f32 %v1265_v10, %v5477_v31 }
 0x2dd   :  { %v1291_v42 = vmul.f32 2.1237322e-06, %v5493_v5  ;;  %v1255_v22 = vmul.f32 %v1254_v41, %v5477_v31  ;;  %v997_v2 = vadd.f32 %v5463_v0, %v943_v17 }
 0x2de   :  { %v5491_v37 = vmul.f32 %v5467_v11, %v5484_v61  ;;  %v1303_v39 = vadd.f32 0.001143296, %v1302_v45  ;;  %v1267_v28 = vadd.f32 0.112945676, %v1266_v63  ;;  %v1115_v45 = vpop.f32.mrf.mxu3  ;;  %v1055_v4 = vpop.f32.mrf.mxu2 }
 0x2df   :  { %v1292_v52 = vadd.f32 0.00028619796, %v1291_v42 }
 0x2e0   :  { %v1329_v58 = vmul.f32 %v5491_v37, %v5491_v37  ;;  %v1304_v38 = vmul.f32 %v1303_v39, %v5493_v5  ;;  %v1268_v34 = vmul.f32 %v1267_v28, %v5477_v31  ;;  %v1256_v39 = vadd.f32 0.05243302, %v1255_v22 }
 0x2e1   :  { %v1293_v13 = vmul.f32 %v1292_v52, %v5493_v5 }
 0x2e2   :  { %v5506_v33 = vmin.f32 %v1329_v58, 16.0  ;;  %v1305_v62 = vadd.f32 0.014752088, %v1304_v38  ;;  %v1269_v58 = vadd.f32 0.4994258, %v1268_v34  ;;  %v1257_v28 = vmul.f32 %v1256_v39, %v5477_v31 }
 0x2e3   :  { %v1207_v60 = vpop.f32.mrf.mxu1  ;;  %v1161_v14 = vpop.f32.mrf.mxu0  ;;  %v1294_v1 = vadd.f32 0.0036580483, %v1293_v13 }
 0x2e4   :  { %v5498_v18 = vadd.f32 %v1207_v60, %v1158_v6  ;;  %v1162_v35 = vadd.f32 %v1161_v14, %v1104_v46  ;;  %v1342_v55 = vmul.f32 3.8918573e-05, %v5506_v33  ;;  %v1306_v6 = vmul.f32 %v1305_v62, %v5493_v5 }
 0x2e5   :  { %v1270_v53 = vmul.f32 %v1269_v58, %v5477_v31  ;;  %v1295_v63 = vmul.f32 %v1294_v1, %v5493_v5  ;;  %v1331_v8 = vmul.f32 2.1237322e-06, %v5506_v33 }
 0x2e6   :  { %v5503_v25 = vmul.f32 %v5467_v11, %v5498_v18  ;;  %v1343_v57 = vadd.f32 0.001143296, %v1342_v55  ;;  %v1307_v7 = vadd.f32 0.112945676, %v1306_v6 }
 0x2e7   :  { %v1296_v62 = vadd.f32 0.05243302, %v1295_v63  ;;  %v1332_v41 = vadd.f32 0.00028619796, %v1331_v8 }
 0x2e8   :  { %v1369_v3 = vmul.f32 %v5503_v25, %v5503_v25  ;;  %v1344_v48 = vmul.f32 %v1343_v57, %v5506_v33  ;;  %v1308_v38 = vmul.f32 %v1307_v7, %v5493_v5  ;;  %v1056_v57 = vadd.f32 %v1055_v4, %v997_v2 }
 0x2e9   :  { %v1297_v22 = vmul.f32 %v1296_v62, %v5493_v5 }
 0x2ea   :  { %v5517_v56 = vmin.f32 %v1369_v3, 16.0  ;;  %v1345_v20 = vadd.f32 0.014752088, %v1344_v48  ;;  %v1051_v3 = vadd.f32 %v1050_v19, %v993_v36  ;;  %v1309_v19 = vadd.f32 0.4994258, %v1308_v38  ;;  %v1121_v48 = vpop.f32.mrf.mxu3 }
 0x2eb   :  { %v1211_v44 = vpop.f32.mrf.mxu1  ;;  %v1165_v30 = vpop.f32.mrf.mxu0  ;;  %v1122_v1 = vadd.f32 %v1121_v48, %v1056_v57 }
 0x2ec   :  { %v5514_v21 = vadd.f32 %v1211_v44, %v1162_v35  ;;  %v1382_v23 = vmul.f32 3.8918573e-05, %v5517_v56  ;;  %v1166_v46 = vadd.f32 %v1165_v30, %v1110_v16  ;;  %v1346_v49 = vmul.f32 %v1345_v20, %v5506_v33 }
 0x2ed   :  { %v1116_v26 = vadd.f32 %v1115_v45, %v1051_v3  ;;  %v5557_v30 = vadd.f32 1.0, %v1270_v53  ;;  %v1371_v13 = vmul.f32 2.1237322e-06, %v5517_v56 }
 0x2ee   :  { %v5524_v32 = vmul.f32 %v5467_v11, %v5514_v21  ;;  %v1383_v47 = vadd.f32 0.001143296, %v1382_v23  ;;  %v1347_v52 = vadd.f32 0.112945676, %v1346_v49 }
 0x2ef   :  { %4764 = vrcp.f32 %v5557_v30  ;;  %v1372_v7 = vadd.f32 0.00028619796, %v1371_v13  ;;  %v1283_v8 = vand.u32 2147483648, %v5557_v30  ;;  %vm1277_vm8 = vweird.f32 %v5557_v30 }
 0x2f0   :  { %v1409_v29 = vmul.f32 %v5524_v32, %v5524_v32  ;;  %v1384_v14 = vmul.f32 %v1383_v47, %v5517_v56  ;;  %v1348_v6 = vmul.f32 %v1347_v52, %v5506_v33 }
 0x2f2   :  { %v5535_v60 = vmin.f32 %v1409_v29, 16.0  ;;  %v1385_v55 = vadd.f32 0.014752088, %v1384_v14  ;;  %v1258_v29 = vadd.f32 0.18741608, %v1257_v28  ;;  %v1310_v14 = vmul.f32 %v1309_v19, %v5493_v5 }
 0x2f3   :  { %v1215_v15 = vpop.f32.mrf.mxu1  ;;  %v1169_v35 = vpop.f32.mrf.mxu0  ;;  %v1349_v39 = vadd.f32 0.4994258, %v1348_v6 }
 0x2f4   :  { %v1422_v10 = vmul.f32 3.8918573e-05, %v5535_v60  ;;  %v5543_v44 = vadd.f32 %v1215_v15, %v1166_v46  ;;  %v1386_v59 = vmul.f32 %v1385_v55, %v5517_v56  ;;  %v1170_v54 = vadd.f32 %v1169_v35, %v1116_v26 }
 0x2f5   :  { %v1411_v58 = vmul.f32 2.1237322e-06, %v5535_v60  ;;  %v1333_v46 = vmul.f32 %v1332_v41, %v5506_v33  ;;  %v5584_v55 = vadd.f32 1.0, %v1310_v14  ;;  %v5593_v57 = vpop.eup %4764  ;;  %v1350_v52 = vmul.f32 %v1349_v39, %v5506_v33 }
 0x2f6   :  { %v1423_v12 = vadd.f32 0.001143296, %v1422_v10  ;;  %v5555_v0 = vmul.f32 %v5467_v11, %v5543_v44  ;;  %v1387_v17 = vadd.f32 0.112945676, %v1386_v59  ;;  %v1259_v10 = vmul.f32 %v1258_v29, %v5477_v31 }
 0x2f7   :  { %v1412_v53 = vadd.f32 0.00028619796, %v1411_v58  ;;  %4766 = vrcp.f32 %v5584_v55  ;;  %v1273_v13 = vmul.f32 %v5593_v57, %v5557_v30  ;;  %vm1278_vm7 = vweird.f32 %v5593_v57 }
 0x2f8   :  { %v1424_v24 = vmul.f32 %v1423_v12, %v5535_v60  ;;  %v1449_v34 = vmul.f32 %v5555_v0, %v5555_v0  ;;  %v1298_v12 = vadd.f32 0.18741608, %v1297_v22  ;;  %v1388_v4 = vmul.f32 %v1387_v17, %v5517_v56  ;;  %vm5679_vm10 = vmor %vm1277_vm8, %vm1278_vm7 }
 0x2f9   :  { %v5609_v17 = vor.u32 1.1754944e-38, %v1283_v8  ;;  %vm1317_vm9 = vweird.f32 %v5584_v55 }
 0x2fa   :  { %v1425_v23 = vadd.f32 0.014752088, %v1424_v24  ;;  %v5567_v36 = vmin.f32 %v1449_v34, 16.0  ;;  %v1373_v24 = vmul.f32 %v1372_v7, %v5517_v56  ;;  %v1299_v19 = vmul.f32 %v1298_v12, %v5493_v5 }
 0x2fb   :  { %v1219_v42 = vpop.f32.mrf.mxu1  ;;  %v1173_v20 = vpop.f32.mrf.mxu0  ;;  %v1389_v41 = vadd.f32 0.4994258, %v1388_v4  ;;  %v5611_v5 = vadd.f32 1.0, %v1350_v52 }
 0x2fc   :  { %v1426_v15 = vmul.f32 %v1425_v23, %v5535_v60  ;;  %v5564_v47 = vadd.f32 %v1219_v42, %v1170_v54  ;;  %v1462_v2 = vmul.f32 3.8918573e-05, %v5567_v36  ;;  %v1174_v49 = vadd.f32 %v1173_v20, %v1122_v1 }
 0x2fd   :  { %v1334_v42 = vadd.f32 0.0036580483, %v1333_v46  ;;  %v1451_v26 = vmul.f32 2.1237322e-06, %v5567_v36  ;;  %v1260_v54 = vadd.f32 1.1283791, %v1259_v10  ;;  %v1390_v14 = vmul.f32 %v1389_v41, %v5517_v56 }
 0x2fe   :  { %v1427_v16 = vadd.f32 0.112945676, %v1426_v15  ;;  %v5573_v45 = vmul.f32 %v5467_v11, %v5564_v47  ;;  %v1463_v38 = vadd.f32 0.001143296, %v1462_v2  ;;  %v1413_v15 = vmul.f32 %v1412_v53, %v5535_v60  ;;  %v5624_v53 = vpop.eup %4766 }
 0x2ff   :  { %v1335_v48 = vmul.f32 %v1334_v42, %v5506_v33  ;;  %v1374_v6 = vadd.f32 0.0036580483, %v1373_v24  ;;  %v1300_v1 = vadd.f32 1.1283791, %v1299_v19  ;;  %v5619_v7 = vmul.f32 %v1260_v54, %v5471_v50 }
 0x300   :  { %v1428_v35 = vmul.f32 %v1427_v16, %v5535_v60  ;;  %v1489_v63 = vmul.f32 %v5573_v45, %v5573_v45  ;;  %v1464_v62 = vmul.f32 %v1463_v38, %v5567_v36  ;;  %v1452_v16 = vadd.f32 0.00028619796, %v1451_v26 }
 0x301   :  { %v1414_v46 = vadd.f32 0.0036580483, %v1413_v15  ;;  %v1274_v2 = vsub.f32 1.0, %v1273_v13  ;;  %4768 = vrcp.f32 %v5611_v5  ;;  %v5632_v50 = vadd.f32 1.0, %v1390_v14 }
 0x302   :  { %v5591_v28 = vmin.f32 %v1489_v63, 16.0  ;;  %v1429_v23 = vadd.f32 0.4994258, %v1428_v35  ;;  %v1465_v29 = vadd.f32 0.014752088, %v1464_v62  ;;  %v1453_v12 = vmul.f32 %v1452_v16, %v5567_v36 }
 0x303   :  { %v1223_v3 = vpop.f32.mrf.mxu1  ;;  %v1415_v8 = vmul.f32 %v1414_v46, %v5535_v60  ;;  %v5638_v26 = vmul.f32 %v1300_v1, %v5481_v51  ;;  %v1275_v54 = vmul.f32 %v5593_v57, %v1274_v2  ;;  %v1313_v19 = vmul.f32 %v5624_v53, %v5584_v55 }
 0x304   :  { %v5586_v31 = vadd.f32 %v1223_v3, %v1174_v49  ;;  %v1491_v22 = vmul.f32 2.1237322e-06, %v5591_v28  ;;  %v1430_v58 = vmul.f32 %v1429_v23, %v5535_v60  ;;  %v1466_v10 = vmul.f32 %v1465_v29, %v5567_v36 }
 0x305   :  { %v1336_v3 = vadd.f32 0.05243302, %v1335_v48  ;;  %v1502_v35 = vmul.f32 3.8918573e-05, %v5591_v28  ;;  %v1375_v49 = vmul.f32 %v1374_v6, %v5517_v56  ;;  %v1454_v15 = vadd.f32 0.0036580483, %v1453_v12 }
 0x306   :  { %v5599_v59 = vmul.f32 %v5467_v11, %v5586_v31  ;;  %v1492_v39 = vadd.f32 0.00028619796, %v1491_v22  ;;  %v1467_v4 = vadd.f32 0.112945676, %v1466_v10  ;;  %v5627_v63 = vadd.f32 1.0, %v1430_v58 }
 0x307   :  { %v1503_v42 = vadd.f32 0.001143296, %v1502_v35  ;;  %v1337_v52 = vmul.f32 %v1336_v3, %v5506_v33  ;;  %v1376_v41 = vadd.f32 0.05243302, %v1375_v49  ;;  %v1323_v13 = vand.u32 2147483648, %v5584_v55  ;;  %v5651_v22 = vpop.eup %4768 }
 0x308   :  { %v1529_v20 = vmul.f32 %v5599_v59, %v5599_v59  ;;  %v1468_v24 = vmul.f32 %v1467_v4, %v5567_v36  ;;  %v1493_v23 = vmul.f32 %v1492_v39, %v5591_v28  ;;  %4770 = vrcp.f32 %v5627_v63 }
 0x309   :  { %v1504_v62 = vmul.f32 %v1503_v42, %v5591_v28  ;;  %4772 = vrcp.f32 %v5632_v50  ;;  %v1416_v6 = vadd.f32 0.05243302, %v1415_v8  ;;  %v1338_v58 = vadd.f32 0.18741608, %v1337_v52 }
 0x30a   :  { %v5629_v38 = vmin.f32 %v1529_v20, 16.0  ;;  %v1469_v48 = vadd.f32 0.4994258, %v1468_v24  ;;  %v1494_v1 = vadd.f32 0.0036580483, %v1493_v23  ;;  %v5656_v46 = vadd.f32 %v5593_v57, %v1275_v54 }
 0x30b   :  { %v1505_v29 = vadd.f32 0.014752088, %v1504_v62  ;;  %v1314_v10 = vsub.f32 1.0, %v1313_v19  ;;  %v1377_v3 = vmul.f32 %v1376_v41, %v5517_v56  ;;  %v1455_v35 = vmul.f32 %v1454_v15, %v5567_v36 }
 0x30c   :  { %v1531_v51 = vmul.f32 2.1237322e-06, %v5629_v38  ;;  %v1542_v16 = vmul.f32 3.8918573e-05, %v5629_v38  ;;  %v1470_v20 = vmul.f32 %v1469_v48, %v5567_v36  ;;  %v1353_v42 = vmul.f32 %v5651_v22, %v5611_v5 }
 0x30d   :  { %v1506_v14 = vmul.f32 %v1505_v29, %v5591_v28  ;;  %v1417_v8 = vmul.f32 %v1416_v6, %v5535_v60  ;;  %v1339_v52 = vmul.f32 %v1338_v58, %v5506_v33  ;;  %v1495_v23 = vmul.f32 %v1494_v1, %v5591_v28 }
 0x30e   :  { %v1543_v39 = vadd.f32 0.001143296, %v1542_v16  ;;  %v5660_v2 = vadd.f32 1.0, %v1470_v20  ;;  %v1532_v12 = vadd.f32 0.00028619796, %v1531_v51  ;;  %v5667_v24 = vpop.eup %4770  ;;  %v1315_v41 = vmul.f32 %v5624_v53, %v1314_v10 }
 0x30f   :  { %v1507_v49 = vadd.f32 0.112945676, %v1506_v14  ;;  %v5673_v54 = vpop.eup %4772  ;;  %v5684_v15 = vor.u32 1.1754944e-38, %v1323_v13  ;;  %v1378_v33 = vadd.f32 0.18741608, %v1377_v3  ;;  %vm1318_vm11 = vweird.f32 %v5624_v53 }
 0x310   :  { %4774 = vrcp.f32 %v5660_v2  ;;  %v1544_v62 = vmul.f32 %v1543_v39, %v5629_v38  ;;  %v1456_v51 = vadd.f32 0.05243302, %v1455_v35  ;;  %v1533_v6 = vmul.f32 %v1532_v12, %v5629_v38  ;;  %vm5718_vm12 = vmor %vm1317_vm9, %vm1318_vm11 }
 0x311   :  { %v1508_v48 = vmul.f32 %v1507_v49, %v5591_v28  ;;  %v1354_v16 = vsub.f32 1.0, %v1353_v42  ;;  %v1418_v58 = vadd.f32 0.18741608, %v1417_v8  ;;  %v1433_v20 = vmul.f32 %v5667_v24, %v5627_v63 }
 0x312   :  { %v5695_v1 = vadd.f32 1.1283791, %v1339_v52  ;;  %v1393_v14 = vmul.f32 %v5673_v54, %v5632_v50  ;;  %v1496_v10 = vadd.f32 0.05243302, %v1495_v23  ;;  %v1545_v3 = vadd.f32 0.014752088, %v1544_v62 }
 0x313   :  { %v1509_v13 = vadd.f32 0.4994258, %v1508_v48  ;;  %v5700_v39 = vadd.f32 %v5624_v53, %v1315_v41  ;;  %v1363_v35 = vand.u32 2147483648, %v5611_v5  ;;  %v1379_v49 = vmul.f32 %v1378_v33, %v5517_v56 }
 0x314   :  { %v1361_v8 = vand.u32 2147483647, %v5611_v5  ;;  %v1457_v52 = vmul.f32 %v1456_v51, %v5567_v36  ;;  %v1534_v48 = vadd.f32 0.0036580483, %v1533_v6  ;;  %v1546_v4 = vmul.f32 %v1545_v3, %v5629_v38 }
 0x315   :  { %v1510_v12 = vmul.f32 %v1509_v13, %v5591_v28  ;;  %v1355_v23 = vmul.f32 %v5651_v22, %v1354_v16  ;;  %v1419_v62 = vmul.f32 %v1418_v58, %v5535_v60  ;;  %v1434_v41 = vsub.f32 1.0, %v1433_v20 }
 0x316   :  { %v5705_v42 = vpop.eup %4774  ;;  %v1394_v33 = vsub.f32 1.0, %v1393_v14  ;;  %v1497_v51 = vmul.f32 %v1496_v10, %v5591_v28  ;;  %v1547_v16 = vadd.f32 0.112945676, %v1546_v4  ;;  %v5729_v58 = vor.u32 1.1754944e-38, %v1363_v35 }
 0x317   :  { %v1473_v29 = vmul.f32 %v5705_v42, %v5660_v2  ;;  %v5723_v6 = vadd.f32 1.0, %v1510_v12  ;;  %v5731_v20 = vadd.f32 1.1283791, %v1379_v49  ;;  %vm1397_vm13 = vweird.f32 %v5632_v50 }
 0x318   :  { %v1401_v3 = vand.u32 2147483647, %v5632_v50  ;;  %v1458_v14 = vadd.f32 0.18741608, %v1457_v52  ;;  %v1535_v10 = vmul.f32 %v1534_v48, %v5629_v38  ;;  %vm1358_vm14 = vweird.f32 %v5651_v22 }
 0x319   :  { %v1474_v13 = vsub.f32 1.0, %v1473_v29  ;;  %4776 = vrcp.f32 %v5723_v6  ;;  %v1403_v4 = vand.u32 2147483648, %v5632_v50  ;;  %v1435_v12 = vmul.f32 %v5667_v24, %v1434_v41 }
 0x31a   :  { %v1548_v49 = vmul.f32 %v1547_v16, %v5629_v38  ;;  %v5743_v29 = vadd.f32 %v5651_v22, %v1355_v23  ;;  %v1395_v60 = vmul.f32 %v5673_v54, %v1394_v33  ;;  %v1420_v52 = vadd.f32 1.1283791, %v1419_v62 }
 0x31b   :  { %v1475_v35 = vmul.f32 %v5705_v42, %v1474_v13  ;;  %v1498_v34 = vadd.f32 0.18741608, %v1497_v51  ;;  %vm1357_vm15 = vweird.f32 %v5611_v5  ;;  %vm1398_vm1 = vweird.f32 %v5673_v54 }
 0x31c   :  { %v1441_v48 = vand.u32 2147483647, %v5627_v63  ;;  %v1443_v11 = vand.u32 2147483648, %v5627_v63  ;;  %v1549_v41 = vadd.f32 0.4994258, %v1548_v49  ;;  %v1459_v13 = vmul.f32 %v1458_v14, %v5567_v36 }
 0x31d   :  { %v1476_v16 = vadd.f32 %v5705_v42, %v1475_v35  ;;  %vm1478_vm3 = vweird.f32 %v5705_v42  ;;  %v1536_v23 = vadd.f32 0.05243302, %v1535_v10  ;;  %vm5753_vm4 = vcmp.eq.f32.partialorder %v1401_v3, 8.507059e+37 }
 0x31e   :  { %v1436_v62 = vadd.f32 %v5667_v24, %v1435_v12  ;;  %vm1438_vm5 = vweird.f32 %v5667_v24  ;;  %v1483_v51 = vand.u32 2147483648, %v5660_v2  ;;  %v1550_v9 = vmul.f32 %v1549_v41, %v5629_v38 }
 0x31f   :  { %v4777_v49 = vpop.eup %4776  ;;  %v1396_v36 = vadd.f32 %v5673_v54, %v1395_v60  ;;  %vm1477_vm6 = vweird.f32 %v5660_v2  ;;  %v1481_v14 = vand.u32 2147483647, %v5660_v2  ;;  %v1499_v3 = vmul.f32 %v1498_v34, %v5591_v28 }
 0x320   :  { %vm5765_vm7 = vcmp.eq.f32.partialorder %v1361_v8, 8.507059e+37  ;;  %vm1437_vm8 = vweird.f32 %v5627_v63  ;;  %vm5770_vm9 = vcmp.eq.f32.partialorder %v1441_v48, 8.507059e+37  ;;  %vm5776_vm11 = vmor %vm1477_vm6, %vm1478_vm3  ;;  %v1513_v2 = vmul.f32 %v4777_v49, %v5723_v6 }
 0x321   :  { %v5781_v35 = vadd.f32 1.0, %v1550_v9  ;;  %v7365_v28 = vand.u32 2147483647, %v5557_v30  ;;  %vm5791_vm0 = vmor %vm1437_vm8, %vm1438_vm5  ;;  %v1444_v8 = vor.u32 1.1754944e-38, %v1443_v11  ;;  %v1460_v48 = vadd.f32 1.1283791, %v1459_v13 }
 0x322   :  { %v1480_v41 = vsel %vm5776_vm11, %v5705_v42, %v1476_v16  ;;  %v1537_v9 = vmul.f32 %v1536_v23, %v5629_v38  ;;  %vm5803_vm3 = vmor %vm1397_vm13, %vm1398_vm1  ;;  %v1484_v11 = vor.u32 1.1754944e-38, %v1483_v51  ;;  %v1514_v13 = vsub.f32 1.0, %v1513_v2 }
 0x323   :  { %vm5785_vm2 = vcmp.eq.f32.partialorder %v7365_v28, 8.507059e+37  ;;  %v1440_v28 = vsel %vm5791_vm0, %v5667_v24, %v1436_v62  ;;  %4778 = vrcp.f32 %v5781_v35  ;;  %v1400_v42 = vsel %vm5803_vm3, %v5673_v54, %v1396_v36  ;;  %vm5820_vm0 = vmor %vm1357_vm15, %vm1358_vm14 }
 0x324   :  { %vm1482_vm5 = vcmp.eq.f32.partialorder %v1481_v14, 8.507059e+37  ;;  %v1500_v16 = vadd.f32 1.1283791, %v1499_v3  ;;  %v1523_v50 = vand.u32 2147483648, %v5723_v6  ;;  %v1515_v60 = vmul.f32 %v4777_v49, %v1514_v13 }
 0x325   :  { %v1485_v23 = vsel %vm1482_vm5, %v1484_v11, %v1480_v41  ;;  %vm1518_vm13 = vweird.f32 %v4777_v49  ;;  %v1521_v43 = vand.u32 2147483647, %v5723_v6  ;;  %v1404_v62 = vor.u32 1.1754944e-38, %v1403_v4 }
 0x326   :  { %v1445_v54 = vsel %vm5770_vm9, %v1444_v8, %v1440_v28  ;;  %v1461_v51 = vmul.f32 %v1460_v48, %v5555_v0  ;;  %v1538_v36 = vadd.f32 0.18741608, %v1537_v9  ;;  %v1360_v14 = vsel %vm5820_vm0, %v5651_v22, %v5743_v29 }
 0x327   :  { %v1421_v3 = vmul.f32 %v1420_v52, %v5524_v32  ;;  %v1516_v2 = vadd.f32 %v4777_v49, %v1515_v60  ;;  %vm1517_vm14 = vweird.f32 %v5723_v6  ;;  %v1381_v5 = vmul.f32 %v5731_v20, %v5503_v25 }
 0x328   :  { %v1405_v4 = vsel %vm5753_vm4, %v1404_v62, %v1400_v42  ;;  %v1486_v12 = vmul.f32 %v1485_v23, %v1461_v51  ;;  %vm1519_vm15 = vmor %vm1517_vm14, %vm1518_vm13  ;;  %v1524_v0 = vor.u32 1.1754944e-38, %v1523_v50  ;;  %v1501_v48 = vmul.f32 %v1500_v16, %v5573_v45 }
 0x329   :  { %v4779_v63 = vpop.eup %4778  ;;  %v1446_v8 = vmul.f32 %v1445_v54, %v1421_v3  ;;  %v1520_v41 = vsel %vm1519_vm15, %v4777_v49, %v1516_v2  ;;  %vm1522_vm1 = vcmp.eq.f32.partialorder %v1521_v43, 8.507059e+37  ;;  %v1365_v32 = vsel %vm5765_vm7, %v5729_v58, %v1360_v14 }
 0x32a   :  { %v1525_v22 = vsel %vm1522_vm1, %v1524_v0, %v1520_v41  ;;  %v1539_v6 = vmul.f32 %v1538_v36, %v5629_v38  ;;  %v1553_v25 = vmul.f32 %v4779_v63, %v5781_v35  ;;  %v7374_v20 = vsel %vm5679_vm10, %v5593_v57, %v5656_v46 }
 0x32b   :  { %v1285_v45 = vsel %vm5785_vm2, %v5609_v17, %v7374_v20  ;;  %v7375_v43 = vand.u32 2147483647, %v5584_v55  ;;  %v1341_v58 = vmul.f32 %v5695_v1, %v5491_v37  ;;  %v1526_v29 = vmul.f32 %v1525_v22, %v1501_v48 }
 0x32c   :  { %v7376_v38 = vsel %vm5718_vm12, %v5624_v53, %v5700_v39  ;;  %v1406_v52 = vmul.f32 %v1405_v4, %v1381_v5  ;;  %v4719_v57 = vclamps-f32 %v1486_v12, 1.0  ;;  %v1554_v46 = vsub.f32 1.0, %v1553_v25 }
 0x32d   :  { %vm1322_vm4 = vcmp.eq.f32.partialorder %v7375_v43, 8.507059e+37  ;;  %v1366_v33 = vmul.f32 %v1365_v32, %v1341_v58  ;;  %v4718_v49 = vclamps-f32 %v1446_v8, 1.0  ;;  %v4720_v17 = vclamps-f32 %v1526_v29, 1.0 }
 0x32e   :  { %v1325_v19 = vsel %vm1322_vm4, %v5684_v15, %v7376_v38  ;;  %v1563_v55 = vand.u32 2147483648, %v5781_v35  ;;  %v1540_v10 = vadd.f32 1.1283791, %v1539_v6  ;;  %v1555_v34 = vmul.f32 %v4779_v63, %v1554_v46 }
 0x32f   :  { %vm1558_vm2 = vweird.f32 %v4779_v63  ;;  %v1561_v37 = vand.u32 2147483647, %v5781_v35  ;;  %v1286_v1 = vmul.f32 %v1285_v45, %v5619_v7  ;;  %v1326_v56 = vmul.f32 %v1325_v19, %v5638_v26 }
 0x330   :  { %v1232_v53 = vmul.f32 0.5, %v5564_v47  ;;  %v1575_v15 = vadd.f32 1.0, %v4720_v17  ;;  %v4717_v39 = vclamps-f32 %v1406_v52, 1.0  ;;  %v1574_v9 = vadd.f32 1.0, %v4719_v57  ;;  %v1585_v47 = vld [vmem:[#allocation2 + $0x198] sm:$0xff] }
 0x331   :  { %v1556_v30 = vadd.f32 %v4779_v63, %v1555_v34  ;;  %vm1557_vm10 = vweird.f32 %v5781_v35  ;;  %v4716_v28 = vclamps-f32 %v1366_v33, 1.0  ;;  %v1573_v11 = vadd.f32 1.0, %v4718_v49 }
 0x332   :  { %v1231_v13 = vmul.f32 0.5, %v5543_v44  ;;  %vm1559_vm12 = vmor %vm1557_vm10, %vm1558_vm2  ;;  %v1564_v42 = vor.u32 1.1754944e-38, %v1563_v55  ;;  %v1583_v16 = vmul.f32 %v1575_v15, %v1232_v53  ;;  %v1541_v50 = vmul.f32 %v1540_v10, %v5599_v59 }
 0x333   :  { %v1560_v7 = vsel %vm1559_vm12, %v4779_v63, %v1556_v30  ;;  %vm1562_vm6 = vcmp.eq.f32.partialorder %v1561_v37, 8.507059e+37  ;;  %v4715_v26 = vclamps-f32 %v1326_v56, 1.0  ;;  %v1572_v60 = vadd.f32 1.0, %v4717_v39 }
 0x334   :  { %v1565_v23 = vsel %vm1562_vm6, %v1564_v42, %v1560_v7  ;;  %v1230_v24 = vmul.f32 0.5, %v5514_v21  ;;  %v1582_v62 = vmul.f32 %v1574_v9, %v1231_v13  ;;  %v4714_v35 = vclamps-f32 %v1286_v1, 1.0 }
 0x335   :  { %v1566_v54 = vmul.f32 %v1565_v23, %v1541_v50  ;;  %v1571_v51 = vadd.f32 1.0, %v4716_v28  ;;  %v1229_v36 = vmul.f32 0.5, %v5498_v18  ;;  %v5871_v14 = vand.u32 4294901760, %v1583_v16 }
 0x336   :  { %v1581_v44 = vmul.f32 %v1573_v11, %v1230_v24  ;;  %vm7377_vm7 = vcmask 523264   ;;  %v1570_v2 = vadd.f32 1.0, %v4715_v26  ;;  %v1228_v5 = vmul.f32 0.5, %v5484_v61 }
 0x337   :  { %v4721_v3 = vclamps-f32 %v1566_v54, 1.0  ;;  %v1593_v59 = vsel %vm7377_vm7, %v1585_v47, 0  ;;  %v1580_v4 = vmul.f32 %v1572_v60, %v1229_v36  ;;  %v5875_v12 = vand.u32 4294901760, %v1582_v62  ;;  %v1590_v36 = vpop.permute.xlu2 %1589  ;;  %vm7379_vm8 = vmmov %vm7377_vm7 }
 0x338   :  { %v1233_v21 = vmul.f32 0.5, %v5586_v31  ;;  %v1227_v63 = vmul.f32 0.5, %v5475_v27  ;;  %v1579_v8 = vmul.f32 %v1571_v51, %v1228_v5  ;;  %v5879_v48 = vand.u32 4294901760, %v1593_v59  ;;  %vm7381_vm9 = vmmov %vm7377_vm7 }
 0x339   :  { %v1576_v0 = vadd.f32 1.0, %v4721_v3  ;;  %v1569_v18 = vadd.f32 1.0, %v4714_v35  ;;  %v5881_v41 = vand.u32 4294901760, %v1581_v44  ;;  %v5884_v32 = vsub.f32 %v1583_v16, %v5871_v14  ;;  %vm7382_vm13 = vmmov %vm7377_vm7 }
 0x33a   :  { %v1226_v61 = vmul.f32 0.5, %v5465_v40  ;;  %v1578_v6 = vmul.f32 %v1570_v2, %v1227_v63  ;;  %v5887_v25 = vand.u32 4294901760, %v1580_v4  ;;  %v5890_v31 = vsub.f32 %v1582_v62, %v5875_v12  ;;  %vm7384_vm4 = vmmov %vm7377_vm7 }
 0x33b   :  { %v1584_v22 = vmul.f32 %v1576_v0, %v1233_v21  ;;  %v5894_v27 = vand.u32 4294901760, %v1579_v8  ;;  %v5897_v45 = vsub.f32 %v1593_v59, %v5879_v48  ;;  %v5900_v58 = vsub.f32 %v1581_v44, %v5881_v41  ;;  %v7378_v0 = vld [vmem:[#allocation8_spill] sm:$0xff]  ;;  %vm7385_vm2 = vmmov %vm7384_vm4 }
 0x33c   :  { %v1577_v43 = vmul.f32 %v1569_v18, %v1226_v61  ;;  %v1644_v40 = vand.u32 4294901760, %v5884_v32  ;;  %v5908_v38 = vsub.f32 %v1580_v4, %v5887_v25  ;;  %v5912_v52 = vand.u32 4294901760, %v1578_v6  ;;  %v2555_v18 = vld [vmem:[#allocation2 + $0x2f8] sm:$0xff] }
 0x33d   :  { %v5892_v20 = vand.u32 4294901760, %v1584_v22  ;;  %v1650_v57 = vand.u32 4294901760, %v5890_v31  ;;  %v5916_v46 = vsub.f32 %v1579_v8, %v5894_v27  ;;  %v1621_v33 = vand.u32 4294901760, %v5897_v45  ;;  %v7380_v61 = vld [vmem:[#allocation9_spill] sm:$0xff] }
 0x33e   :  { %v1645_v17 = vsub.f32 %v5884_v32, %v1644_v40  ;;  %v5924_v55 = vand.u32 4294901760, %v1577_v43  ;;  %v1656_v10 = vand.u32 4294901760, %v5900_v58  ;;  %v1662_v1 = vand.u32 4294901760, %v5908_v38 }
 0x33f   :  { %v5903_v29 = vsub.f32 %v1584_v22, %v5892_v20  ;;  %1604 = vmatpush.msra.mxu2 %v5892_v20  ;;  %v1651_v37 = vsub.f32 %v5890_v31, %v1650_v57  ;;  %v1673_v56 = vsub.f32 %v1578_v6, %v5912_v52  ;;  %v1622_v53 = vsub.f32 %v5897_v45, %v1621_v33 }
 0x340   :  { %v1646_v15 = vand.u32 4294901760, %v1645_v17  ;;  %v1657_v39 = vsub.f32 %v5900_v58, %v1656_v10  ;;  %v1668_v9 = vand.u32 4294901760, %v5916_v46  ;;  %v1679_v30 = vsub.f32 %v1577_v43, %v5924_v55  ;;  %v1867_v43 = vld [vmem:[#allocation2 + $0x1e8] sm:$0xff]  ;;  %v1862_v17 = vld [vmem:[#allocation2 + $0x1c0] sm:$0xff] }
 0x341   :  { %1606 = vmatpush.msra.mxu2 %v5871_v14  ;;  %v1638_v19 = vand.u32 4294901760, %v5903_v29  ;;  %v1652_v28 = vand.u32 4294901760, %v1651_v37  ;;  %v1663_v11 = vsub.f32 %v5908_v38, %v1662_v1  ;;  %v1674_v13 = vand.u32 4294901760, %v1673_v56 }
 0x342   :  { %v1623_v42 = vand.u32 4294901760, %v1622_v53  ;;  %v1658_v16 = vand.u32 4294901760, %v1657_v39  ;;  %v1669_v50 = vsub.f32 %v5916_v46, %v1668_v9  ;;  %v1680_v7 = vand.u32 4294901760, %v1679_v30 }
 0x343   :  { %1608 = vmatpush.msra.mxu2 %v5875_v12  ;;  %v1639_v49 = vsub.f32 %v5903_v29, %v1638_v19  ;;  %v1664_v26 = vand.u32 4294901760, %v1663_v11  ;;  %v1675_v23 = vsub.f32 %v1673_v56, %v1674_v13  ;;  %v6008_v37 = vand.u32 4294901760, %v1862_v17 }
 0x344   :  { %v1670_v47 = vand.u32 4294901760, %v1669_v50  ;;  %v1681_v60 = vsub.f32 %v1679_v30, %v1680_v7  ;;  %vm7386_vm10 = vcmask 64512  }
 0x345   :  { %1610 = vmatpush.msra.mxu2 %v5881_v41  ;;  %v1640_v34 = vand.u32 4294901760, %v1639_v49  ;;  %v1676_v24 = vand.u32 4294901760, %v1675_v23  ;;  %v1863_v49 = vld [vmem:[#allocation2 + $0x1c8] sm:$0xff]  ;;  %vm7387_vm12 = vmmov %vm7386_vm10 }
 0x346   :  { %v1682_v62 = vand.u32 4294901760, %v1681_v60 }
 0x347   :  { %1612 = vmatpush.msra.mxu2 %v5887_v25  ;;  %1641 = vmatpush.msra.mxu3 %v1640_v34  ;;  %v6006_v34 = vand.u32 4294901760, %v1863_v49 }
 0x349   :  { %1614 = vmatpush.msra.mxu2 %v5894_v27  ;;  %1647 = vmatpush.msra.mxu3 %v1646_v15 }
 0x34b   :  { %1616 = vmatpush.msra.mxu2 %v5912_v52  ;;  %1653 = vmatpush.msra.mxu3 %v1652_v28  ;;  %v6030_v28 = vsub.f32 %v1862_v17, %v6008_v37 }
 0x34d   :  { %1618 = vmatpush.msra.mxu2 %v5924_v55  ;;  %1659 = vmatpush.msra.mxu3 %v1658_v16 }
 0x34e   :  { %1624 = vmatmul.f32.vlgmr.msra.gmra.mxu2 %v1623_v42 }
 0x34f   :  { %1699 = vmatpush.msrb.mxu2 %v5903_v29  ;;  %1665 = vmatpush.msra.mxu3 %v1664_v26  ;;  %v5990_v29 = vand.u32 4294901760, %v1867_v43 }
 0x351   :  { %1702 = vmatpush.msrb.mxu2 %v5884_v32  ;;  %1671 = vmatpush.msra.mxu3 %v1670_v47  ;;  %v2551_v32 = vld [vmem:[#allocation2 + $0x2d8] sm:$0xff] }
 0x353   :  { %1705 = vmatpush.msrb.mxu2 %v5890_v31  ;;  %1677 = vmatpush.msra.mxu3 %v1676_v24 }
 0x355   :  { %1708 = vmatpush.msrb.mxu2 %v5900_v58  ;;  %1683 = vmatpush.msra.mxu3 %v1682_v62  ;;  %v1953_v62 = vand.u32 4294901760, %v6030_v28 }
 0x356   :  { %1685 = vmatmul.f32.vlgmr.msra.gmra.mxu3 %v5879_v48 }
 0x357   :  { %1711 = vmatpush.msrb.mxu2 %v5908_v38  ;;  %1736 = vmatpush.msrb.mxu3 %v5892_v20  ;;  %v1865_v38 = vld [vmem:[#allocation2 + $0x1d8] sm:$0xff] }
 0x359   :  { %1714 = vmatpush.msrb.mxu2 %v5916_v46  ;;  %1738 = vmatpush.msrb.mxu3 %v5871_v14 }
 0x35b   :  { %1717 = vmatpush.msrb.mxu2 %v1673_v56  ;;  %1740 = vmatpush.msrb.mxu3 %v5875_v12 }
 0x35d   :  { %1720 = vmatpush.msrb.mxu2 %v1679_v30  ;;  %1742 = vmatpush.msrb.mxu3 %v5881_v41  ;;  %v6027_v30 = vsub.f32 %v1863_v49, %v6006_v34  ;;  %v2168_v49 = vld [vmem:[#allocation2 + $0x268] sm:$0xff] }
 0x35e   :  { %1723 = vmatmul.f32.vlgmr.msrb.gmra.mxu2 %v5897_v45 }
 0x35f   :  { %1769 = vmatpush.msra.mxu2 %v1638_v19  ;;  %1744 = vmatpush.msrb.mxu3 %v5887_v25  ;;  %v1864_v19 = vld [vmem:[#allocation2 + $0x1d0] sm:$0xff]  ;;  %v1947_v26 = vand.u32 4294901760, %v6027_v30 }
 0x361   :  { %1773 = vmatpush.msra.mxu2 %v1644_v40  ;;  %1746 = vmatpush.msrb.mxu3 %v5894_v27  ;;  %v1866_v40 = vld [vmem:[#allocation2 + $0x1e0] sm:$0xff] }
 0x362   :  { %v5998_v46 = vand.u32 4294901760, %v1866_v40 }
 0x363   :  { %1777 = vmatpush.msra.mxu2 %v1650_v57  ;;  %1748 = vmatpush.msrb.mxu3 %v5912_v52  ;;  %v5996_v57 = vsub.f32 %v1867_v43, %v5990_v29 }
 0x364   :  { %v1928_v15 = vsub.f32 %v1866_v40, %v5998_v46 }
 0x365   :  { %1781 = vmatpush.msra.mxu2 %v1656_v10  ;;  %1750 = vmatpush.msrb.mxu3 %v5924_v55  ;;  %v6004_v10 = vand.u32 4294901760, %v1864_v19  ;;  %v1923_v53 = vand.u32 4294901760, %v5996_v57 }
 0x366   :  { %1754 = vmatmul.f32.vlgmr.msrb.gmra.mxu3 %v1621_v33  ;;  %v6000_v33 = vand.u32 4294901760, %v1865_v38  ;;  %v1929_v16 = vand.u32 4294901760, %v1928_v15 }
 0x367   :  { %1785 = vmatpush.msra.mxu2 %v1662_v1  ;;  %1812 = vmatpush.msra.mxu3 %v5892_v20  ;;  %v1924_v42 = vsub.f32 %v5996_v57, %v1923_v53 }
 0x368   :  { %v6019_v39 = vsub.f32 %v1865_v38, %v6000_v33  ;;  %v1930_v60 = vsub.f32 %v1928_v15, %v1929_v16 }
 0x369   :  { %1789 = vmatpush.msra.mxu2 %v1668_v9  ;;  %1814 = vmatpush.msra.mxu3 %v5871_v14  ;;  %v6024_v9 = vsub.f32 %v1864_v19, %v6004_v10  ;;  %v1925_v47 = vand.u32 4294901760, %v1924_v42  ;;  %v2170_v19 = vld [vmem:[#allocation2 + $0x278] sm:$0xff] }
 0x36a   :  { %v1935_v50 = vand.u32 4294901760, %v6019_v39 }
 0x36b   :  { %1793 = vmatpush.msra.mxu2 %v1674_v13  ;;  %1816 = vmatpush.msra.mxu3 %v5875_v12 }
 0x36c   :  { %v1936_v24 = vsub.f32 %v6019_v39, %v1935_v50 }
 0x36d   :  { %1797 = vmatpush.msra.mxu2 %v1680_v7  ;;  %1818 = vmatpush.msra.mxu3 %v5881_v41  ;;  %v2553_v41 = vld [vmem:[#allocation2 + $0x2e8] sm:$0xff]  ;;  %v1941_v7 = vand.u32 4294901760, %v6024_v9 }
 0x36e   :  { %1799 = vmatmul.f32.vlgmr.msra.gmra.mxu2 %v5879_v48 }
 0x36f   :  { %1820 = vmatpush.msra.mxu3 %v5887_v25 }
 0x371   :  { %1822 = vmatpush.msra.mxu3 %v5894_v27  ;;  %v1868_v27 = vld [vmem:[#allocation2 + $0x1f0] sm:$0xff] }
 0x372   :  { %v5985_v45 = vand.u32 4294901760, %v1868_v27 }
 0x373   :  { %1824 = vmatpush.msra.mxu3 %v5912_v52 }
 0x374   :  { %v5988_v58 = vsub.f32 %v1868_v27, %v5985_v45  ;;  %1883 = vmatpush.msrb.mxu2 %v5985_v45  ;;  %2015 = vmatpush.msrb.mxu1 %v5985_v45 }
 0x375   :  { %1826 = vmatpush.msra.mxu3 %v5924_v55  ;;  %v1861_v55 = vld [vmem:[#allocation2 + $0x1b8] sm:$0xff] }
 0x376   :  { %1828 = vmatmul.f32.vlgmr.msra.gmra.mxu3 %v5879_v48  ;;  %v2558_v48 = vld [vmem:[#allocation2 + $0x310] sm:$0xff]  ;;  %v1917_v52 = vand.u32 4294901760, %v5988_v58  ;;  %1978 = vmatpush.msrb.mxu0 %v5988_v58  ;;  %v6011_v1 = vand.u32 4294901760, %v1861_v55 }
 0x377   :  { %1885 = vmatpush.msrb.mxu2 %v5990_v29  ;;  %2017 = vmatpush.msrb.mxu1 %v5990_v29 }
 0x378   :  { %v1918_v56 = vsub.f32 %v5988_v58, %v1917_v52  ;;  %1981 = vmatpush.msrb.mxu0 %v5996_v57  ;;  %v6033_v11 = vsub.f32 %v1861_v55, %v6011_v1  ;;  %v2169_v57 = vld [vmem:[#allocation2 + $0x270] sm:$0xff] }
 0x379   :  { %1887 = vmatpush.msrb.mxu2 %v5998_v46  ;;  %2019 = vmatpush.msrb.mxu1 %v5998_v46 }
 0x37a   :  { %v1919_v13 = vand.u32 4294901760, %v1918_v56  ;;  %1984 = vmatpush.msrb.mxu0 %v1928_v15 }
 0x37b   :  { %1889 = vmatpush.msrb.mxu2 %v6000_v33  ;;  %2021 = vmatpush.msrb.mxu1 %v6000_v33 }
 0x37c   :  { %1920 = vmatpush.msrb.mxu3 %v1919_v13  ;;  %1987 = vmatpush.msrb.mxu0 %v6019_v39  ;;  %v2166_v39 = vld [vmem:[#allocation2 + $0x258] sm:$0xff] }
 0x37d   :  { %1891 = vmatpush.msrb.mxu2 %v6004_v10  ;;  %2023 = vmatpush.msrb.mxu1 %v6004_v10 }
 0x37e   :  { %1926 = vmatpush.msrb.mxu3 %v1925_v47  ;;  %1990 = vmatpush.msrb.mxu0 %v6024_v9 }
 0x37f   :  { %1893 = vmatpush.msrb.mxu2 %v6006_v34  ;;  %2025 = vmatpush.msrb.mxu1 %v6006_v34 }
 0x380   :  { %1993 = vmatpush.msrb.mxu0 %v6027_v30 }
 0x381   :  { %1895 = vmatpush.msrb.mxu2 %v6008_v37  ;;  %2027 = vmatpush.msrb.mxu1 %v6008_v37 }
 0x382   :  { %1996 = vmatpush.msrb.mxu0 %v6030_v28 }
 0x383   :  { %1897 = vmatpush.msrb.mxu2 %v6011_v1  ;;  %2029 = vmatpush.msrb.mxu1 %v6011_v1 }
 0x384   :  { %1999 = vmatpush.msrb.mxu0 %v6033_v11 }
 0x385   :  { %2048 = vmatpush.msra.mxu2 %v1917_v52  ;;  %v6075_v52 = vand.u32 4294901760, %v2170_v19 }
 0x387   :  { %2052 = vmatpush.msra.mxu2 %v1923_v53  ;;  %2174 = vmatpush.msra.mxu0 %v6075_v52 }
 0x389   :  { %2056 = vmatpush.msra.mxu2 %v1929_v16 }
 0x38b   :  { %2060 = vmatpush.msra.mxu2 %v1935_v50  ;;  %v6114_v50 = vand.u32 4294901760, %v2166_v39 }
 0x38d   :  { %2064 = vmatpush.msra.mxu2 %v1941_v7 }
 0x38f   :  { %2068 = vmatpush.msra.mxu2 %v1947_v26 }
 0x391   :  { %2072 = vmatpush.msra.mxu2 %v1953_v62 }
 0x3d1   :  { %v1625_v54 = vpop.f32.mrf.mxu2 }
 0x3d2   :  { %v1626_v44 = vadd.f32 %v1625_v54, %v1590_v36  ;;  %v1937_v36 = vand.u32 4294901760, %v1936_v24 }
 0x3d9   :  { %v1686_v35 = vpop.f32.mrf.mxu3 }
 0x3da   :  { %v1687_v3 = vadd.f32 %v1686_v35, %v1626_v44  ;;  %v1942_v35 = vsub.f32 %v6024_v9, %v1941_v7  ;;  %v1948_v44 = vsub.f32 %v6027_v30, %v1947_v26  ;;  %v2165_v7 = vld [vmem:[#allocation2 + $0x250] sm:$0xff] }
 0x3e1   :  { %v1724_v51 = vpop.f32.mrf.mxu2 }
 0x3e2   :  { %v1725_v59 = vadd.f32 %v1724_v51, %v1687_v3  ;;  %v1931_v51 = vand.u32 4294901760, %v1930_v60  ;;  %v6121_v60 = vand.u32 4294901760, %v2165_v7 }
 0x3e4   :  { %1932 = vmatpush.msrb.mxu3 %v1931_v51 }
 0x3e6   :  { %1938 = vmatpush.msrb.mxu3 %v1937_v36 }
 0x3e9   :  { %v1755_v14 = vpop.f32.mrf.mxu3 }
 0x3ea   :  { %v1756_v5 = vadd.f32 %v1755_v14, %v1725_v59  ;;  %v1959_v14 = vand.u32 4294901760, %v6033_v11  ;;  %v1943_v59 = vand.u32 4294901760, %v1942_v35 }
 0x3ec   :  { %1944 = vmatpush.msrb.mxu3 %v1943_v59  ;;  %2076 = vmatpush.msra.mxu2 %v1959_v14 }
 0x3f1   :  { %v1800_v2 = vpop.f32.mrf.mxu2 }
 0x3f2   :  { %v1801_v4 = vadd.f32 %v1800_v2, %v1756_v5  ;;  %v1954_v2 = vsub.f32 %v6030_v28, %v1953_v62  ;;  %v1949_v5 = vand.u32 4294901760, %v1948_v44  ;;  %v6125_v62 = vsub.f32 %v2166_v39, %v6114_v50  ;;  %v7383_v39 = vld [vmem:[#allocation10_spill] sm:$0xff] }
 0x3f3   :  { %v6133_v44 = vsub.f32 %v2165_v7, %v6121_v60 }
 0x3f4   :  { %1950 = vmatpush.msrb.mxu3 %v1949_v5  ;;  %v2240_v59 = vand.u32 4294901760, %v6125_v62 }
 0x3f9   :  { %v1829_v12 = vpop.f32.mrf.mxu3 }
 0x3fa   :  { %v1830_v21 = vadd.f32 %v1829_v12, %v1801_v4  ;;  %v1960_v4 = vsub.f32 %v6033_v11, %v1959_v14  ;;  %v1955_v12 = vand.u32 4294901760, %v1954_v2  ;;  %v2163_v2 = vld [vmem:[#allocation2 + $0x240] sm:$0xff] }
 0x3fc   :  { %v5974_v63 = vadd.f32 %v1830_v21, %v7378_v0  ;;  %v1961_v21 = vand.u32 4294901760, %v1960_v4  ;;  %1956 = vmatpush.msrb.mxu3 %v1955_v12  ;;  %v2246_v12 = vand.u32 4294901760, %v6133_v44 }
 0x3fe   :  { %v1835_v8 = vsel %vm7379_vm8, %v5974_v63, 0.0  ;;  %1962 = vmatpush.msrb.mxu3 %v1961_v21 }
 0x3ff   :  { %1836 = vadd.xlane.f32.xlu1 %v1835_v8 }
 0x400   :  { %2091 = vmatpush.msra.mxu3 %v5985_v45 }
 0x402   :  { %2093 = vmatpush.msra.mxu3 %v5990_v29 }
 0x404   :  { %2095 = vmatpush.msra.mxu3 %v5998_v46  ;;  %v6078_v46 = vsub.f32 %v2170_v19, %v6075_v52 }
 0x406   :  { %2097 = vmatpush.msra.mxu3 %v6000_v33  ;;  %v6080_v33 = vand.u32 4294901760, %v2169_v57  ;;  %v2216_v17 = vand.u32 4294901760, %v6078_v46 }
 0x408   :  { %2099 = vmatpush.msra.mxu3 %v6004_v10  ;;  %v6086_v55 = vsub.f32 %v2169_v57, %v6080_v33  ;;  %v6088_v10 = vand.u32 4294901760, %v2168_v49  ;;  %2176 = vmatpush.msra.mxu0 %v6080_v33  ;;  %v2160_v57 = vld [vmem:[#allocation2 + $0x228] sm:$0xff] }
 0x40a   :  { %2101 = vmatpush.msra.mxu3 %v6006_v34  ;;  %v4747_v34 = vld [vmem:[#allocation2 + $0x1f8] ss:$0 sm:$0xff]  ;;  %v2222_v56 = vand.u32 4294901760, %v6086_v55  ;;  %v6098_v53 = vsub.f32 %v2168_v49, %v6088_v10  ;;  %2178 = vmatpush.msra.mxu0 %v6088_v10 }
 0x40c   :  { %2103 = vmatpush.msra.mxu3 %v6008_v37  ;;  %v2167_v37 = vld [vmem:[#allocation2 + $0x260] sm:$0xff]  ;;  %v2223_v11 = vsub.f32 %v6086_v55, %v2222_v56  ;;  %v2228_v13 = vand.u32 4294901760, %v6098_v53 }
 0x40d   :  { %v6100_v15 = vand.u32 4294901760, %v2167_v37 }
 0x40e   :  { %2105 = vmatpush.msra.mxu3 %v6011_v1  ;;  %v2217_v1 = vsub.f32 %v6078_v46, %v2216_v17  ;;  %v2224_v26 = vand.u32 4294901760, %v2223_v11 }
 0x40f   :  { %v6110_v42 = vsub.f32 %v2167_v37, %v6100_v15  ;;  %2180 = vmatpush.msra.mxu0 %v6100_v15 }
 0x410   :  { %v2218_v28 = vand.u32 4294901760, %v2217_v1  ;;  %v6181_v1 = vand.u32 4294901760, %v2160_v57 }
 0x411   :  { %v2234_v47 = vand.u32 4294901760, %v6110_v42  ;;  %2182 = vmatpush.msra.mxu0 %v6114_v50 }
 0x412   :  { %2219 = vmatpush.msra.mxu1 %v2218_v28  ;;  %v2159_v28 = vld [vmem:[#allocation2 + $0x220] sm:$0xff]  ;;  %v6197_v7 = vsub.f32 %v2160_v57, %v6181_v1 }
 0x413   :  { %v2235_v36 = vsub.f32 %v6110_v42, %v2234_v47  ;;  %2184 = vmatpush.msra.mxu0 %v6121_v60 }
 0x414   :  { %2225 = vmatpush.msra.mxu1 %v2224_v26  ;;  %v6199_v26 = vand.u32 4294901760, %v2159_v28 }
 0x415   :  { %v2236_v4 = vand.u32 4294901760, %v2235_v36 }
 0x416   :  { %v6209_v36 = vsub.f32 %v2159_v28, %v6199_v26 }
 0x418   :  { %2596 = vperm.xlu1 %4739, %v2558_v48  }
 0x420   :  { %2581 = vperm.xlu1 %4739, %v2555_v18  }
 0x428   :  { %2571 = vperm.xlu1 %4739, %v2553_v41  }
 0x430   :  { %2561 = vperm.xlu1 %4739, %v2551_v32  }
 0x472   :  { %v1837_v22 = vpop.xlane.xlu1 %1836 }
 0x473   :  { %v1838_v6 = vmul.f32 %v1837_v22, %v7380_v61  ;;  %v4745_v22 = vld [vmem:[#allocation2 + $0x1a8] ss:$0 sm:$0xff] }
 0x475   :  { %v5980_v25 = vsub.f32 %v5974_v63, %v1838_v6 }
 0x477   :  { %v1840_v31 = vmul.f32 %v5980_v25, %v5980_v25 }
 0x479   :  { %v1841_v20 = vsel %vm7381_vm9, %v1840_v31, 0.0  ;;  %vm7388_vm9 = vmmov %vm7386_vm10 }
 0x47a   :  { %1842 = vadd.xlane.f32.xlu2 %v1841_v20  ;;  %v4746_v20 = vld [vmem:[#allocation2 + $0x1b0] ss:$0 sm:$0xff] }
 0x4ed   :  { %v1843_v23 = vpop.xlane.xlu2 %1842 }
 0x4ee   :  { %v1844_v54 = vmul.f32 %v1843_v23, %v7380_v61  ;;  %v2229_v23 = vsub.f32 %v6098_v53, %v2228_v13 }
 0x4f0   :  { %v1845_v3 = vadd.f32 1e-06, %v1844_v54  ;;  %v2164_v54 = vld [vmem:[#allocation2 + $0x248] sm:$0xff]  ;;  %v2230_v51 = vand.u32 4294901760, %v2229_v23 }
 0x4f1   :  { %v6135_v14 = vand.u32 4294901760, %v2164_v54 }
 0x4f2   :  { %4780 = vrsqrt.f32 %v1845_v3  ;;  %vm1852_vm3 = vweird.f32 %v1845_v3  ;;  %2231 = vmatpush.msra.mxu1 %v2230_v51  ;;  %v2276_v51 = vand.u32 4294901760, %v6197_v7 }
 0x4f3   :  { %v6142_v21 = vsub.f32 %v2164_v54, %v6135_v14  ;;  %2186 = vmatpush.msra.mxu0 %v6135_v14  ;;  %v2158_v54 = vld [vmem:[#allocation2 + $0x218] sm:$0xff] }
 0x4f4   :  { %2237 = vmatpush.msra.mxu1 %v2236_v4  ;;  %v2157_v4 = vld [vmem:[#allocation2 + $0x210] sm:$0xff] }
 0x4f8   :  { %v4781_v0 = vpop.eup %4780 }
 0x4f9   :  { %v1847_v8 = vmul.f32 %v4781_v0, %v1845_v3  ;;  %vm1853_vm11 = vweird.f32 %v4781_v0 }
 0x4fa   :  { %vm1854_vm5 = vmor %vm1852_vm3, %vm1853_vm11 }
 0x4fb   :  { %v1848_v48 = vmul.f32 %v4781_v0, %v1847_v8  ;;  %vm7389_vm11 = vmmov %vm7388_vm9 }
 0x4fc   :  { %vm7390_vm3 = vmmov %vm7388_vm9 }
 0x4fd   :  { %v1849_v18 = vmul.f32 0.5, %v1848_v48  ;;  %v2241_v48 = vsub.f32 %v6125_v62, %v2240_v59 }
 0x4ff   :  { %v1850_v41 = vsub.f32 1.5, %v1849_v18  ;;  %v2162_v18 = vld [vmem:[#allocation2 + $0x238] sm:$0xff] }
 0x501   :  { %v1851_v32 = vmul.f32 %v4781_v0, %v1850_v41 }
 0x503   :  { %v1855_v6 = vsel %vm1854_vm5, %v4781_v0, %v1851_v32  ;;  %v6144_v0 = vand.u32 4294901760, %v2163_v2  ;;  %v2247_v32 = vsub.f32 %v6133_v44, %v2246_v12  ;;  %vm7391_vm5 = vmmov %vm7390_vm3 }
 0x504   :  { %v1856_v31 = vmul.f32 %v1855_v6, %v5980_v25 }
 0x505   :  { %v6157_v6 = vsub.f32 %v2163_v2, %v6144_v0  ;;  %2188 = vmatpush.msra.mxu0 %v6144_v0 }
 0x506   :  { %v1858_v27 = vmul.f32 %v4745_v22, %v1856_v31  ;;  %v2252_v22 = vand.u32 4294901760, %v6142_v21  ;;  %v6159_v31 = vand.u32 4294901760, %v2162_v18 }
 0x508   :  { %v1860_v45 = vadd.f32 %v4746_v20, %v1858_v27  ;;  %v2242_v27 = vand.u32 4294901760, %v2241_v48  ;;  %2190 = vmatpush.msra.mxu0 %v6159_v31  ;;  %v2282_v48 = vand.u32 4294901760, %v6209_v36 }
 0x50a   :  { %v1872_v43 = vsel %vm7382_vm13, %v1860_v45, 0  ;;  %v2161_v45 = vld [vmem:[#allocation2 + $0x230] sm:$0xff]  ;;  %2243 = vmatpush.msra.mxu1 %v2242_v27  ;;  %vm7392_vm13 = vmmov %vm7390_vm3 }
 0x50b   :  { %v1898_v58 = vand.u32 4294901760, %v1872_v43  ;;  %v6174_v19 = vand.u32 4294901760, %v2161_v45 }
 0x50d   :  { %1964 = vmatmul.f32.vlgmr.msrb.gmra.mxu3 %v1898_v58  ;;  %v1899_v29 = vsub.f32 %v1872_v43, %v1898_v58  ;;  %2192 = vmatpush.msra.mxu0 %v6174_v19 }
 0x50e   :  { %2370 = vmatpush.msrb.mxu3 %v6075_v52 }
 0x50f   :  { %2002 = vmatmul.f32.vlgmr.msrb.gmra.mxu0 %v1899_v29  ;;  %v1900_v40 = vand.u32 4294901760, %v1899_v29 }
 0x510   :  { %2372 = vmatpush.msrb.mxu3 %v6080_v33  ;;  %2194 = vmatpush.msra.mxu0 %v6181_v1 }
 0x511   :  { %2033 = vmatmul.f32.vlgmr.msrb.gmra.mxu1 %v1900_v40  ;;  %v1901_v25 = vsub.f32 %v1899_v29, %v1900_v40  ;;  %v2253_v29 = vsub.f32 %v6142_v21, %v2252_v22  ;;  %v2258_v40 = vand.u32 4294901760, %v6157_v6 }
 0x512   :  { %2374 = vmatpush.msrb.mxu3 %v6088_v10  ;;  %2196 = vmatpush.msra.mxu0 %v6199_v26 }
 0x513   :  { %v1902_v38 = vand.u32 4294901760, %v1901_v25  ;;  %v6169_v25 = vsub.f32 %v2162_v18, %v6159_v31  ;;  %v2254_v49 = vand.u32 4294901760, %v2253_v29 }
 0x514   :  { %2376 = vmatpush.msrb.mxu3 %v6100_v15 }
 0x515   :  { %1903 = vmatmul.f32.vlgmr.msrb.gmra.mxu2 %v1902_v38  ;;  %2107 = vmatmul.f32.vlgmr.msra.gmra.mxu3 %v1898_v58  ;;  %v2264_v37 = vand.u32 4294901760, %v6169_v25 }
 0x516   :  { %2317 = vmatpush.msrb.mxu2 %v6078_v46  ;;  %2378 = vmatpush.msrb.mxu3 %v6114_v50 }
 0x518   :  { %2320 = vmatpush.msrb.mxu2 %v6086_v55  ;;  %2380 = vmatpush.msrb.mxu3 %v6121_v60 }
 0x51a   :  { %2323 = vmatpush.msrb.mxu2 %v6098_v53  ;;  %2382 = vmatpush.msrb.mxu3 %v6135_v14 }
 0x51c   :  { %2326 = vmatpush.msrb.mxu2 %v6110_v42  ;;  %2384 = vmatpush.msrb.mxu3 %v6144_v0 }
 0x51d   :  { %2078 = vmatmul.f32.vlgmr.msra.gmra.mxu2 %v1898_v58  ;;  %v2248_v58 = vand.u32 4294901760, %v2247_v32 }
 0x51e   :  { %2329 = vmatpush.msrb.mxu2 %v6125_v62  ;;  %2386 = vmatpush.msrb.mxu3 %v6159_v31 }
 0x51f   :  { %2249 = vmatpush.msra.mxu1 %v2248_v58  ;;  %v2283_v58 = vsub.f32 %v6209_v36, %v2282_v48 }
 0x520   :  { %2332 = vmatpush.msrb.mxu2 %v6133_v44  ;;  %2388 = vmatpush.msrb.mxu3 %v6174_v19 }
 0x521   :  { %2255 = vmatpush.msra.mxu1 %v2254_v49 }
 0x522   :  { %2335 = vmatpush.msrb.mxu2 %v6142_v21  ;;  %2390 = vmatpush.msrb.mxu3 %v6181_v1 }
 0x524   :  { %2338 = vmatpush.msrb.mxu2 %v6157_v6  ;;  %2392 = vmatpush.msrb.mxu3 %v6199_v26 }
 0x526   :  { %2341 = vmatpush.msrb.mxu2 %v6169_v25 }
 0x58c   :  { %v2003_v35 = vpop.f32.mrf.mxu0 }
 0x58e   :  { %v2034_v5 = vpop.f32.mrf.mxu1 }
 0x590   :  { %v1965_v9 = vpop.f32.mrf.mxu3 }
 0x598   :  { %v1904_v30 = vpop.f32.mrf.mxu2  ;;  %v2108_v43 = vpop.f32.mrf.mxu3 }
 0x599   :  { %v1905_v16 = vadd.f32 %v4747_v34, %v1904_v30  ;;  %v2259_v34 = vsub.f32 %v6157_v6, %v2258_v40  ;;  %v6190_v30 = vsub.f32 %v2161_v45, %v6174_v19  ;;  %v2156_v45 = vld [vmem:[#allocation2 + $0x208] sm:$0xff] }
 0x59a   :  { %v6244_v28 = vand.u32 4294901760, %v2156_v45 }
 0x59b   :  { %v1966_v24 = vadd.f32 %v1965_v9, %v1905_v16  ;;  %v2260_v11 = vand.u32 4294901760, %v2259_v34  ;;  %v2265_v16 = vsub.f32 %v6169_v25, %v2264_v37  ;;  %2344 = vmatpush.msrb.mxu2 %v6190_v30 }
 0x59d   :  { %v2004_v3 = vadd.f32 %v2003_v35, %v1966_v24  ;;  %v2270_v24 = vand.u32 4294901760, %v6190_v30  ;;  %v2266_v35 = vand.u32 4294901760, %v2265_v16  ;;  %2261 = vmatpush.msra.mxu1 %v2260_v11  ;;  %2347 = vmatpush.msrb.mxu2 %v6197_v7  ;;  %v2155_v11 = vld [vmem:[#allocation2 + $0x200] sm:$0xff]  ;;  %v2284_v16 = vand.u32 4294901760, %v2283_v58 }
 0x59f   :  { %v2035_v8 = vadd.f32 %v2034_v5, %v2004_v3  ;;  %v6211_v3 = vand.u32 4294901760, %v2158_v54  ;;  %v2271_v5 = vsub.f32 %v6190_v30, %v2270_v24  ;;  %2267 = vmatpush.msra.mxu1 %v2266_v35  ;;  %2350 = vmatpush.msrb.mxu2 %v6209_v36  ;;  %v6251_v35 = vand.u32 4294901760, %v2155_v11 }
 0x5a0   :  { %v2079_v41 = vpop.f32.mrf.mxu2 }
 0x5a1   :  { %v2080_v20 = vadd.f32 %v2079_v41, %v2035_v8  ;;  %v2277_v8 = vsub.f32 %v6197_v7, %v2276_v51  ;;  %v6226_v18 = vsub.f32 %v2158_v54, %v6211_v3  ;;  %v6228_v41 = vand.u32 4294901760, %v2157_v4  ;;  %2198 = vmatpush.msra.mxu0 %v6211_v3  ;;  %2394 = vmatpush.msrb.mxu3 %v6211_v3 }
 0x5a2   :  { %v2272_v27 = vand.u32 4294901760, %v2271_v5 }
 0x5a3   :  { %v6172_v38 = vadd.f32 %v2108_v43, %v2080_v20  ;;  %v2278_v43 = vand.u32 4294901760, %v2277_v8  ;;  %v2288_v29 = vand.u32 4294901760, %v6226_v18  ;;  %v6240_v57 = vsub.f32 %v2157_v4, %v6228_v41  ;;  %2200 = vmatpush.msra.mxu0 %v6228_v41  ;;  %2353 = vmatpush.msrb.mxu2 %v6226_v18 }
 0x5a4   :  { %2273 = vmatpush.msra.mxu1 %v2272_v27  ;;  %2396 = vmatpush.msrb.mxu3 %v6228_v41  ;;  %v6258_v8 = vsub.f32 %v2156_v45, %v6244_v28  ;;  %v6265_v27 = vsub.f32 %v2155_v11, %v6251_v35 }
 0x5a5   :  { %v6187_v9 = vmul.f32 %v6172_v38, %v7383_v39  ;;  %v2294_v54 = vand.u32 4294901760, %v6240_v57  ;;  %2202 = vmatpush.msra.mxu0 %v6244_v28  ;;  %2356 = vmatpush.msrb.mxu2 %v6240_v57  ;;  %v2111_v6 = vmul.f32 0.5, %v6172_v38  ;;  %v4748_v38 = vld [vmem:[#allocation2 + $0x280] ss:$0 sm:$0xff] }
 0x5a6   :  { %2279 = vmatpush.msra.mxu1 %v2278_v43  ;;  %2398 = vmatpush.msrb.mxu3 %v6244_v28  ;;  %v2300_v43 = vand.u32 4294901760, %v6258_v8 }
 0x5a7   :  { %v2113_v23 = vmul.f32 %v6187_v9, %v6187_v9  ;;  %2204 = vmatpush.msra.mxu0 %v6251_v35  ;;  %2359 = vmatpush.msrb.mxu2 %v6258_v8 }
 0x5a8   :  { %2285 = vmatpush.msra.mxu1 %v2284_v16  ;;  %v2301_v16 = vsub.f32 %v6258_v8, %v2300_v43  ;;  %2400 = vmatpush.msrb.mxu3 %v6251_v35 }
 0x5a9   :  { %v6215_v2 = vmin.f32 %v2113_v23, 16.0  ;;  %v2289_v23 = vsub.f32 %v6226_v18, %v2288_v29  ;;  %2411 = vmatpush.msrb.mxu0 %v2216_v17  ;;  %2362 = vmatpush.msrb.mxu2 %v6265_v27 }
 0x5aa   :  { %v2302_v17 = vand.u32 4294901760, %v2301_v16 }
 0x5ab   :  { %v2115_v32 = vmul.f32 2.1237322e-06, %v6215_v2  ;;  %v2126_v20 = vmul.f32 3.8918573e-05, %v6215_v2  ;;  %2415 = vmatpush.msrb.mxu0 %v2222_v56 }
 0x5ad   :  { %v2116_v49 = vadd.f32 0.00028619796, %v2115_v32  ;;  %v2127_v34 = vadd.f32 0.001143296, %v2126_v20  ;;  %v2290_v32 = vand.u32 4294901760, %v2289_v23  ;;  %v2295_v20 = vsub.f32 %v6240_v57, %v2294_v54  ;;  %2419 = vmatpush.msrb.mxu0 %v2228_v13 }
 0x5af   :  { %v2117_v5 = vmul.f32 %v2116_v49, %v6215_v2  ;;  %v2128_v4 = vmul.f32 %v2127_v34, %v6215_v2  ;;  %v2296_v49 = vand.u32 4294901760, %v2295_v20  ;;  %v2306_v34 = vand.u32 4294901760, %v6265_v27  ;;  %2291 = vmatpush.msra.mxu1 %v2290_v32  ;;  %2423 = vmatpush.msrb.mxu0 %v2234_v47 }
 0x5b1   :  { %v2129_v58 = vadd.f32 0.014752088, %v2128_v4  ;;  %v2118_v45 = vadd.f32 0.0036580483, %v2117_v5  ;;  %v2307_v23 = vsub.f32 %v6265_v27, %v2306_v34  ;;  %2297 = vmatpush.msra.mxu1 %v2296_v49  ;;  %2427 = vmatpush.msrb.mxu0 %v2240_v59  ;;  %v2557_v49 = vld [vmem:[#allocation2 + $0x308] sm:$0xff] }
 0x5b3   :  { %v2130_v11 = vmul.f32 %v2129_v58, %v6215_v2  ;;  %v2119_v5 = vmul.f32 %v2118_v45, %v6215_v2  ;;  %v2308_v4 = vand.u32 4294901760, %v2307_v23  ;;  %2303 = vmatpush.msra.mxu1 %v2302_v17  ;;  %2431 = vmatpush.msrb.mxu0 %v2246_v12 }
 0x5b5   :  { %v2131_v46 = vadd.f32 0.112945676, %v2130_v11  ;;  %2309 = vmatpush.msra.mxu1 %v2308_v4  ;;  %v2120_v55 = vadd.f32 0.05243302, %v2119_v5  ;;  %2435 = vmatpush.msrb.mxu0 %v2252_v22 }
 0x5b7   :  { %v2132_v32 = vmul.f32 %v2131_v46, %v6215_v2  ;;  %2478 = vmatpush.msrb.mxu1 %v6075_v52  ;;  %v2121_v13 = vmul.f32 %v2120_v55, %v6215_v2  ;;  %2439 = vmatpush.msrb.mxu0 %v2258_v40  ;;  %v2543_v46 = vld [vmem:[#allocation2 + $0x298] sm:$0xff]  ;;  %v2544_v55 = vld [vmem:[#allocation2 + $0x2a0] sm:$0xff] }
 0x5b8   :  { %v2600_v17 = vsel %vm7386_vm10, %v2543_v46, 0 }
 0x5b9   :  { %v2133_v20 = vadd.f32 0.4994258, %v2132_v32  ;;  %2480 = vmatpush.msrb.mxu1 %v6080_v33  ;;  %v2122_v52 = vadd.f32 0.18741608, %v2121_v13  ;;  %2443 = vmatpush.msrb.mxu0 %v2264_v37  ;;  %v6347_v32 = vand.u32 4294901760, %v2600_v17  ;;  %v2603_v13 = vsel %vm7387_vm12, %v2544_v55, 0 }
 0x5bb   :  { %v2134_v56 = vmul.f32 %v2133_v20, %v6215_v2  ;;  %2482 = vmatpush.msrb.mxu1 %v6088_v10  ;;  %2447 = vmatpush.msrb.mxu0 %v2270_v24  ;;  %v2123_v10 = vmul.f32 %v2122_v52, %v6215_v2 }
 0x5bd   :  { %v2135_v53 = vadd.f32 1.0, %v2134_v56  ;;  %2484 = vmatpush.msrb.mxu1 %v6100_v15  ;;  %2451 = vmatpush.msrb.mxu0 %v2276_v51  ;;  %v2124_v47 = vadd.f32 1.1283791, %v2123_v10 }
 0x5bf   :  { %4782 = vrcp.f32 %v2135_v53  ;;  %2486 = vmatpush.msrb.mxu1 %v6114_v50  ;;  %2455 = vmatpush.msrb.mxu0 %v2282_v48  ;;  %v2147_v50 = vand.u32 2147483648, %v2135_v53  ;;  %v2145_v62 = vand.u32 2147483647, %v2135_v53  ;;  %vm2141_vm14 = vweird.f32 %v2135_v53 }
 0x5c0   :  { %v2125_v59 = vmul.f32 %v2124_v47, %v6187_v9  ;;  %v2545_v47 = vld [vmem:[#allocation2 + $0x2a8] sm:$0xff] }
 0x5c1   :  { %2488 = vmatpush.msrb.mxu1 %v6121_v60  ;;  %2459 = vmatpush.msrb.mxu0 %v2288_v29  ;;  %vm2146_vm1 = vcmp.eq.f32.partialorder %v2145_v62, 8.507059e+37  ;;  %v4750_v62 = vld [vmem:[#allocation2 + $0x290] ss:$0 sm:$0xff] }
 0x5c3   :  { %2490 = vmatpush.msrb.mxu1 %v6135_v14  ;;  %2463 = vmatpush.msrb.mxu0 %v2294_v54  ;;  %v2148_v14 = vor.u32 1.1754944e-38, %v2147_v50  ;;  %v2556_v54 = vld [vmem:[#allocation2 + $0x300] sm:$0xff] }
 0x5c5   :  { %v4783_v33 = vpop.eup %4782  ;;  %2492 = vmatpush.msrb.mxu1 %v6144_v0  ;;  %2467 = vmatpush.msrb.mxu0 %v2300_v43 }
 0x5c6   :  { %v2137_v42 = vmul.f32 %v4783_v33, %v2135_v53  ;;  %vm2142_vm0 = vweird.f32 %v4783_v33  ;;  %v2641_v53 = vsub.f32 %v2600_v17, %v6347_v32 }
 0x5c7   :  { %2494 = vmatpush.msrb.mxu1 %v6159_v31  ;;  %vm2143_vm15 = vmor %vm2141_vm14, %vm2142_vm0  ;;  %2471 = vmatpush.msrb.mxu0 %v2306_v34  ;;  %v2552_v34 = vld [vmem:[#allocation2 + $0x2e0] sm:$0xff] }
 0x5c8   :  { %v2138_v15 = vsub.f32 1.0, %v2137_v42  ;;  %v2642_v10 = vand.u32 4294901760, %v2641_v53  ;;  %v6351_v42 = vand.u32 4294901760, %v2603_v13  ;;  %vm7393_vm0 = vmmov %vm7390_vm3 }
 0x5c9   :  { %2496 = vmatpush.msrb.mxu1 %v6174_v19 }
 0x5ca   :  { %v2139_v60 = vmul.f32 %v4783_v33, %v2138_v15  ;;  %v4749_v15 = vld [vmem:[#allocation2 + $0x288] ss:$0 sm:$0xff] }
 0x5cb   :  { %2498 = vmatpush.msrb.mxu1 %v6181_v1 }
 0x5cc   :  { %v2140_v44 = vadd.f32 %v4783_v33, %v2139_v60 }
 0x5cd   :  { %2500 = vmatpush.msrb.mxu1 %v6199_v26 }
 0x5ce   :  { %v2144_v12 = vsel %vm2143_vm15, %v4783_v33, %v2140_v44  ;;  %v2643_v44 = vsub.f32 %v2641_v53, %v2642_v10 }
 0x5cf   :  { %v2149_v21 = vsel %vm2146_vm1, %v2148_v14, %v2144_v12  ;;  %2502 = vmatpush.msrb.mxu1 %v6211_v3  ;;  %v2649_v14 = vsub.f32 %v2603_v13, %v6351_v42  ;;  %v2606_v12 = vsel %vm7388_vm9, %v2545_v47, 0 }
 0x5d0   :  { %v2150_v0 = vmul.f32 %v2149_v21, %v2125_v59 }
 0x5d1   :  { %2504 = vmatpush.msrb.mxu1 %v6228_v41 }
 0x5d2   :  { %v4722_v22 = vclamps-f32 %v2150_v0, 1.0  ;;  %v2644_v0 = vand.u32 4294901760, %v2643_v44 }
 0x5d3   :  { %2506 = vmatpush.msrb.mxu1 %v6244_v28 }
 0x5d4   :  { %v2153_v31 = vadd.f32 1.0, %v4722_v22  ;;  %v2650_v22 = vand.u32 4294901760, %v2649_v14 }
 0x5d5   :  { %2508 = vmatpush.msrb.mxu1 %v6251_v35  ;;  %v3339_v35 = vld [vmem:[#allocation2 + $0x320] sm:$0xff] }
 0x5d6   :  { %v2154_v40 = vmul.f32 %v2153_v31, %v2111_v6  ;;  %v6355_v6 = vand.u32 4294901760, %v2606_v12 }
 0x5d8   :  { %v2205_v25 = vand.u32 4294901760, %v2154_v40 }
 0x5da   :  { %2311 = vmatmul.f32.vlgmr.msra.gmra.mxu1 %v2205_v25  ;;  %v2206_v19 = vsub.f32 %v2154_v40, %v2205_v25  ;;  %v2546_v40 = vld [vmem:[#allocation2 + $0x2b0] sm:$0xff] }
 0x5dc   :  { %2365 = vmatmul.f32.vlgmr.msrb.gmra.mxu2 %v2206_v19  ;;  %v2207_v37 = vand.u32 4294901760, %v2206_v19 }
 0x5de   :  { %2404 = vmatmul.f32.vlgmr.msrb.gmra.mxu3 %v2207_v37  ;;  %v2208_v1 = vsub.f32 %v2206_v19, %v2207_v37  ;;  %v2651_v19 = vsub.f32 %v2649_v14, %v2650_v22  ;;  %v2657_v37 = vsub.f32 %v2606_v12, %v6355_v6 }
 0x5e0   :  { %v2209_v9 = vand.u32 4294901760, %v2208_v1 }
 0x5e2   :  { %2210 = vmatmul.f32.vlgmr.msra.gmra.mxu0 %v2209_v9  ;;  %2510 = vmatmul.f32.vlgmr.msrb.gmra.mxu1 %v2205_v25  ;;  %v2609_v9 = vsel %vm7389_vm11, %v2546_v40, 0 }
 0x5ea   :  { %2473 = vmatmul.f32.vlgmr.msrb.gmra.mxu0 %v2205_v25 }
 0x657   :  { %v2312_v30 = vpop.f32.mrf.mxu1 }
 0x65f   :  { %v2211_v7 = vpop.f32.mrf.mxu0  ;;  %v2366_v51 = vpop.f32.mrf.mxu2 }
 0x660   :  { %v2212_v26 = vadd.f32 %v4748_v38, %v2211_v7  ;;  %v2511_v41 = vpop.f32.mrf.mxu1  ;;  %v2658_v7 = vand.u32 4294901760, %v2657_v37 }
 0x661   :  { %v2405_v3 = vpop.f32.mrf.mxu3 }
 0x662   :  { %v2313_v24 = vadd.f32 %v2312_v30, %v2212_v26  ;;  %v2652_v30 = vand.u32 4294901760, %v2651_v19  ;;  %v6359_v26 = vand.u32 4294901760, %v2609_v9 }
 0x664   :  { %v2367_v36 = vadd.f32 %v2366_v51, %v2313_v24  ;;  %v2547_v51 = vld [vmem:[#allocation2 + $0x2b8] sm:$0xff] }
 0x666   :  { %v2406_v2 = vadd.f32 %v2405_v3, %v2367_v36  ;;  %v2659_v36 = vsub.f32 %v2657_v37, %v2658_v7  ;;  %v2665_v3 = vsub.f32 %v2609_v9, %v6359_v26 }
 0x667   :  { %v2474_v48 = vpop.f32.mrf.mxu0 }
 0x668   :  { %v2475_v18 = vadd.f32 %v2474_v48, %v2406_v2  ;;  %v2612_v2 = vsel %vm7390_vm3, %v2547_v51, 0  ;;  %v2660_v48 = vand.u32 4294901760, %v2659_v36 }
 0x66a   :  { %v2512_v29 = vadd.f32 %v2511_v41, %v2475_v18  ;;  %v2666_v18 = vand.u32 4294901760, %v2665_v3  ;;  %v2672_v41 = vand.u32 4294901760, %v2612_v2 }
 0x66c   :  { %v6338_v57 = vadd.f32 %v2512_v29, %v5974_v63  ;;  %v2554_v63 = vld [vmem:[#allocation2 + $0x2f0] sm:$0xff]  ;;  %v2548_v29 = vld [vmem:[#allocation2 + $0x2c0] sm:$0xff] }
 0x66e   :  { %v2517_v28 = vsel %vm7384_vm4, %v6338_v57, 0.0 }
 0x66f   :  { %2518 = vadd.xlane.f32.xlu0 %v2517_v28  ;;  %v2667_v28 = vsub.f32 %v2665_v3, %v2666_v18 }
 0x683   :  { %2586 = vperm.xlu0 %4741, %v2556_v54   ;;  %v2673_v54 = vsub.f32 %v2612_v2, %v2672_v41 }
 0x68b   :  { %3342 = vperm.xlu0 %4741, %v3339_v35   ;;  %v2615_v35 = vsel %vm7391_vm5, %v2548_v29, 0 }
 0x6e2   :  { %v2519_v8 = vpop.xlane.xlu0 %2518 }
 0x6e3   :  { %v2520_v27 = vmul.f32 %v2519_v8, %v7380_v61  ;;  %v2668_v8 = vand.u32 4294901760, %v2667_v28 }
 0x6e5   :  { %v2521_v58 = vsub.f32 %v6338_v57, %v2520_v27  ;;  %v2674_v27 = vand.u32 4294901760, %v2673_v54 }
 0x6e7   :  { %v2522_v43 = vmul.f32 %v2521_v58, %v2521_v58 }
 0x6e9   :  { %v2523_v45 = vsel %vm7385_vm2, %v2522_v43, 0.0  ;;  %v2549_v43 = vld [vmem:[#allocation2 + $0x2c8] sm:$0xff] }
 0x6ea   :  { %2524 = vadd.xlane.f32.xlu2 %v2523_v45  ;;  %v2675_v45 = vsub.f32 %v2673_v54, %v2674_v27 }
 0x702   :  { %2591 = vperm.xlu2 %4740, %v2557_v49  }
 0x70a   :  { %2576 = vperm.xlu2 %4740, %v2554_v63   ;;  %v2618_v63 = vsel %vm7392_vm13, %v2549_v43, 0 }
 0x712   :  { %2566 = vperm.xlu2 %4740, %v2552_v34   ;;  %v2676_v34 = vand.u32 4294901760, %v2675_v45 }
 0x75d   :  { %v2525_v11 = vpop.xlane.xlu2 %2524 }
 0x75e   :  { %v2526_v16 = vmul.f32 %v2525_v11, %v7380_v61 }
 0x760   :  { %v2527_v23 = vadd.f32 1e-06, %v2526_v16  ;;  %v2688_v16 = vand.u32 4294901760, %v2618_v63 }
 0x762   :  { %4784 = vrsqrt.f32 %v2527_v23  ;;  %vm2534_vm7 = vweird.f32 %v2527_v23  ;;  %v2689_v17 = vsub.f32 %v2618_v63, %v2688_v16 }
 0x768   :  { %v4785_v5 = vpop.eup %4784 }
 0x769   :  { %v2529_v4 = vmul.f32 %v4785_v5, %v2527_v23  ;;  %vm2535_vm6 = vweird.f32 %v4785_v5  ;;  %v2550_v23 = vld [vmem:[#allocation2 + $0x2d0] sm:$0xff] }
 0x76a   :  { %vm2536_vm8 = vmor %vm2534_vm7, %vm2535_vm6 }
 0x76b   :  { %v2530_v20 = vmul.f32 %v4785_v5, %v2529_v4 }
 0x76d   :  { %v2531_v56 = vmul.f32 0.5, %v2530_v20  ;;  %v2690_v20 = vand.u32 4294901760, %v2689_v17 }
 0x76f   :  { %v2532_v52 = vsub.f32 1.5, %v2531_v56  ;;  %v2691_v56 = vsub.f32 %v2689_v17, %v2690_v20 }
 0x771   :  { %v2533_v33 = vmul.f32 %v4785_v5, %v2532_v52  ;;  %v2692_v13 = vand.u32 4294901760, %v2691_v56 }
 0x773   :  { %v2537_v50 = vsel %vm2536_vm8, %v4785_v5, %v2533_v33  ;;  %v2621_v5 = vsel %vm7393_vm0, %v2550_v23, 0 }
 0x774   :  { %v2538_v60 = vmul.f32 %v2537_v50, %v2521_v58  ;;  %v2680_v58 = vand.u32 4294901760, %v2615_v35  ;;  %v2696_v55 = vand.u32 4294901760, %v2621_v5 }
 0x776   :  { %v2540_v59 = vmul.f32 %v4749_v15, %v2538_v60  ;;  %v2681_v49 = vsub.f32 %v2615_v35, %v2680_v58  ;;  %v6378_v15 = vpop.permute.xlu1 %2596 }
 0x778   :  { %v2542_v21 = vadd.f32 %v4750_v62, %v2540_v59  ;;  %v2682_v11 = vand.u32 4294901760, %v2681_v49 }
 0x77a   :  { %v2638_v31 = vand.u32 4294901760, %v2542_v21  ;;  %v2683_v46 = vsub.f32 %v2681_v49, %v2682_v11 }
 0x77c   :  { %2639 = vmatpush.msra.mxu2 %v2638_v31  ;;  %2834 = vmatpush.msra.mxu1 %v2638_v31  ;;  %v2721_v25 = vsub.f32 %v2542_v21, %v2638_v31  ;;  %v2684_v4 = vand.u32 4294901760, %v2683_v46 }
 0x77d   :  { %2645 = vmatmul.f32.vlgmr.msra.gmra.mxu2 %v2644_v0  ;;  %2838 = vmatmul.f32.vlgmr.msra.gmra.mxu1 %v2642_v10 }
 0x77e   :  { %2776 = vmatpush.msra.mxu0 %v2721_v25  ;;  %v2722_v1 = vand.u32 4294901760, %v2721_v25  ;;  %v2582_v50 = vpop.permute.xlu1 %2581 }
 0x77f   :  { %2779 = vmatmul.f32.vlgmr.msra.gmra.mxu0 %v2641_v53  ;;  %v2697_v53 = vsub.f32 %v2621_v5, %v2696_v55 }
 0x780   :  { %2902 = vmatpush.msrb.mxu2 %v2722_v1  ;;  %v2723_v38 = vsub.f32 %v2721_v25, %v2722_v1 }
 0x781   :  { %v2698_v52 = vand.u32 4294901760, %v2697_v53 }
 0x782   :  { %v2724_v24 = vand.u32 4294901760, %v2723_v38 }
 0x783   :  { %v2699_v33 = vsub.f32 %v2697_v53, %v2698_v52 }
 0x784   :  { %2725 = vmatpush.msra.mxu3 %v2724_v24 }
 0x785   :  { %2653 = vmatmul.f32.gmra.mxu2 %v2652_v30  ;;  %2727 = vmatmul.f32.vlgmr.msra.gmra.mxu3 %v6347_v32  ;;  %v2700_v10 = vand.u32 4294901760, %v2699_v33 }
 0x786   :  { %2952 = vmatpush.msrb.mxu3 %v2638_v31  ;;  %2844 = vmatmul.f32.gmra.mxu1 %v2650_v22  ;;  %v2572_v47 = vpop.permute.xlu1 %2571 }
 0x787   :  { %2784 = vmatmul.f32.gmra.mxu0 %v2649_v14 }
 0x78d   :  { %2661 = vmatmul.f32.gmra.mxu2 %v2660_v48  ;;  %2731 = vmatmul.f32.gmra.mxu3 %v6351_v42 }
 0x78e   :  { %2850 = vmatmul.f32.gmra.mxu1 %v2658_v7  ;;  %v2562_v62 = vpop.permute.xlu1 %2561 }
 0x78f   :  { %2789 = vmatmul.f32.gmra.mxu0 %v2657_v37 }
 0x795   :  { %2669 = vmatmul.f32.gmra.mxu2 %v2668_v8  ;;  %2735 = vmatmul.f32.gmra.mxu3 %v6355_v6 }
 0x796   :  { %2856 = vmatmul.f32.gmra.mxu1 %v2666_v18  ;;  %v2587_v18 = vpop.permute.xlu0 %2586 }
 0x797   :  { %2794 = vmatmul.f32.gmra.mxu0 %v2665_v3 }
 0x79d   :  { %2677 = vmatmul.f32.gmra.mxu2 %v2676_v34  ;;  %2739 = vmatmul.f32.gmra.mxu3 %v6359_v26 }
 0x79e   :  { %2862 = vmatmul.f32.gmra.mxu1 %v2674_v27 }
 0x79f   :  { %2799 = vmatmul.f32.gmra.mxu0 %v2673_v54 }
 0x7a5   :  { %2685 = vmatmul.f32.gmra.mxu2 %v2684_v4  ;;  %2743 = vmatmul.f32.gmra.mxu3 %v2672_v41 }
 0x7a6   :  { %2868 = vmatmul.f32.gmra.mxu1 %v2682_v11 }
 0x7a7   :  { %2804 = vmatmul.f32.gmra.mxu0 %v2681_v49 }
 0x7ad   :  { %2693 = vmatmul.f32.gmra.mxu2 %v2692_v13  ;;  %2747 = vmatmul.f32.gmra.mxu3 %v2680_v58 }
 0x7ae   :  { %2874 = vmatmul.f32.gmra.mxu1 %v2690_v20 }
 0x7af   :  { %2809 = vmatmul.f32.gmra.mxu0 %v2689_v17 }
 0x7b5   :  { %2701 = vmatmul.f32.gmra.mxu2 %v2700_v10  ;;  %2751 = vmatmul.f32.gmra.mxu3 %v2688_v16 }
 0x7b6   :  { %2880 = vmatmul.f32.gmra.mxu1 %v2698_v52 }
 0x7b7   :  { %2814 = vmatmul.f32.gmra.mxu0 %v2697_v53 }
 0x7bd   :  { %2755 = vmatmul.f32.gmra.mxu3 %v2696_v55  ;;  %2904 = vmatmul.f32.vlgmr.msrb.gmra.mxu2 %v6347_v32 }
 0x7c5   :  { %2908 = vmatmul.f32.gmra.mxu2 %v6351_v42  ;;  %2954 = vmatmul.f32.vlgmr.msrb.gmra.mxu3 %v6347_v32  ;;  %v2592_v32 = vpop.permute.xlu2 %2591 }
 0x7cd   :  { %2912 = vmatmul.f32.gmra.mxu2 %v6355_v6  ;;  %2958 = vmatmul.f32.gmra.mxu3 %v6351_v42  ;;  %v2577_v60 = vpop.permute.xlu2 %2576 }
 0x7d5   :  { %2916 = vmatmul.f32.gmra.mxu2 %v6359_v26  ;;  %2962 = vmatmul.f32.gmra.mxu3 %v6355_v6  ;;  %v2567_v31 = vpop.permute.xlu2 %2566 }
 0x7dd   :  { %2920 = vmatmul.f32.gmra.mxu2 %v2672_v41  ;;  %2966 = vmatmul.f32.gmra.mxu3 %v6359_v26 }
 0x7e5   :  { %2924 = vmatmul.f32.gmra.mxu2 %v2680_v58  ;;  %2970 = vmatmul.f32.gmra.mxu3 %v2672_v41 }
 0x7ed   :  { %2928 = vmatmul.f32.gmra.mxu2 %v2688_v16  ;;  %2974 = vmatmul.f32.gmra.mxu3 %v2680_v58 }
 0x7f5   :  { %2932 = vmatmul.f32.gmra.mxu2 %v2696_v55  ;;  %2978 = vmatmul.f32.gmra.mxu3 %v2688_v16 }
 0x7fa   :  { %v2839_v0 = vpop.f32.mrf.mxu1 }
 0x7fc   :  { %v2780_v14 = vpop.f32.mrf.mxu0 }
 0x7fd   :  { %2982 = vmatmul.f32.gmra.mxu3 %v2696_v55 }
 0x800   :  { %v2646_v42 = vpop.f32.mrf.mxu2 }
 0x801   :  { %v2647_v44 = vadd.f32 %v2646_v42, %v2562_v62 }
 0x803   :  { %v2845_v34 = vpop.f32.mrf.mxu1 }
 0x804   :  { %v2785_v49 = vpop.f32.mrf.mxu0 }
 0x808   :  { %v2654_v59 = vpop.f32.mrf.mxu2  ;;  %v2728_v12 = vpop.f32.mrf.mxu3 }
 0x809   :  { %v2729_v21 = vadd.f32 %v2728_v12, %v2647_v44  ;;  %v2655_v40 = vadd.f32 %v2654_v59, %v2567_v31 }
 0x80b   :  { %v2781_v22 = vadd.f32 %v2780_v14, %v2729_v21  ;;  %v2851_v4 = vpop.f32.mrf.mxu1 }
 0x80c   :  { %v2790_v46 = vpop.f32.mrf.mxu0 }
 0x80d   :  { %v2840_v6 = vadd.f32 %v2839_v0, %v2781_v22 }
 0x810   :  { %v2662_v25 = vpop.f32.mrf.mxu2  ;;  %v2732_v19 = vpop.f32.mrf.mxu3 }
 0x811   :  { %v2733_v37 = vadd.f32 %v2732_v19, %v2655_v40  ;;  %v2663_v1 = vadd.f32 %v2662_v25, %v2572_v47 }
 0x813   :  { %v2786_v17 = vadd.f32 %v2785_v49, %v2733_v37 }
 0x814   :  { %v2795_v33 = vpop.f32.mrf.mxu0 }
 0x815   :  { %v2846_v55 = vadd.f32 %v2845_v34, %v2786_v17 }
 0x818   :  { %v2670_v9 = vpop.f32.mrf.mxu2  ;;  %v2736_v38 = vpop.f32.mrf.mxu3 }
 0x819   :  { %v2737_v30 = vadd.f32 %v2736_v38, %v2663_v1  ;;  %v2671_v7 = vadd.f32 %v2670_v9, %v2577_v60  ;;  %v2857_v60 = vpop.f32.mrf.mxu1 }
 0x81b   :  { %v2791_v53 = vadd.f32 %v2790_v46, %v2737_v30 }
 0x81c   :  { %v2800_v31 = vpop.f32.mrf.mxu0 }
 0x820   :  { %v2678_v26 = vpop.f32.mrf.mxu2  ;;  %v2740_v24 = vpop.f32.mrf.mxu3 }
 0x821   :  { %v2741_v51 = vadd.f32 %v2740_v24, %v2671_v7  ;;  %v2679_v36 = vadd.f32 %v2678_v26, %v2582_v50  ;;  %v2852_v50 = vadd.f32 %v2851_v4, %v2791_v53  ;;  %v2863_v30 = vpop.f32.mrf.mxu1 }
 0x823   :  { %v2796_v44 = vadd.f32 %v2795_v33, %v2741_v51 }
 0x825   :  { %v2858_v0 = vadd.f32 %v2857_v60, %v2796_v44 }
 0x828   :  { %v2686_v3 = vpop.f32.mrf.mxu2  ;;  %v2744_v2 = vpop.f32.mrf.mxu3 }
 0x829   :  { %v2745_v48 = vadd.f32 %v2744_v2, %v2679_v36  ;;  %v2687_v41 = vadd.f32 %v2686_v3, %v2587_v18 }
 0x82b   :  { %v2801_v37 = vadd.f32 %v2800_v31, %v2745_v48 }
 0x82d   :  { %v2864_v36 = vadd.f32 %v2863_v30, %v2801_v37 }
 0x830   :  { %v2694_v29 = vpop.f32.mrf.mxu2  ;;  %v2748_v28 = vpop.f32.mrf.mxu3 }
 0x831   :  { %v6380_v54 = vadd.f32 %v2748_v28, %v2687_v41  ;;  %v2695_v35 = vadd.f32 %v2694_v29, %v2592_v32 }
 0x838   :  { %v6382_v8 = vpop.f32.mrf.mxu2  ;;  %v2752_v27 = vpop.f32.mrf.mxu3 }
 0x839   :  { %v6384_v58 = vadd.f32 %v2752_v27, %v2695_v35 }
 0x840   :  { %v6386_v43 = vpop.f32.mrf.mxu3  ;;  %v2905_v45 = vpop.f32.mrf.mxu2 }
 0x841   :  { %v2906_v63 = vadd.f32 %v2905_v45, %v2840_v6 }
 0x848   :  { %v2909_v11 = vpop.f32.mrf.mxu2  ;;  %v2955_v16 = vpop.f32.mrf.mxu3 }
 0x849   :  { %v6388_v23 = vadd.f32 %v2955_v16, %v2906_v63  ;;  %v2910_v52 = vadd.f32 %v2909_v11, %v2846_v55  ;;  %v2805_v63 = vpop.f32.mrf.mxu0  ;;  %v2869_v55 = vpop.f32.mrf.mxu1 }
 0x84b   :  { %v6392_v5 = vmul.f32 %v6388_v23, %v7383_v39 }
 0x84d   :  { %v3002_v13 = vmul.f32 %v6392_v5, %v6392_v5 }
 0x84f   :  { %v6398_v32 = vmin.f32 %v3002_v13, 16.0  ;;  %v2806_v13 = vadd.f32 %v2805_v63, %v6380_v54 }
 0x850   :  { %v2959_v20 = vpop.f32.mrf.mxu3  ;;  %v2913_v56 = vpop.f32.mrf.mxu2 }
 0x851   :  { %v6396_v10 = vadd.f32 %v2959_v20, %v2910_v52  ;;  %v2914_v47 = vadd.f32 %v2913_v56, %v2852_v50  ;;  %v3015_v14 = vmul.f32 3.8918573e-05, %v6398_v32  ;;  %v3004_v7 = vmul.f32 2.1237322e-06, %v6398_v32 }
 0x853   :  { %v6402_v62 = vmul.f32 %v6396_v10, %v7383_v39  ;;  %v3016_v22 = vadd.f32 0.001143296, %v3015_v14  ;;  %v3005_v48 = vadd.f32 0.00028619796, %v3004_v7 }
 0x855   :  { %v3042_v21 = vmul.f32 %v6402_v62, %v6402_v62  ;;  %v3017_v1 = vmul.f32 %v3016_v22, %v6398_v32  ;;  %v3006_v34 = vmul.f32 %v3005_v48, %v6398_v32  ;;  %v2810_v22 = vpop.f32.mrf.mxu0 }
 0x857   :  { %v6413_v19 = vmin.f32 %v3042_v21, 16.0  ;;  %v3018_v3 = vadd.f32 0.014752088, %v3017_v1  ;;  %v3007_v56 = vadd.f32 0.0036580483, %v3006_v34  ;;  %v2870_v21 = vadd.f32 %v2869_v55, %v2806_v13 }
 0x858   :  { %v2963_v42 = vpop.f32.mrf.mxu3  ;;  %v2917_v12 = vpop.f32.mrf.mxu2 }
 0x859   :  { %v6405_v59 = vadd.f32 %v2963_v42, %v2914_v47  ;;  %v2918_v40 = vadd.f32 %v2917_v12, %v2858_v0  ;;  %v3055_v24 = vmul.f32 3.8918573e-05, %v6413_v19  ;;  %v3019_v35 = vmul.f32 %v3018_v3, %v6398_v32 }
 0x85a   :  { %v3044_v49 = vmul.f32 2.1237322e-06, %v6413_v19  ;;  %v3008_v44 = vmul.f32 %v3007_v56, %v6398_v32 }
 0x85b   :  { %v6411_v6 = vmul.f32 %v6405_v59, %v7383_v39  ;;  %v3056_v28 = vadd.f32 0.001143296, %v3055_v24  ;;  %v3020_v46 = vadd.f32 0.112945676, %v3019_v35 }
 0x85c   :  { %v3045_v20 = vadd.f32 0.00028619796, %v3044_v49  ;;  %v3009_v30 = vadd.f32 0.05243302, %v3008_v44  ;;  %v2703_v49 = vadd.f32 %v6382_v8, %v6378_v15 }
 0x85d   :  { %v3082_v9 = vmul.f32 %v6411_v6, %v6411_v6  ;;  %v3057_v16 = vmul.f32 %v3056_v28, %v6413_v19  ;;  %v3021_v33 = vmul.f32 %v3020_v46, %v6398_v32  ;;  %v2811_v46 = vadd.f32 %v2810_v22, %v6384_v58  ;;  %v2815_v15 = vpop.f32.mrf.mxu0 }
 0x85e   :  { %v3046_v42 = vmul.f32 %v3045_v20, %v6413_v19  ;;  %v3010_v28 = vmul.f32 %v3009_v30, %v6398_v32  ;;  %v2757_v56 = vadd.f32 %v6386_v43, %v2703_v49 }
 0x85f   :  { %v6426_v2 = vmin.f32 %v3082_v9, 16.0  ;;  %v3058_v52 = vadd.f32 0.014752088, %v3057_v16  ;;  %v3022_v31 = vadd.f32 0.4994258, %v3021_v33 }
 0x860   :  { %v2967_v25 = vpop.f32.mrf.mxu3  ;;  %v2921_v51 = vpop.f32.mrf.mxu2  ;;  %v3011_v8 = vadd.f32 0.18741608, %v3010_v28 }
 0x861   :  { %v6418_v38 = vadd.f32 %v2967_v25, %v2918_v40  ;;  %v2922_v18 = vadd.f32 %v2921_v51, %v2864_v36  ;;  %v3095_v27 = vmul.f32 3.8918573e-05, %v6426_v2  ;;  %v3059_v0 = vmul.f32 %v3058_v52, %v6413_v19  ;;  %v2875_v36 = vpop.f32.mrf.mxu1 }
 0x862   :  { %v3047_v25 = vadd.f32 0.0036580483, %v3046_v42  ;;  %v3084_v37 = vmul.f32 2.1237322e-06, %v6426_v2  ;;  %v3023_v3 = vmul.f32 %v3022_v31, %v6398_v32  ;;  %v3012_v31 = vmul.f32 %v3011_v8, %v6398_v32 }
 0x863   :  { %v6423_v26 = vmul.f32 %v6418_v38, %v7383_v39  ;;  %v3096_v17 = vadd.f32 0.001143296, %v3095_v27  ;;  %v3060_v24 = vadd.f32 0.112945676, %v3059_v0 }
 0x865   :  { %v3122_v41 = vmul.f32 %v6423_v26, %v6423_v26  ;;  %v3097_v50 = vmul.f32 %v3096_v17, %v6426_v2  ;;  %v3061_v63 = vmul.f32 %v3060_v24, %v6413_v19  ;;  %v6472_v17 = vadd.f32 1.0, %v3023_v3 }
 0x867   :  { %v6436_v11 = vmin.f32 %v3122_v41, 16.0  ;;  %v3098_v40 = vadd.f32 0.014752088, %v3097_v50  ;;  %v3048_v41 = vmul.f32 %v3047_v25, %v6413_v19  ;;  %4786 = vrcp.f32 %v6472_v17 }
 0x868   :  { %v2971_v29 = vpop.f32.mrf.mxu3  ;;  %v2925_v60 = vpop.f32.mrf.mxu2  ;;  %v3036_v28 = vand.u32 2147483648, %v6472_v17  ;;  %vm3030_vm15 = vweird.f32 %v6472_v17 }
 0x869   :  { %v6432_v45 = vadd.f32 %v2971_v29, %v2922_v18  ;;  %v3135_v53 = vmul.f32 3.8918573e-05, %v6436_v11  ;;  %v2926_v1 = vadd.f32 %v2925_v60, %v2870_v21  ;;  %v3099_v48 = vmul.f32 %v3098_v40, %v6426_v2  ;;  %v2881_v22 = vpop.f32.mrf.mxu1 }
 0x86a   :  { %v3085_v29 = vadd.f32 0.00028619796, %v3084_v37  ;;  %v3124_v42 = vmul.f32 2.1237322e-06, %v6436_v11  ;;  %v2876_v60 = vadd.f32 %v2875_v36, %v2811_v46 }
 0x86b   :  { %v6441_v4 = vmul.f32 %v6432_v45, %v7383_v39  ;;  %v3136_v14 = vadd.f32 0.001143296, %v3135_v53  ;;  %v3100_v20 = vadd.f32 0.112945676, %v3099_v48  ;;  %v3049_v53 = vadd.f32 0.05243302, %v3048_v41 }
 0x86c   :  { %v3086_v13 = vmul.f32 %v3085_v29, %v6426_v2  ;;  %v3013_v29 = vadd.f32 1.1283791, %v3012_v31 }
 0x86d   :  { %v3162_v47 = vmul.f32 %v6441_v4, %v6441_v4  ;;  %v3137_v7 = vmul.f32 %v3136_v14, %v6436_v11  ;;  %v3101_v43 = vmul.f32 %v3100_v20, %v6426_v2  ;;  %v2816_v14 = vadd.f32 %v2815_v15, %v2757_v56  ;;  %v6494_v32 = vpop.eup %4786 }
 0x86e   :  { %v3050_v21 = vmul.f32 %v3049_v53, %v6413_v19  ;;  %v3087_v0 = vadd.f32 0.0036580483, %v3086_v13  ;;  %vm3031_vm14 = vweird.f32 %v6494_v32 }
 0x86f   :  { %v6451_v12 = vmin.f32 %v3162_v47, 16.0  ;;  %v3138_v35 = vadd.f32 0.014752088, %v3137_v7  ;;  %v3062_v47 = vadd.f32 0.4994258, %v3061_v63  ;;  %v2882_v36 = vadd.f32 %v2881_v22, %v2816_v14  ;;  %vm6580_vm4 = vmor %vm3030_vm15, %vm3031_vm14 }
 0x870   :  { %v2975_v54 = vpop.f32.mrf.mxu3  ;;  %v2929_v34 = vpop.f32.mrf.mxu2  ;;  %v3102_v30 = vadd.f32 0.4994258, %v3101_v43  ;;  %v3051_v3 = vadd.f32 0.18741608, %v3050_v21  ;;  %v3088_v48 = vmul.f32 %v3087_v0, %v6426_v2  ;;  %v6518_v14 = vmul.f32 %v3013_v29, %v6392_v5 }
 0x871   :  { %v3175_v9 = vmul.f32 3.8918573e-05, %v6451_v12  ;;  %v6457_v51 = vadd.f32 %v2975_v54, %v2926_v1  ;;  %v3139_v33 = vmul.f32 %v3138_v35, %v6436_v11  ;;  %v2930_v25 = vadd.f32 %v2929_v34, %v2876_v60 }
 0x872   :  { %v3063_v37 = vmul.f32 %v3062_v47, %v6413_v19  ;;  %v3125_v1 = vadd.f32 0.00028619796, %v3124_v42  ;;  %v3052_v15 = vmul.f32 %v3051_v3, %v6413_v19  ;;  %v3089_v8 = vadd.f32 0.05243302, %v3088_v48 }
 0x873   :  { %v3176_v18 = vadd.f32 0.001143296, %v3175_v9  ;;  %v6469_v16 = vmul.f32 %v6457_v51, %v7383_v39  ;;  %v3140_v40 = vadd.f32 0.112945676, %v3139_v33  ;;  %v3034_v19 = vand.u32 2147483647, %v6472_v17 }
 0x874   :  { %v6498_v49 = vadd.f32 1.0, %v3063_v37  ;;  %v3126_v63 = vmul.f32 %v3125_v1, %v6436_v11  ;;  %v6521_v21 = vor.u32 1.1754944e-38, %v3036_v28  ;;  %v3090_v31 = vmul.f32 %v3089_v8, %v6426_v2 }
 0x875   :  { %v3177_v27 = vmul.f32 %v3176_v18, %v6451_v12  ;;  %v3202_v58 = vmul.f32 %v6469_v16, %v6469_v16  ;;  %v3164_v18 = vmul.f32 2.1237322e-06, %v6451_v12  ;;  %v3141_v35 = vmul.f32 %v3140_v40, %v6436_v11 }
 0x876   :  { %4788 = vrcp.f32 %v6498_v49  ;;  %v3127_v60 = vadd.f32 0.0036580483, %v3126_v63  ;;  %v3053_v37 = vadd.f32 1.1283791, %v3052_v15  ;;  %vm6554_vm1 = vcmp.eq.f32.partialorder %v3034_v19, 8.507059e+37 }
 0x877   :  { %v3178_v55 = vadd.f32 0.014752088, %v3177_v27  ;;  %v6484_v54 = vmin.f32 %v3202_v58, 16.0  ;;  %v3165_v33 = vadd.f32 0.00028619796, %v3164_v18  ;;  %vm3070_vm8 = vweird.f32 %v6498_v49 }
 0x878   :  { %v2979_v52 = vpop.f32.mrf.mxu3  ;;  %v2933_v41 = vpop.f32.mrf.mxu2 }
 0x879   :  { %v3179_v50 = vmul.f32 %v3178_v55, %v6451_v12  ;;  %v3215_v7 = vmul.f32 3.8918573e-05, %v6484_v54  ;;  %v6490_v24 = vadd.f32 %v2979_v52, %v2930_v25  ;;  %v3204_v46 = vmul.f32 2.1237322e-06, %v6484_v54 }
 0x87a   :  { %v3103_v55 = vmul.f32 %v3102_v30, %v6426_v2  ;;  %v2934_v53 = vadd.f32 %v2933_v41, %v2882_v36  ;;  %v3026_v52 = vmul.f32 %v6494_v32, %v6472_v17  ;;  %v3166_v40 = vmul.f32 %v3165_v33, %v6451_v12 }
 0x87b   :  { %v3180_v44 = vadd.f32 0.112945676, %v3179_v50  ;;  %v3216_v27 = vadd.f32 0.001143296, %v3215_v7  ;;  %v6506_v13 = vmul.f32 %v6490_v24, %v7383_v39  ;;  %v3142_v50 = vadd.f32 0.4994258, %v3141_v35 }
 0x87c   :  { %v6523_v0 = vadd.f32 1.0, %v3103_v55  ;;  %v3027_v22 = vsub.f32 1.0, %v3026_v52  ;;  %v3128_v30 = vmul.f32 %v3127_v60, %v6436_v11  ;;  %v6546_v29 = vpop.eup %4788  ;;  %v3091_v35 = vadd.f32 0.18741608, %v3090_v31 }
 0x87d   :  { %v3181_v9 = vmul.f32 %v3180_v44, %v6451_v12  ;;  %v3217_v56 = vmul.f32 %v3216_v27, %v6484_v54  ;;  %v3242_v42 = vmul.f32 %v6506_v13, %v6506_v13  ;;  %v3205_v44 = vadd.f32 0.00028619796, %v3204_v46 }
 0x87e   :  { %v3143_v1 = vmul.f32 %v3142_v50, %v6436_v11  ;;  %4790 = vrcp.f32 %v6523_v0  ;;  %v3028_v28 = vmul.f32 %v6494_v32, %v3027_v22  ;;  %v3167_v27 = vadd.f32 0.0036580483, %v3166_v40 }
 0x87f   :  { %v3182_v34 = vadd.f32 0.4994258, %v3181_v9  ;;  %v3218_v47 = vadd.f32 0.014752088, %v3217_v56  ;;  %v6530_v5 = vmin.f32 %v3242_v42, 16.0  ;;  %v3206_v36 = vmul.f32 %v3205_v44, %v6484_v54 }
 0x880   :  { %v2983_v20 = vpop.f32.mrf.mxu3  ;;  %v3129_v52 = vadd.f32 0.05243302, %v3128_v30  ;;  %v3066_v8 = vmul.f32 %v6546_v29, %v6498_v49  ;;  %v3029_v42 = vadd.f32 %v6494_v32, %v3028_v28  ;;  %v3092_v60 = vmul.f32 %v3091_v35, %v6426_v2 }
 0x881   :  { %v6513_v58 = vadd.f32 %v2983_v20, %v2934_v53  ;;  %v3183_v43 = vmul.f32 %v3182_v34, %v6451_v12  ;;  %v3219_v25 = vmul.f32 %v3218_v47, %v6484_v54  ;;  %v3244_v48 = vmul.f32 2.1237322e-06, %v6530_v5 }
 0x882   :  { %v3255_v18 = vmul.f32 3.8918573e-05, %v6530_v5  ;;  %v6550_v34 = vadd.f32 1.0, %v3143_v1  ;;  %v3076_v53 = vand.u32 2147483648, %v6498_v49  ;;  %v3207_v15 = vadd.f32 0.0036580483, %v3206_v36 }
 0x883   :  { %v6534_v9 = vmul.f32 %v6513_v58, %v7383_v39  ;;  %v6538_v7 = vadd.f32 1.0, %v3183_v43  ;;  %v3220_v3 = vadd.f32 0.112945676, %v3219_v25  ;;  %v3245_v46 = vadd.f32 0.00028619796, %v3244_v48 }
 0x884   :  { %v3256_v20 = vadd.f32 0.001143296, %v3255_v18  ;;  %v6568_v19 = vpop.eup %4790  ;;  %v3168_v22 = vmul.f32 %v3167_v27, %v6451_v12  ;;  %v3074_v25 = vand.u32 2147483647, %v6498_v49  ;;  %v3130_v1 = vmul.f32 %v3129_v52, %v6436_v11 }
 0x885   :  { %v3282_v41 = vmul.f32 %v6534_v9, %v6534_v9  ;;  %v3221_v63 = vmul.f32 %v3220_v3, %v6484_v54  ;;  %4792 = vrcp.f32 %v6538_v7  ;;  %v3246_v43 = vmul.f32 %v3245_v46, %v6530_v5 }
 0x886   :  { %v3257_v50 = vmul.f32 %v3256_v20, %v6530_v5  ;;  %4794 = vrcp.f32 %v6550_v34  ;;  %v3208_v30 = vmul.f32 %v3207_v15, %v6484_v54  ;;  %v3067_v3 = vsub.f32 1.0, %v3066_v8 }
 0x887   :  { %v6552_v55 = vmin.f32 %v3282_v41, 16.0  ;;  %v3222_v33 = vadd.f32 0.4994258, %v3221_v63  ;;  %v3033_v35 = vsel %vm6580_vm4, %v6494_v32, %v3029_v42  ;;  %v6592_v27 = vor.u32 1.1754944e-38, %v3076_v53 }
 0x888   :  { %v3258_v40 = vadd.f32 0.014752088, %v3257_v50  ;;  %v3106_v17 = vmul.f32 %v6568_v19, %v6523_v0  ;;  %v3247_v63 = vadd.f32 0.0036580483, %v3246_v43  ;;  %v3093_v46 = vadd.f32 1.1283791, %v3092_v60 }
 0x889   :  { %v3284_v47 = vmul.f32 2.1237322e-06, %v6552_v55  ;;  %v3295_v44 = vmul.f32 3.8918573e-05, %v6552_v55  ;;  %v3223_v31 = vmul.f32 %v3222_v33, %v6484_v54  ;;  %v3169_v20 = vadd.f32 0.05243302, %v3168_v22 }
 0x88a   :  { %v3259_v18 = vmul.f32 %v3258_v40, %v6530_v5  ;;  %v6599_v15 = vmul.f32 %v3053_v37, %v6402_v62  ;;  %v3131_v8 = vadd.f32 0.18741608, %v3130_v1  ;;  %v3209_v33 = vadd.f32 0.05243302, %v3208_v30 }
 0x88b   :  { %v3296_v2 = vadd.f32 0.001143296, %v3295_v44  ;;  %v6584_v48 = vadd.f32 1.0, %v3223_v31  ;;  %v3285_v41 = vadd.f32 0.00028619796, %v3284_v47  ;;  %v6587_v28 = vpop.eup %4792  ;;  %v6606_v32 = vsel %vm6554_vm1, %v6521_v21, %v3033_v35 }
 0x88c   :  { %v3260_v50 = vadd.f32 0.112945676, %v3259_v18  ;;  %v6601_v47 = vpop.eup %4794  ;;  %v3068_v53 = vmul.f32 %v6546_v29, %v3067_v3  ;;  %v3186_v42 = vmul.f32 %v6587_v28, %v6538_v7  ;;  %v3107_v43 = vsub.f32 1.0, %v3106_v17 }
 0x88d   :  { %4796 = vrcp.f32 %v6584_v48  ;;  %v3297_v52 = vmul.f32 %v3296_v2, %v6552_v55  ;;  %v3286_v60 = vmul.f32 %v3285_v41, %v6552_v55  ;;  %v3116_v62 = vand.u32 2147483648, %v6523_v0 }
 0x88e   :  { %v3248_v37 = vmul.f32 %v3247_v63, %v6530_v5  ;;  %v3261_v44 = vmul.f32 %v3260_v50, %v6530_v5  ;;  %v6616_v22 = vmul.f32 %v3093_v46, %v6411_v6  ;;  %v3114_v21 = vand.u32 2147483647, %v6523_v0 }
 0x88f   :  { %v3170_v56 = vmul.f32 %v3169_v20, %v6451_v12  ;;  %v3298_v31 = vadd.f32 0.014752088, %v3297_v52  ;;  %v3132_v40 = vmul.f32 %v3131_v8, %v6436_v11  ;;  %v3146_v1 = vmul.f32 %v6601_v47, %v6550_v34 }
 0x890   :  { %v3210_v30 = vmul.f32 %v3209_v33, %v6484_v54  ;;  %v3262_v2 = vadd.f32 0.4994258, %v3261_v44  ;;  %v6627_v3 = vadd.f32 %v6546_v29, %v3068_v53  ;;  %v3187_v6 = vsub.f32 1.0, %v3186_v42 }
 0x891   :  { %v3287_v18 = vadd.f32 0.0036580483, %v3286_v60  ;;  %v3299_v41 = vmul.f32 %v3298_v31, %v6552_v55  ;;  %v3108_v35 = vmul.f32 %v6568_v19, %v3107_v43  ;;  %v6631_v17 = vor.u32 1.1754944e-38, %v3116_v62 }
 0x892   :  { %v3249_v63 = vadd.f32 0.05243302, %v3248_v37  ;;  %vm3111_vm2 = vweird.f32 %v6568_v19  ;;  %v3156_v46 = vand.u32 2147483648, %v6550_v34  ;;  %v3171_v20 = vadd.f32 0.18741608, %v3170_v56 }
 0x893   :  { %v6624_v36 = vpop.eup %4796  ;;  %v3263_v52 = vmul.f32 %v3262_v2, %v6530_v5  ;;  %v3300_v8 = vadd.f32 0.112945676, %v3299_v41  ;;  %v6638_v33 = vadd.f32 1.1283791, %v3132_v40  ;;  %v3147_v50 = vsub.f32 1.0, %v3146_v1 }
 0x894   :  { %v3226_v11 = vmul.f32 %v6624_v36, %v6584_v48  ;;  %v3211_v53 = vadd.f32 0.18741608, %v3210_v30  ;;  %vm3110_vm10 = vweird.f32 %v6523_v0  ;;  %v3188_v60 = vmul.f32 %v6587_v28, %v3187_v6 }
 0x895   :  { %v6642_v43 = vadd.f32 1.0, %v3263_v52  ;;  %v3288_v62 = vmul.f32 %v3287_v18, %v6552_v55  ;;  %v3301_v37 = vmul.f32 %v3300_v8, %v6552_v55  ;;  %vm3150_vm12 = vweird.f32 %v6550_v34  ;;  %vm6705_vm1 = vmor %vm3110_vm10, %vm3111_vm2 }
 0x896   :  { %v3227_v42 = vsub.f32 1.0, %v3226_v11  ;;  %v3154_v44 = vand.u32 2147483647, %v6550_v34  ;;  %v3250_v31 = vmul.f32 %v3249_v63, %v6530_v5  ;;  %vm3071_vm6 = vweird.f32 %v6546_v29 }
 0x897   :  { %v6652_v40 = vadd.f32 %v6568_v19, %v3108_v35  ;;  %v3157_v1 = vor.u32 1.1754944e-38, %v3156_v46  ;;  %v3172_v30 = vmul.f32 %v3171_v20, %v6451_v12  ;;  %4798 = vrcp.f32 %v6642_v43 }
 0x898   :  { %v3228_v56 = vmul.f32 %v6624_v36, %v3227_v42  ;;  %v3148_v2 = vmul.f32 %v6601_v47, %v3147_v50  ;;  %vm3191_vm7 = vweird.f32 %v6587_v28  ;;  %v3212_v6 = vmul.f32 %v3211_v53, %v6484_v54 }
 0x899   :  { %v3302_v18 = vadd.f32 0.4994258, %v3301_v37  ;;  %v3189_v41 = vadd.f32 %v6587_v28, %v3188_v60  ;;  %vm3231_vm9 = vweird.f32 %v6624_v36  ;;  %v3289_v35 = vadd.f32 0.05243302, %v3288_v62 }
 0x89a   :  { %v3229_v11 = vadd.f32 %v6624_v36, %v3228_v56  ;;  %vm3190_vm11 = vweird.f32 %v6538_v7  ;;  %v3236_v12 = vand.u32 2147483648, %v6584_v48  ;;  %v3251_v63 = vadd.f32 0.18741608, %v3250_v31 }
 0x89b   :  { %v3303_v46 = vmul.f32 %v3302_v18, %v6552_v55  ;;  %v3173_v20 = vadd.f32 1.1283791, %v3172_v30  ;;  %vm6666_vm3 = vmor %vm3190_vm11, %vm3191_vm7  ;;  %v3196_v52 = vand.u32 2147483648, %v6538_v7  ;;  %vm3230_vm5 = vweird.f32 %v6584_v48 }
 0x89c   :  { %v3234_v8 = vand.u32 2147483647, %v6584_v48  ;;  %vm6673_vm13 = vcmp.eq.f32.partialorder %v3114_v21, 8.507059e+37  ;;  %v3149_v53 = vadd.f32 %v6601_v47, %v3148_v2  ;;  %vm3151_vm0 = vweird.f32 %v6601_v47  ;;  %vm6682_vm14 = vmor %vm3230_vm5, %vm3231_vm9 }
 0x89d   :  { %v3194_v42 = vand.u32 2147483647, %v6538_v7  ;;  %v6686_v62 = vadd.f32 1.0, %v3303_v46  ;;  %v4799_v37 = vpop.eup %4798  ;;  %vm6690_vm15 = vcmp.eq.f32.partialorder %v3074_v25, 8.507059e+37  ;;  %v3193_v21 = vsel %vm6666_vm3, %v6587_v28, %v3189_v41  ;;  %vm6720_vm4 = vmor %vm3150_vm12, %vm3151_vm0 }
 0x89e   :  { %v3213_v7 = vadd.f32 1.1283791, %v3212_v6  ;;  %v3233_v56 = vsel %vm6682_vm14, %v6624_v36, %v3229_v11  ;;  %v3290_v31 = vmul.f32 %v3289_v35, %v6552_v55  ;;  %v3237_v30 = vor.u32 1.1754944e-38, %v3236_v12  ;;  %vm6734_vm12 = vmor %vm3070_vm8, %vm3071_vm6 }
 0x89f   :  { %v3252_v2 = vmul.f32 %v3251_v63, %v6530_v5  ;;  %v3266_v28 = vmul.f32 %v4799_v37, %v6642_v43  ;;  %4800 = vrcp.f32 %v6686_v62  ;;  %v3113_v36 = vsel %vm6705_vm1, %v6568_v19, %v6652_v40 }
 0x8a0   :  { %v3174_v6 = vmul.f32 %v3173_v20, %v6441_v4  ;;  %v3197_v5 = vor.u32 1.1754944e-38, %v3196_v52  ;;  %vm3235_vm2 = vcmp.eq.f32.partialorder %v3234_v8, 8.507059e+37  ;;  %v3153_v18 = vsel %vm6720_vm4, %v6601_v47, %v3149_v53 }
 0x8a1   :  { %vm3195_vm10 = vcmp.eq.f32.partialorder %v3194_v42, 8.507059e+37  ;;  %v3238_v41 = vsel %vm3235_vm2, %v3237_v30, %v3233_v56  ;;  %v3267_v11 = vsub.f32 1.0, %v3266_v28  ;;  %v3214_v40 = vmul.f32 %v3213_v7, %v6469_v16 }
 0x8a2   :  { %v3198_v19 = vsel %vm3195_vm10, %v3197_v5, %v3193_v21  ;;  %v3276_v35 = vand.u32 2147483648, %v6642_v43  ;;  %v3291_v12 = vadd.f32 0.18741608, %v3290_v31  ;;  %v3253_v63 = vadd.f32 1.1283791, %v3252_v2 }
 0x8a3   :  { %v3268_v46 = vmul.f32 %v4799_v37, %v3267_v11  ;;  %vm3271_vm7 = vweird.f32 %v4799_v37  ;;  %v3274_v47 = vand.u32 2147483647, %v6642_v43  ;;  %v3073_v16 = vsel %vm6734_vm12, %v6546_v29, %v6627_v3 }
 0x8a4   :  { %v3134_v20 = vmul.f32 %v6638_v33, %v6423_v26  ;;  %vm3155_vm9 = vcmp.eq.f32.partialorder %v3154_v44, 8.507059e+37  ;;  %v3239_v49 = vmul.f32 %v3238_v41, %v3214_v40  ;;  %v3199_v8 = vmul.f32 %v3198_v19, %v3174_v6  ;;  %v3338_v41 = vld [vmem:[#allocation2 + $0x318] sm:$0xff] }
 0x8a5   :  { %v4801_v54 = vpop.eup %4800  ;;  %v3158_v52 = vsel %vm3155_vm9, %v3157_v1, %v3153_v18  ;;  %v3269_v53 = vadd.f32 %v4799_v37, %v3268_v46  ;;  %vm3270_vm6 = vweird.f32 %v6642_v43  ;;  %v3118_v42 = vsel %vm6673_vm13, %v6631_v17, %v3113_v36 }
 0x8a6   :  { %vm3272_vm8 = vmor %vm3270_vm6, %vm3271_vm7  ;;  %v3277_v60 = vor.u32 1.1754944e-38, %v3276_v35  ;;  %v3292_v29 = vmul.f32 %v3291_v12, %v6552_v55  ;;  %v3306_v26 = vmul.f32 %v4801_v54, %v6686_v62  ;;  %v3078_v34 = vsel %vm6690_vm15, %v6592_v27, %v3073_v16 }
 0x8a7   :  { %v3254_v3 = vmul.f32 %v3253_v63, %v6506_v13  ;;  %v3273_v33 = vsel %vm3272_vm8, %v4799_v37, %v3269_v53  ;;  %vm3275_vm11 = vcmp.eq.f32.partialorder %v3274_v47, 8.507059e+37  ;;  %v3159_v44 = vmul.f32 %v3158_v52, %v3134_v20 }
 0x8a8   :  { %v4728_v43 = vclamps-f32 %v3239_v49, 1.0  ;;  %v3278_v1 = vsel %vm3275_vm11, %v3277_v60, %v3273_v33  ;;  %v3307_v21 = vsub.f32 1.0, %v3306_v26  ;;  %v3119_v17 = vmul.f32 %v3118_v42, %v6616_v22 }
 0x8a9   :  { %v4727_v50 = vclamps-f32 %v3199_v8, 1.0  ;;  %v3279_v7 = vmul.f32 %v3278_v1, %v3254_v3  ;;  %v3316_v55 = vand.u32 2147483648, %v6686_v62  ;;  %v3293_v56 = vadd.f32 1.1283791, %v3292_v29 }
 0x8aa   :  { %v3308_v31 = vmul.f32 %v4801_v54, %v3307_v21  ;;  %vm3311_vm3 = vweird.f32 %v4801_v54  ;;  %v3314_v48 = vand.u32 2147483647, %v6686_v62  ;;  %v3039_v13 = vmul.f32 %v6606_v32, %v6518_v14 }
 0x8ab   :  { %v3079_v27 = vmul.f32 %v3078_v34, %v6599_v15  ;;  %v2991_v37 = vmul.f32 0.5, %v6457_v51  ;;  %v4729_v25 = vclamps-f32 %v3279_v7, 1.0  ;;  %v4726_v30 = vclamps-f32 %v3159_v44, 1.0 }
 0x8ac   :  { %v3327_v2 = vadd.f32 1.0, %v4728_v43  ;;  %v3309_v22 = vadd.f32 %v4801_v54, %v3308_v31  ;;  %vm3310_vm5 = vweird.f32 %v6686_v62  ;;  %v4725_v28 = vclamps-f32 %v3119_v17, 1.0 }
 0x8ad   :  { %v2992_v36 = vmul.f32 0.5, %v6490_v24  ;;  %v3328_v0 = vadd.f32 1.0, %v4729_v25  ;;  %vm3312_vm13 = vmor %vm3310_vm5, %vm3311_vm3  ;;  %v3317_v6 = vor.u32 1.1754944e-38, %v3316_v55  ;;  %v3326_v5 = vadd.f32 1.0, %v4727_v50 }
 0x8ae   :  { %v3294_v18 = vmul.f32 %v3293_v56, %v6534_v9  ;;  %v3313_v14 = vsel %vm3312_vm13, %v4801_v54, %v3309_v22  ;;  %vm3315_vm0 = vcmp.eq.f32.partialorder %v3314_v48, 8.507059e+37  ;;  %v4724_v15 = vclamps-f32 %v3079_v27, 1.0 }
 0x8af   :  { %v3336_v32 = vmul.f32 %v3328_v0, %v2992_v36  ;;  %v3318_v51 = vsel %vm3315_vm0, %v3317_v6, %v3313_v14  ;;  %v3325_v11 = vadd.f32 1.0, %v4726_v30  ;;  %v2990_v19 = vmul.f32 0.5, %v6432_v45 }
 0x8b0   :  { %v3335_v40 = vmul.f32 %v3327_v2, %v2991_v37  ;;  %v3319_v62 = vmul.f32 %v3318_v51, %v3294_v18  ;;  %v4723_v35 = vclamps-f32 %v3039_v13, 1.0  ;;  %v3324_v12 = vadd.f32 1.0, %v4725_v28 }
 0x8b1   :  { %v2989_v24 = vmul.f32 0.5, %v6418_v38  ;;  %v3334_v4 = vmul.f32 %v3326_v5, %v2990_v19  ;;  %v6769_v63 = vand.u32 4294901760, %v3336_v32  ;;  %vm7412_vm14 = vcmask 523264  }
 0x8b2   :  { %v4730_v46 = vclamps-f32 %v3319_v62, 1.0  ;;  %v3346_v9 = vsel %vm7412_vm14, %v3338_v41, 0  ;;  %v3323_v47 = vadd.f32 1.0, %v4724_v15  ;;  %v2988_v16 = vmul.f32 0.5, %v6405_v59  ;;  %vm7413_vm15 = vmmov %vm7412_vm14 }
 0x8b3   :  { %v3333_v20 = vmul.f32 %v3325_v11, %v2989_v24  ;;  %v6773_v49 = vand.u32 4294901760, %v3335_v40  ;;  %v2993_v45 = vmul.f32 0.5, %v6513_v58  ;;  %v3322_v52 = vadd.f32 1.0, %v4723_v35  ;;  %vm7414_vm1 = vmmov %vm7412_vm14 }
 0x8b4   :  { %v3329_v54 = vadd.f32 1.0, %v4730_v46  ;;  %v2987_v8 = vmul.f32 0.5, %v6396_v10  ;;  %v6777_v53 = vand.u32 4294901760, %v3346_v9  ;;  %v3332_v38 = vmul.f32 %v3324_v12, %v2988_v16  ;;  %v3343_v46 = vpop.permute.xlu0 %3342  ;;  %vm7415_vm12 = vmmov %vm7414_vm1 }
 0x8b5   :  { %v6779_v42 = vand.u32 4294901760, %v3334_v4  ;;  %v6782_v60 = vsub.f32 %v3336_v32, %v6769_v63  ;;  %v2986_v59 = vmul.f32 0.5, %v6388_v23  ;;  %v6785_v34 = vand.u32 4294901760, %v3333_v20  ;;  %vm7416_vm11 = vmmov %vm7414_vm1 }
 0x8b6   :  { %v3337_v29 = vmul.f32 %v3329_v54, %v2993_v45  ;;  %v3331_v26 = vmul.f32 %v3323_v47, %v2987_v8  ;;  %v6788_v58 = vsub.f32 %v3335_v40, %v6773_v49  ;;  %v6793_v33 = vsub.f32 %v3346_v9, %v6777_v53  ;;  %vm7417_vm3 = vmmov %vm7414_vm1 }
 0x8b7   :  { %v3330_v10 = vmul.f32 %v3322_v52, %v2986_v59  ;;  %v6795_v44 = vand.u32 4294901760, %v3332_v38  ;;  %v6798_v43 = vsub.f32 %v3334_v4, %v6779_v42  ;;  %v3397_v23 = vand.u32 4294901760, %v6782_v60 }
 0x8b8   :  { %v6790_v3 = vand.u32 4294901760, %v3337_v29  ;;  %v6805_v21 = vand.u32 4294901760, %v3331_v26  ;;  %v6808_v17 = vsub.f32 %v3333_v20, %v6785_v34  ;;  %v3403_v7 = vand.u32 4294901760, %v6788_v58 }
 0x8b9   :  { %v6813_v55 = vand.u32 4294901760, %v3330_v10  ;;  %v3374_v56 = vand.u32 4294901760, %v6793_v33  ;;  %v6817_v31 = vsub.f32 %v3332_v38, %v6795_v44  ;;  %v3398_v13 = vsub.f32 %v6782_v60, %v3397_v23 }
 0x8ba   :  { %v6801_v1 = vsub.f32 %v3337_v29, %v6790_v3  ;;  %3357 = vmatpush.msrb.mxu0 %v6790_v3  ;;  %v3409_v27 = vand.u32 4294901760, %v6798_v43  ;;  %v6826_v37 = vsub.f32 %v3331_v26, %v6805_v21  ;;  %v3404_v30 = vsub.f32 %v6788_v58, %v3403_v7 }
 0x8bb   :  { %v3415_v2 = vand.u32 4294901760, %v6808_v17  ;;  %v3375_v22 = vsub.f32 %v6793_v33, %v3374_v56  ;;  %v3432_v28 = vsub.f32 %v3330_v10, %v6813_v55  ;;  %v3399_v36 = vand.u32 4294901760, %v3398_v13 }
 0x8bc   :  { %3359 = vmatpush.msrb.mxu0 %v6769_v63  ;;  %v3391_v50 = vand.u32 4294901760, %v6801_v1  ;;  %v3410_v0 = vsub.f32 %v6798_v43, %v3409_v27  ;;  %v3421_v6 = vand.u32 4294901760, %v6817_v31  ;;  %v3405_v5 = vand.u32 4294901760, %v3404_v30  ;;  %v3614_v30 = vld [vmem:[#allocation2 + $0x338] sm:$0xff] }
 0x8bd   :  { %v3416_v18 = vsub.f32 %v6808_v17, %v3415_v2  ;;  %v3427_v14 = vand.u32 4294901760, %v6826_v37  ;;  %v3376_v15 = vand.u32 4294901760, %v3375_v22  ;;  %v3433_v41 = vand.u32 4294901760, %v3432_v28 }
 0x8be   :  { %3361 = vmatpush.msrb.mxu0 %v6773_v49  ;;  %v3392_v48 = vsub.f32 %v6801_v1, %v3391_v50  ;;  %v3411_v32 = vand.u32 4294901760, %v3410_v0  ;;  %v3422_v51 = vsub.f32 %v6817_v31, %v3421_v6  ;;  %vm7418_vm5 = vcmask 64512  }
 0x8bf   :  { %v3417_v11 = vand.u32 4294901760, %v3416_v18  ;;  %v3428_v19 = vsub.f32 %v6826_v37, %v3427_v14  ;;  %v3434_v62 = vsub.f32 %v3432_v28, %v3433_v41 }
 0x8c0   :  { %3363 = vmatpush.msrb.mxu0 %v6779_v42  ;;  %v3393_v25 = vand.u32 4294901760, %v3392_v48  ;;  %v3423_v40 = vand.u32 4294901760, %v3422_v51 }
 0x8c1   :  { %v3429_v35 = vand.u32 4294901760, %v3428_v19  ;;  %v3435_v12 = vand.u32 4294901760, %v3434_v62 }
 0x8c2   :  { %3365 = vmatpush.msrb.mxu0 %v6785_v34  ;;  %3394 = vmatpush.msrb.mxu1 %v3393_v25  ;;  %v3615_v25 = vld [vmem:[#allocation2 + $0x340] sm:$0xff] }
 0x8c4   :  { %3367 = vmatpush.msrb.mxu0 %v6795_v44  ;;  %3400 = vmatpush.msrb.mxu1 %v3399_v36 }
 0x8c6   :  { %3369 = vmatpush.msrb.mxu0 %v6805_v21  ;;  %3406 = vmatpush.msrb.mxu1 %v3405_v5  ;;  %v6934_v5 = vand.u32 4294901760, %v3614_v30 }
 0x8c8   :  { %3371 = vmatpush.msrb.mxu0 %v6813_v55  ;;  %3412 = vmatpush.msrb.mxu1 %v3411_v32 }
 0x8c9   :  { %3377 = vmatmul.f32.vlgmr.msrb.gmra.mxu0 %v3376_v15 }
 0x8ca   :  { %3452 = vmatpush.msra.mxu0 %v6801_v1  ;;  %3418 = vmatpush.msrb.mxu1 %v3417_v11 }
 0x8cc   :  { %3455 = vmatpush.msra.mxu0 %v6782_v60  ;;  %3424 = vmatpush.msrb.mxu1 %v3423_v40 }
 0x8ce   :  { %3458 = vmatpush.msra.mxu0 %v6788_v58  ;;  %3430 = vmatpush.msrb.mxu1 %v3429_v35 }
 0x8d0   :  { %3461 = vmatpush.msra.mxu0 %v6798_v43  ;;  %3436 = vmatpush.msrb.mxu1 %v3435_v12 }
 0x8d1   :  { %3438 = vmatmul.f32.vlgmr.msrb.gmra.mxu1 %v6777_v53 }
 0x8d2   :  { %3464 = vmatpush.msra.mxu0 %v6808_v17  ;;  %3489 = vmatpush.msra.mxu1 %v6790_v3 }
 0x8d4   :  { %3467 = vmatpush.msra.mxu0 %v6817_v31  ;;  %3491 = vmatpush.msra.mxu1 %v6769_v63 }
 0x8d6   :  { %3470 = vmatpush.msra.mxu0 %v6826_v37  ;;  %3493 = vmatpush.msra.mxu1 %v6773_v49  ;;  %v3616_v37 = vld [vmem:[#allocation2 + $0x348] sm:$0xff] }
 0x8d7   :  { %v6929_v36 = vand.u32 4294901760, %v3616_v37 }
 0x8d8   :  { %3473 = vmatpush.msra.mxu0 %v3432_v28  ;;  %3495 = vmatpush.msra.mxu1 %v6779_v42 }
 0x8d9   :  { %3476 = vmatmul.f32.vlgmr.msra.gmra.mxu0 %v6793_v33  ;;  %v3619_v33 = vld [vmem:[#allocation2 + $0x360] sm:$0xff]  ;;  %v3699_v15 = vsub.f32 %v3616_v37, %v6929_v36 }
 0x8da   :  { %3522 = vmatpush.msrb.mxu0 %v3391_v50  ;;  %3497 = vmatpush.msra.mxu1 %v6785_v34  ;;  %v6901_v1 = vand.u32 4294901760, %v3619_v33 }
 0x8db   :  { %v3700_v40 = vand.u32 4294901760, %v3699_v15 }
 0x8dc   :  { %3526 = vmatpush.msrb.mxu0 %v3397_v23  ;;  %3499 = vmatpush.msra.mxu1 %v6795_v44  ;;  %v3618_v23 = vld [vmem:[#allocation2 + $0x358] sm:$0xff]  ;;  %v6911_v50 = vsub.f32 %v3619_v33, %v6901_v1 }
 0x8de   :  { %3530 = vmatpush.msrb.mxu0 %v3403_v7  ;;  %3501 = vmatpush.msra.mxu1 %v6805_v21  ;;  %v6913_v7 = vand.u32 4294901760, %v3618_v23  ;;  %v3682_v48 = vand.u32 4294901760, %v6911_v50 }
 0x8e0   :  { %3534 = vmatpush.msrb.mxu0 %v3409_v27  ;;  %3503 = vmatpush.msra.mxu1 %v6813_v55  ;;  %v3687_v13 = vsub.f32 %v3618_v23, %v6913_v7  ;;  %v3683_v22 = vsub.f32 %v6911_v50, %v3682_v48 }
 0x8e1   :  { %3507 = vmatmul.f32.vlgmr.msra.gmra.mxu1 %v3374_v56 }
 0x8e2   :  { %3538 = vmatpush.msrb.mxu0 %v3415_v2  ;;  %3565 = vmatpush.msrb.mxu1 %v6790_v3  ;;  %v3688_v28 = vand.u32 4294901760, %v3687_v13  ;;  %v3684_v18 = vand.u32 4294901760, %v3683_v22 }
 0x8e4   :  { %3542 = vmatpush.msrb.mxu0 %v3421_v6  ;;  %3567 = vmatpush.msrb.mxu1 %v6769_v63  ;;  %v6932_v6 = vand.u32 4294901760, %v3615_v25 }
 0x8e6   :  { %3546 = vmatpush.msrb.mxu0 %v3427_v14  ;;  %3569 = vmatpush.msrb.mxu1 %v6773_v49  ;;  %v3689_v14 = vsub.f32 %v3687_v13, %v3688_v28  ;;  %v3705_v51 = vsub.f32 %v3615_v25, %v6932_v6 }
 0x8e8   :  { %3550 = vmatpush.msrb.mxu0 %v3433_v41  ;;  %3571 = vmatpush.msrb.mxu1 %v6779_v42  ;;  %v3711_v41 = vsub.f32 %v3614_v30, %v6934_v5  ;;  %v3690_v19 = vand.u32 4294901760, %v3689_v14  ;;  %v3706_v12 = vand.u32 4294901760, %v3705_v51  ;;  %v3919_v30 = vld [vmem:[#allocation2 + $0x3d8] sm:$0xff] }
 0x8e9   :  { %3552 = vmatmul.f32.vlgmr.msrb.gmra.mxu0 %v6777_v53 }
 0x8ea   :  { %3573 = vmatpush.msrb.mxu1 %v6785_v34  ;;  %v3621_v34 = vld [vmem:[#allocation2 + $0x370] sm:$0xff] }
 0x8eb   :  { %v6888_v58 = vand.u32 4294901760, %v3621_v34 }
 0x8ec   :  { %3575 = vmatpush.msrb.mxu1 %v6795_v44 }
 0x8ed   :  { %v6891_v3 = vsub.f32 %v3621_v34, %v6888_v58  ;;  %3636 = vmatpush.msra.mxu2 %v6888_v58 }
 0x8ee   :  { %3577 = vmatpush.msrb.mxu1 %v6805_v21 }
 0x8ef   :  { %v3670_v44 = vand.u32 4294901760, %v6891_v3  ;;  %3731 = vmatpush.msra.mxu0 %v6891_v3 }
 0x8f0   :  { %3579 = vmatpush.msrb.mxu1 %v6813_v55  ;;  %v3617_v55 = vld [vmem:[#allocation2 + $0x350] sm:$0xff] }
 0x8f1   :  { %3581 = vmatmul.f32.vlgmr.msrb.gmra.mxu1 %v6777_v53  ;;  %v3671_v21 = vsub.f32 %v6891_v3, %v3670_v44  ;;  %v6925_v27 = vand.u32 4294901760, %v3617_v55 }
 0x8f2   :  { %3768 = vmatpush.msra.mxu1 %v6888_v58 }
 0x8f3   :  { %v3672_v56 = vand.u32 4294901760, %v3671_v21  ;;  %v3693_v0 = vsub.f32 %v3617_v55, %v6925_v27  ;;  %v3922_v21 = vld [vmem:[#allocation2 + $0x3f0] sm:$0xff] }
 0x8f5   :  { %3673 = vmatpush.msra.mxu3 %v3672_v56  ;;  %v3694_v32 = vand.u32 4294901760, %v3693_v0 }
 0x8f7   :  { %v3695_v35 = vsub.f32 %v3693_v0, %v3694_v32 }
 0x946   :  { %v3378_v24 = vpop.f32.mrf.mxu0 }
 0x947   :  { %v3379_v9 = vadd.f32 %v3378_v24, %v3343_v46  ;;  %v3712_v24 = vand.u32 4294901760, %v3711_v41  ;;  %v3696_v46 = vand.u32 4294901760, %v3695_v35 }
 0x94e   :  { %v3439_v4 = vpop.f32.mrf.mxu1 }
 0x94f   :  { %v3440_v16 = vadd.f32 %v3439_v4, %v3379_v9  ;;  %v3701_v4 = vsub.f32 %v3699_v15, %v3700_v40  ;;  %v3707_v9 = vsub.f32 %v3705_v51, %v3706_v12 }
 0x956   :  { %v3477_v63 = vpop.f32.mrf.mxu0 }
 0x957   :  { %v3478_v20 = vadd.f32 %v3477_v63, %v3440_v16  ;;  %v3702_v16 = vand.u32 4294901760, %v3701_v4 }
 0x95e   :  { %v3508_v47 = vpop.f32.mrf.mxu1 }
 0x95f   :  { %v3509_v45 = vadd.f32 %v3508_v47, %v3478_v20  ;;  %v3713_v47 = vsub.f32 %v3711_v41, %v3712_v24  ;;  %v3708_v20 = vand.u32 4294901760, %v3707_v9 }
 0x966   :  { %v3553_v49 = vpop.f32.mrf.mxu0 }
 0x967   :  { %v3554_v54 = vadd.f32 %v3553_v49, %v3509_v45  ;;  %v3714_v49 = vand.u32 4294901760, %v3713_v47 }
 0x96e   :  { %v3582_v52 = vpop.f32.mrf.mxu1 }
 0x96f   :  { %v3583_v8 = vadd.f32 %v3582_v52, %v3554_v54 }
 0x971   :  { %v6877_v38 = vadd.f32 %v3583_v8, %v6338_v57  ;;  %v3620_v57 = vld [vmem:[#allocation2 + $0x368] sm:$0xff] }
 0x972   :  { %v6894_v10 = vand.u32 4294901760, %v3620_v57 }
 0x973   :  { %v3588_v42 = vsel %vm7413_vm15, %v6877_v38, 0.0  ;;  %vm7419_vm15 = vmmov %vm7414_vm1 }
 0x974   :  { %3589 = vadd.xlane.f32.xlu2 %v3588_v42  ;;  %v6899_v43 = vsub.f32 %v3620_v57, %v6894_v10  ;;  %3638 = vmatpush.msra.mxu2 %v6894_v10 }
 0x975   :  { %3770 = vmatpush.msra.mxu1 %v6894_v10 }
 0x976   :  { %v3676_v17 = vand.u32 4294901760, %v6899_v43  ;;  %3734 = vmatpush.msra.mxu0 %v6899_v43  ;;  %3640 = vmatpush.msra.mxu2 %v6901_v1 }
 0x977   :  { %3772 = vmatpush.msra.mxu1 %v6901_v1 }
 0x978   :  { %v3677_v31 = vsub.f32 %v6899_v43, %v3676_v17  ;;  %3737 = vmatpush.msra.mxu0 %v6911_v50  ;;  %3642 = vmatpush.msra.mxu2 %v6913_v7  ;;  %v6967_v50 = vand.u32 4294901760, %v3922_v21 }
 0x979   :  { %3774 = vmatpush.msra.mxu1 %v6913_v7 }
 0x97a   :  { %v3678_v2 = vand.u32 4294901760, %v3677_v31  ;;  %3740 = vmatpush.msra.mxu0 %v3687_v13  ;;  %3644 = vmatpush.msra.mxu2 %v6925_v27  ;;  %v6973_v56 = vsub.f32 %v3922_v21, %v6967_v50 }
 0x97b   :  { %3776 = vmatpush.msra.mxu1 %v6925_v27 }
 0x97c   :  { %3679 = vmatpush.msra.mxu3 %v3678_v2  ;;  %3743 = vmatpush.msra.mxu0 %v3693_v0  ;;  %v4753_v0 = vld [vmem:[#allocation2 + $0x378] ss:$0 sm:$0xff] }
 0x97d   :  { %3646 = vmatpush.msra.mxu2 %v6929_v36  ;;  %3778 = vmatpush.msra.mxu1 %v6929_v36 }
 0x97e   :  { %3685 = vmatpush.msra.mxu3 %v3684_v18  ;;  %3746 = vmatpush.msra.mxu0 %v3699_v15 }
 0x97f   :  { %3648 = vmatpush.msra.mxu2 %v6932_v6  ;;  %3780 = vmatpush.msra.mxu1 %v6932_v6 }
 0x980   :  { %3691 = vmatpush.msra.mxu3 %v3690_v19  ;;  %3749 = vmatpush.msra.mxu0 %v3705_v51 }
 0x981   :  { %3650 = vmatpush.msra.mxu2 %v6934_v5  ;;  %3782 = vmatpush.msra.mxu1 %v6934_v5 }
 0x982   :  { %3697 = vmatpush.msra.mxu3 %v3696_v46  ;;  %3752 = vmatpush.msra.mxu0 %v3711_v41  ;;  %v3917_v41 = vld [vmem:[#allocation2 + $0x3c8] sm:$0xff] }
 0x983   :  { %3801 = vmatpush.msrb.mxu2 %v3670_v44 }
 0x984   :  { %3703 = vmatpush.msra.mxu3 %v3702_v16 }
 0x985   :  { %3805 = vmatpush.msrb.mxu2 %v3676_v17 }
 0x986   :  { %3709 = vmatpush.msra.mxu3 %v3708_v20 }
 0x987   :  { %3809 = vmatpush.msrb.mxu2 %v3682_v48  ;;  %v3920_v48 = vld [vmem:[#allocation2 + $0x3e0] sm:$0xff] }
 0x988   :  { %3715 = vmatpush.msra.mxu3 %v3714_v49  ;;  %v6987_v25 = vand.u32 4294901760, %v3920_v48 }
 0x989   :  { %3813 = vmatpush.msrb.mxu2 %v3688_v28 }
 0x98a   :  { %3844 = vmatpush.msrb.mxu3 %v6888_v58 }
 0x98b   :  { %3817 = vmatpush.msrb.mxu2 %v3694_v32 }
 0x98c   :  { %3846 = vmatpush.msrb.mxu3 %v6894_v10 }
 0x98d   :  { %3821 = vmatpush.msrb.mxu2 %v3700_v40 }
 0x98e   :  { %3848 = vmatpush.msrb.mxu3 %v6901_v1 }
 0x98f   :  { %3825 = vmatpush.msrb.mxu2 %v3706_v12  ;;  %v7022_v12 = vand.u32 4294901760, %v3917_v41 }
 0x990   :  { %3850 = vmatpush.msrb.mxu3 %v6913_v7  ;;  %v3921_v7 = vld [vmem:[#allocation2 + $0x3e8] sm:$0xff] }
 0x991   :  { %3829 = vmatpush.msrb.mxu2 %v3712_v24  ;;  %v6975_v31 = vand.u32 4294901760, %v3921_v7  ;;  %v7029_v47 = vsub.f32 %v3917_v41, %v7022_v12 }
 0x992   :  { %3852 = vmatpush.msrb.mxu3 %v6925_v27  ;;  %v3975_v27 = vand.u32 4294901760, %v6973_v56 }
 0x993   :  { %v6985_v37 = vsub.f32 %v3921_v7, %v6975_v31 }
 0x994   :  { %3854 = vmatpush.msrb.mxu3 %v6929_v36  ;;  %v3976_v22 = vsub.f32 %v6973_v56, %v3975_v27  ;;  %v6997_v36 = vsub.f32 %v3920_v48, %v6987_v25 }
 0x995   :  { %v3981_v28 = vand.u32 4294901760, %v6985_v37 }
 0x996   :  { %3856 = vmatpush.msrb.mxu3 %v6932_v6  ;;  %v7001_v6 = vand.u32 4294901760, %v3919_v30  ;;  %v3977_v18 = vand.u32 4294901760, %v3976_v22  ;;  %v3987_v15 = vand.u32 4294901760, %v6997_v36 }
 0x997   :  { %v3982_v14 = vsub.f32 %v6985_v37, %v3981_v28 }
 0x998   :  { %3858 = vmatpush.msrb.mxu3 %v6934_v5  ;;  %v3918_v5 = vld [vmem:[#allocation2 + $0x3d0] sm:$0xff]  ;;  %v7012_v51 = vsub.f32 %v3919_v30, %v7001_v6 }
 0x999   :  { %v7008_v32 = vand.u32 4294901760, %v3918_v5  ;;  %v3983_v40 = vand.u32 4294901760, %v3982_v14 }
 0x99a   :  { %v3993_v4 = vand.u32 4294901760, %v7012_v51 }
 0x99b   :  { %v7020_v35 = vsub.f32 %v3918_v5, %v7008_v32 }
 0x99c   :  { %v3994_v49 = vsub.f32 %v7012_v51, %v3993_v4 }
 0x99d   :  { %v3999_v9 = vand.u32 4294901760, %v7020_v35 }
 0x9e7   :  { %v3590_v53 = vpop.xlane.xlu2 %3589 }
 0x9e8   :  { %v3591_v60 = vmul.f32 %v3590_v53, %v7380_v61 }
 0x9ea   :  { %v6883_v29 = vsub.f32 %v6877_v38, %v3591_v60  ;;  %v4751_v60 = vld [vmem:[#allocation2 + $0x328] ss:$0 sm:$0xff] }
 0x9ec   :  { %v3593_v59 = vmul.f32 %v6883_v29, %v6883_v29 }
 0x9ee   :  { %v3594_v26 = vsel %vm7414_vm1, %v3593_v59, 0.0 }
 0x9ef   :  { %3595 = vadd.xlane.f32.xlu1 %v3594_v26  ;;  %v4752_v26 = vld [vmem:[#allocation2 + $0x330] ss:$0 sm:$0xff] }
 0xa62   :  { %v3596_v11 = vpop.xlane.xlu1 %3595 }
 0xa63   :  { %v3597_v62 = vmul.f32 %v3596_v11, %v7380_v61 }
 0xa65   :  { %v3598_v63 = vadd.f32 1e-06, %v3597_v62  ;;  %v3988_v62 = vsub.f32 %v6997_v36, %v3987_v15 }
 0xa67   :  { %4802 = vrsqrt.f32 %v3598_v63  ;;  %vm3605_vm2 = vweird.f32 %v3598_v63  ;;  %v3989_v46 = vand.u32 4294901760, %v3988_v62 }
 0xa6d   :  { %v4803_v45 = vpop.eup %4802 }
 0xa6e   :  { %v3600_v54 = vmul.f32 %v4803_v45, %v3598_v63  ;;  %vm3606_vm4 = vweird.f32 %v4803_v45  ;;  %v3916_v63 = vld [vmem:[#allocation2 + $0x3c0] sm:$0xff] }
 0xa6f   :  { %vm3607_vm10 = vmor %vm3605_vm2, %vm3606_vm4  ;;  %v7031_v16 = vand.u32 4294901760, %v3916_v63 }
 0xa70   :  { %v3601_v52 = vmul.f32 %v4803_v45, %v3600_v54 }
 0xa72   :  { %v3602_v8 = vmul.f32 0.5, %v3601_v52  ;;  %v4000_v52 = vsub.f32 %v7020_v35, %v3999_v9 }
 0xa74   :  { %v3603_v42 = vsub.f32 1.5, %v3602_v8  ;;  %v4005_v8 = vand.u32 4294901760, %v7029_v47 }
 0xa76   :  { %v3604_v53 = vmul.f32 %v4803_v45, %v3603_v42  ;;  %v7044_v42 = vsub.f32 %v3916_v63, %v7031_v16 }
 0xa78   :  { %v3608_v59 = vsel %vm3607_vm10, %v4803_v45, %v3604_v53  ;;  %v3915_v45 = vld [vmem:[#allocation2 + $0x3b8] sm:$0xff] }
 0xa79   :  { %v3609_v34 = vmul.f32 %v3608_v59, %v6883_v29  ;;  %v3923_v29 = vld [vmem:[#allocation2 + $0x3f8] sm:$0xff]  ;;  %v7046_v53 = vand.u32 4294901760, %v3915_v45  ;;  %v3995_v59 = vand.u32 4294901760, %v3994_v49  ;;  %v3910_v49 = vld [vmem:[#allocation2 + $0x390] sm:$0xff] }
 0xa7a   :  { %v6962_v23 = vand.u32 4294901760, %v3923_v29 }
 0xa7b   :  { %v3611_v58 = vmul.f32 %v4751_v60, %v3609_v34 }
 0xa7c   :  { %v6965_v17 = vsub.f32 %v3923_v29, %v6962_v23  ;;  %3927 = vmatpush.msrb.mxu0 %v6962_v23 }
 0xa7d   :  { %v3613_v57 = vadd.f32 %v4752_v26, %v3611_v58  ;;  %v3914_v26 = vld [vmem:[#allocation2 + $0x3b0] sm:$0xff]  ;;  %v4001_v58 = vand.u32 4294901760, %v4000_v52 }
 0xa7e   :  { %v3969_v55 = vand.u32 4294901760, %v6965_v17  ;;  %3929 = vmatpush.msrb.mxu0 %v6967_v50 }
 0xa7f   :  { %v3625_v3 = vsel %vm7415_vm12, %v3613_v57, 0  ;;  %v4006_v57 = vsub.f32 %v7029_v47, %v4005_v8 }
 0xa80   :  { %v3651_v10 = vand.u32 4294901760, %v3625_v3  ;;  %v3970_v13 = vsub.f32 %v6965_v17, %v3969_v55  ;;  %3931 = vmatpush.msrb.mxu0 %v6975_v31 }
 0xa81   :  { %v4007_v29 = vand.u32 4294901760, %v4006_v57 }
 0xa82   :  { %3717 = vmatmul.f32.vlgmr.msra.gmra.mxu3 %v3651_v10  ;;  %v3652_v33 = vsub.f32 %v3625_v3, %v3651_v10  ;;  %v3971_v2 = vand.u32 4294901760, %v3970_v13  ;;  %3933 = vmatpush.msrb.mxu0 %v6987_v25  ;;  %v4011_v3 = vand.u32 4294901760, %v7044_v42 }
 0xa83   :  { %4123 = vmatpush.msra.mxu3 %v6962_v23 }
 0xa84   :  { %3755 = vmatmul.f32.vlgmr.msra.gmra.mxu0 %v3652_v33  ;;  %v3653_v44 = vand.u32 4294901760, %v3652_v33  ;;  %3972 = vmatpush.msrb.mxu1 %v3971_v2  ;;  %v4012_v21 = vsub.f32 %v7044_v42, %v4011_v3  ;;  %v3912_v2 = vld [vmem:[#allocation2 + $0x3a0] sm:$0xff] }
 0xa85   :  { %4125 = vmatpush.msra.mxu3 %v6967_v50  ;;  %3935 = vmatpush.msrb.mxu0 %v7001_v6  ;;  %v7080_v14 = vand.u32 4294901760, %v3912_v2 }
 0xa86   :  { %3786 = vmatmul.f32.vlgmr.msra.gmra.mxu1 %v3653_v44  ;;  %v3654_v43 = vsub.f32 %v3652_v33, %v3653_v44  ;;  %v7059_v44 = vand.u32 4294901760, %v3914_v26 }
 0xa87   :  { %4127 = vmatpush.msra.mxu3 %v6975_v31  ;;  %3978 = vmatpush.msrb.mxu1 %v3977_v18 }
 0xa88   :  { %v3655_v1 = vand.u32 4294901760, %v3654_v43  ;;  %3937 = vmatpush.msrb.mxu0 %v7008_v32  ;;  %v3913_v43 = vld [vmem:[#allocation2 + $0x3a8] sm:$0xff]  ;;  %v7071_v30 = vsub.f32 %v3914_v26, %v7059_v44 }
 0xa89   :  { %4129 = vmatpush.msra.mxu3 %v6987_v25  ;;  %3984 = vmatpush.msrb.mxu1 %v3983_v40  ;;  %v7066_v48 = vand.u32 4294901760, %v3913_v43  ;;  %v3909_v26 = vld [vmem:[#allocation2 + $0x388] sm:$0xff] }
 0xa8a   :  { %3656 = vmatmul.f32.vlgmr.msra.gmra.mxu2 %v3655_v1  ;;  %3860 = vmatmul.f32.vlgmr.msrb.gmra.mxu3 %v3651_v10 }
 0xa8b   :  { %4070 = vmatpush.msra.mxu2 %v6965_v17  ;;  %4131 = vmatpush.msra.mxu3 %v7001_v6  ;;  %v7078_v18 = vsub.f32 %v3913_v43, %v7066_v48 }
 0xa8c   :  { %3939 = vmatpush.msrb.mxu0 %v7022_v12  ;;  %3990 = vmatpush.msrb.mxu1 %v3989_v46 }
 0xa8d   :  { %4073 = vmatpush.msra.mxu2 %v6973_v56  ;;  %4133 = vmatpush.msra.mxu3 %v7008_v32  ;;  %v4029_v62 = vand.u32 4294901760, %v7078_v18 }
 0xa8e   :  { %3941 = vmatpush.msrb.mxu0 %v7031_v16  ;;  %3996 = vmatpush.msrb.mxu1 %v3995_v59 }
 0xa8f   :  { %4076 = vmatpush.msra.mxu2 %v6985_v37  ;;  %4135 = vmatpush.msra.mxu3 %v7022_v12 }
 0xa90   :  { %3943 = vmatpush.msrb.mxu0 %v7046_v53  ;;  %4002 = vmatpush.msrb.mxu1 %v4001_v58 }
 0xa91   :  { %4079 = vmatpush.msra.mxu2 %v6997_v36  ;;  %4137 = vmatpush.msra.mxu3 %v7031_v16 }
 0xa92   :  { %3831 = vmatmul.f32.vlgmr.msrb.gmra.mxu2 %v3651_v10  ;;  %v7056_v10 = vsub.f32 %v3915_v45, %v7046_v53  ;;  %3945 = vmatpush.msrb.mxu0 %v7059_v44  ;;  %v4030_v45 = vsub.f32 %v7078_v18, %v4029_v62 }
 0xa93   :  { %4082 = vmatpush.msra.mxu2 %v7012_v51  ;;  %4139 = vmatpush.msra.mxu3 %v7046_v53 }
 0xa94   :  { %v4017_v7 = vand.u32 4294901760, %v7056_v10  ;;  %4008 = vmatpush.msrb.mxu1 %v4007_v29  ;;  %3947 = vmatpush.msrb.mxu0 %v7066_v48  ;;  %v3908_v29 = vld [vmem:[#allocation2 + $0x380] sm:$0xff] }
 0xa95   :  { %4085 = vmatpush.msra.mxu2 %v7020_v35  ;;  %4141 = vmatpush.msra.mxu3 %v7059_v44 }
 0xa96   :  { %v4018_v5 = vsub.f32 %v7056_v10, %v4017_v7  ;;  %3949 = vmatpush.msrb.mxu0 %v7080_v14 }
 0xa97   :  { %4088 = vmatpush.msra.mxu2 %v7029_v47  ;;  %4143 = vmatpush.msra.mxu3 %v7066_v48 }
 0xa98   :  { %v4019_v40 = vand.u32 4294901760, %v4018_v5 }
 0xa99   :  { %4091 = vmatpush.msra.mxu2 %v7044_v42  ;;  %4145 = vmatpush.msra.mxu3 %v7080_v14 }
 0xa9b   :  { %4094 = vmatpush.msra.mxu2 %v7056_v10 }
 0xa9d   :  { %4097 = vmatpush.msra.mxu2 %v7071_v30 }
 0xa9f   :  { %4100 = vmatpush.msra.mxu2 %v7078_v18 }
 0xb01   :  { %v3756_v54 = vpop.f32.mrf.mxu0 }
 0xb03   :  { %v3787_v34 = vpop.f32.mrf.mxu1 }
 0xb05   :  { %v3718_v11 = vpop.f32.mrf.mxu3 }
 0xb0d   :  { %v3657_v19 = vpop.f32.mrf.mxu2  ;;  %v3861_v22 = vpop.f32.mrf.mxu3 }
 0xb0e   :  { %v3658_v24 = vadd.f32 %v4753_v0, %v3657_v19  ;;  %v4013_v0 = vand.u32 4294901760, %v4012_v21  ;;  %v3911_v19 = vld [vmem:[#allocation2 + $0x398] sm:$0xff] }
 0xb0f   :  { %v7092_v63 = vand.u32 4294901760, %v3911_v19 }
 0xb10   :  { %v3719_v20 = vadd.f32 %v3718_v11, %v3658_v24  ;;  %v4023_v11 = vand.u32 4294901760, %v7071_v30  ;;  %v7090_v24 = vsub.f32 %v3912_v2, %v7080_v14  ;;  %4014 = vmatpush.msrb.mxu1 %v4013_v0 }
 0xb11   :  { %v7109_v52 = vsub.f32 %v3911_v19, %v7092_v63  ;;  %3951 = vmatpush.msrb.mxu0 %v7092_v63  ;;  %4147 = vmatpush.msra.mxu3 %v7092_v63 }
 0xb12   :  { %v3757_v60 = vadd.f32 %v3756_v54, %v3719_v20  ;;  %v4024_v20 = vsub.f32 %v7071_v30, %v4023_v11  ;;  %v4035_v54 = vand.u32 4294901760, %v7090_v24  ;;  %4020 = vmatpush.msrb.mxu1 %v4019_v40  ;;  %4103 = vmatpush.msra.mxu2 %v7090_v24 }
 0xb13   :  { %v4041_v57 = vand.u32 4294901760, %v7109_v52 }
 0xb14   :  { %v3788_v33 = vadd.f32 %v3787_v34, %v3757_v60  ;;  %v7111_v60 = vand.u32 4294901760, %v3910_v49  ;;  %v4025_v59 = vand.u32 4294901760, %v4024_v20  ;;  %v4031_v34 = vand.u32 4294901760, %v4030_v45  ;;  %4106 = vmatpush.msra.mxu2 %v7109_v52 }
 0xb15   :  { %v3832_v1 = vpop.f32.mrf.mxu2  ;;  %v4036_v58 = vsub.f32 %v7090_v24, %v4035_v54 }
 0xb16   :  { %v3833_v13 = vadd.f32 %v3832_v1, %v3788_v33  ;;  %v7123_v33 = vsub.f32 %v3910_v49, %v7111_v60  ;;  %4026 = vmatpush.msrb.mxu1 %v4025_v59  ;;  %v7129_v1 = vand.u32 4294901760, %v3909_v26  ;;  %3953 = vmatpush.msrb.mxu0 %v7111_v60 }
 0xb17   :  { %v4037_v21 = vand.u32 4294901760, %v4036_v58  ;;  %4149 = vmatpush.msra.mxu3 %v7111_v60 }
 0xb18   :  { %v7084_v41 = vadd.f32 %v3861_v22, %v3833_v13  ;;  %v4042_v13 = vsub.f32 %v7109_v52, %v4041_v57  ;;  %v4047_v2 = vand.u32 4294901760, %v7123_v33  ;;  %v7136_v22 = vand.u32 4294901760, %v3908_v29  ;;  %4032 = vmatpush.msrb.mxu1 %v4031_v34  ;;  %3955 = vmatpush.msrb.mxu0 %v7129_v1 }
 0xb19   :  { %v7143_v19 = vsub.f32 %v3909_v26, %v7129_v1  ;;  %4109 = vmatpush.msra.mxu2 %v7123_v33  ;;  %4151 = vmatpush.msra.mxu3 %v7129_v1 }
 0xb1a   :  { %v7098_v46 = vmul.f32 %v7084_v41, %v7383_v39  ;;  %v4043_v40 = vand.u32 4294901760, %v4042_v13  ;;  %v4048_v20 = vsub.f32 %v7123_v33, %v4047_v2  ;;  %v7150_v49 = vsub.f32 %v3908_v29, %v7136_v22  ;;  %4038 = vmatpush.msrb.mxu1 %v4037_v21  ;;  %3957 = vmatpush.msrb.mxu0 %v7136_v22 }
 0xb1b   :  { %v4053_v59 = vand.u32 4294901760, %v7143_v19  ;;  %4112 = vmatpush.msra.mxu2 %v7143_v19  ;;  %4153 = vmatpush.msra.mxu3 %v7136_v22  ;;  %v3864_v10 = vmul.f32 0.5, %v7084_v41 }
 0xb1c   :  { %v3866_v39 = vmul.f32 %v7098_v46, %v7098_v46  ;;  %v4049_v26 = vand.u32 4294901760, %v4048_v20  ;;  %v4059_v34 = vand.u32 4294901760, %v7150_v49  ;;  %4164 = vmatpush.msra.mxu0 %v3969_v55  ;;  %4044 = vmatpush.msrb.mxu1 %v4043_v40 }
 0xb1d   :  { %v4054_v21 = vsub.f32 %v7143_v19, %v4053_v59  ;;  %4115 = vmatpush.msra.mxu2 %v7150_v49 }
 0xb1e   :  { %v7127_v43 = vmin.f32 %v3866_v39, 16.0  ;;  %v4060_v13 = vsub.f32 %v7150_v49, %v4059_v34  ;;  %4168 = vmatpush.msra.mxu0 %v3975_v27  ;;  %4050 = vmatpush.msrb.mxu1 %v4049_v26 }
 0xb1f   :  { %v4055_v55 = vand.u32 4294901760, %v4054_v21  ;;  %v4296_v21 = vld [vmem:[#allocation2 + $0x418] sm:$0x3] }
 0xb20   :  { %v3868_v0 = vmul.f32 2.1237322e-06, %v7127_v43  ;;  %v3879_v5 = vmul.f32 3.8918573e-05, %v7127_v43  ;;  %4172 = vmatpush.msra.mxu0 %v3981_v28 }
 0xb21   :  { %4056 = vmatpush.msrb.mxu1 %v4055_v55 }
 0xb22   :  { %v3869_v45 = vadd.f32 0.00028619796, %v3868_v0  ;;  %v3880_v39 = vadd.f32 0.001143296, %v3879_v5  ;;  %v4061_v5 = vand.u32 4294901760, %v4060_v13  ;;  %4176 = vmatpush.msra.mxu0 %v3987_v15  ;;  %v4298_v13 = vsel %vm7418_vm5, %v4296_v21, 0 }
 0xb23   :  { %v4317_v55 = vand.u32 4294901760, %v4298_v13 }
 0xb24   :  { %v3870_v58 = vmul.f32 %v3869_v45, %v7127_v43  ;;  %v3881_v29 = vmul.f32 %v3880_v39, %v7127_v43  ;;  %4062 = vmatpush.msrb.mxu1 %v4061_v5  ;;  %4180 = vmatpush.msra.mxu0 %v3993_v4 }
 0xb26   :  { %v3882_v17 = vadd.f32 0.014752088, %v3881_v29  ;;  %v3871_v0 = vadd.f32 0.0036580483, %v3870_v58  ;;  %4231 = vmatpush.msra.mxu1 %v6962_v23  ;;  %4184 = vmatpush.msra.mxu0 %v3999_v9 }
 0xb28   :  { %v3883_v40 = vmul.f32 %v3882_v17, %v7127_v43  ;;  %v3872_v56 = vmul.f32 %v3871_v0, %v7127_v43  ;;  %4233 = vmatpush.msra.mxu1 %v6967_v50  ;;  %4188 = vmatpush.msra.mxu0 %v4005_v8 }
 0xb2a   :  { %v3884_v20 = vadd.f32 0.112945676, %v3883_v40  ;;  %v3873_v28 = vadd.f32 0.05243302, %v3872_v56  ;;  %4235 = vmatpush.msra.mxu1 %v6975_v31  ;;  %4192 = vmatpush.msra.mxu0 %v4011_v3  ;;  %v4318_v40 = vsub.f32 %v4298_v13, %v4317_v55 }
 0xb2c   :  { %v3885_v27 = vmul.f32 %v3884_v20, %v7127_v43  ;;  %4237 = vmatpush.msra.mxu1 %v6987_v25  ;;  %v3874_v50 = vmul.f32 %v3873_v28, %v7127_v43  ;;  %4196 = vmatpush.msra.mxu0 %v4017_v7 }
 0xb2e   :  { %v3886_v37 = vadd.f32 0.4994258, %v3885_v27  ;;  %4239 = vmatpush.msra.mxu1 %v7001_v6  ;;  %4200 = vmatpush.msra.mxu0 %v4023_v11  ;;  %v3875_v31 = vadd.f32 0.18741608, %v3874_v50  ;;  %v4319_v27 = vand.u32 4294901760, %v4318_v40 }
 0xb30   :  { %v3887_v36 = vmul.f32 %v3886_v37, %v7127_v43  ;;  %4241 = vmatpush.msra.mxu1 %v7008_v32  ;;  %4204 = vmatpush.msra.mxu0 %v4029_v62  ;;  %v3876_v6 = vmul.f32 %v3875_v31, %v7127_v43  ;;  %v4754_v62 = vld [vmem:[#allocation2 + $0x400] ss:$0 sm:$0xff]  ;;  %v4755_v37 = vld [vmem:[#allocation2 + $0x408] ss:$0 sm:$0xff] }
 0xb32   :  { %v3888_v23 = vadd.f32 1.0, %v3887_v36  ;;  %4243 = vmatpush.msra.mxu1 %v7022_v12  ;;  %4208 = vmatpush.msra.mxu0 %v4035_v54  ;;  %v3877_v35 = vadd.f32 1.1283791, %v3876_v6  ;;  %v4756_v36 = vld [vmem:[#allocation2 + $0x410] ss:$0 sm:$0xff] }
 0xb34   :  { %4804 = vrcp.f32 %v3888_v23  ;;  %4245 = vmatpush.msra.mxu1 %v7031_v16  ;;  %4212 = vmatpush.msra.mxu0 %v4041_v57  ;;  %v3900_v51 = vand.u32 2147483648, %v3888_v23  ;;  %v3898_v4 = vand.u32 2147483647, %v3888_v23  ;;  %vm3894_vm9 = vweird.f32 %v3888_v23 }
 0xb35   :  { %v3878_v16 = vmul.f32 %v3877_v35, %v7098_v46 }
 0xb36   :  { %4247 = vmatpush.msra.mxu1 %v7046_v53  ;;  %4216 = vmatpush.msra.mxu0 %v4047_v2  ;;  %v3901_v47 = vor.u32 1.1754944e-38, %v3900_v51  ;;  %vm3899_vm8 = vcmp.eq.f32.partialorder %v3898_v4, 8.507059e+37 }
 0xb38   :  { %4249 = vmatpush.msra.mxu1 %v7059_v44  ;;  %4220 = vmatpush.msra.mxu0 %v4053_v59 }
 0xb3a   :  { %v4805_v25 = vpop.eup %4804  ;;  %4251 = vmatpush.msra.mxu1 %v7066_v48  ;;  %4224 = vmatpush.msra.mxu0 %v4059_v34 }
 0xb3b   :  { %v3890_v15 = vmul.f32 %v4805_v25, %v3888_v23  ;;  %vm3895_vm7 = vweird.f32 %v4805_v25  ;;  %v4320_v23 = vsub.f32 %v4318_v40, %v4319_v27 }
 0xb3c   :  { %4253 = vmatpush.msra.mxu1 %v7080_v14  ;;  %vm3896_vm6 = vmor %vm3894_vm9, %vm3895_vm7 }
 0xb3d   :  { %v3891_v32 = vsub.f32 1.0, %v3890_v15 }
 0xb3e   :  { %4255 = vmatpush.msra.mxu1 %v7092_v63 }
 0xb3f   :  { %v3892_v12 = vmul.f32 %v4805_v25, %v3891_v32 }
 0xb40   :  { %4257 = vmatpush.msra.mxu1 %v7111_v60 }
 0xb41   :  { %v3893_v9 = vadd.f32 %v4805_v25, %v3892_v12  ;;  %v4453_v12 = vld [vmem:[#allocation2 + $0x458] sm:$0xff] }
 0xb42   :  { %4259 = vmatpush.msra.mxu1 %v7129_v1  ;;  %v7230_v4 = vand.u32 4294901760, %v4453_v12 }
 0xb43   :  { %v3897_v8 = vsel %vm3896_vm6, %v4805_v25, %v3893_v9  ;;  %v4321_v25 = vand.u32 4294901760, %v4320_v23  ;;  %v4452_v9 = vld [vmem:[#allocation2 + $0x450] sm:$0xff] }
 0xb44   :  { %v3902_v42 = vsel %vm3899_vm8, %v3901_v47, %v3897_v8  ;;  %4261 = vmatpush.msra.mxu1 %v7136_v22  ;;  %v7234_v47 = vsub.f32 %v4453_v12, %v7230_v4  ;;  %v4451_v8 = vld [vmem:[#allocation2 + $0x448] sm:$0xff] }
 0xb45   :  { %v3903_v53 = vmul.f32 %v3902_v42, %v3878_v16  ;;  %v7236_v16 = vand.u32 4294901760, %v4452_v9  ;;  %v7239_v42 = vand.u32 4294901760, %v4451_v8 }
 0xb47   :  { %v4731_v3 = vclamps-f32 %v3903_v53, 1.0  ;;  %v4502_v53 = vand.u32 4294901760, %v7234_v47 }
 0xb49   :  { %v3906_v44 = vadd.f32 1.0, %v4731_v3  ;;  %v7244_v3 = vsub.f32 %v4452_v9, %v7236_v16 }
 0xb4b   :  { %v3907_v7 = vmul.f32 %v3906_v44, %v3864_v10  ;;  %v4450_v10 = vld [vmem:[#allocation2 + $0x440] sm:$0xff] }
 0xb4c   :  { %v7247_v44 = vand.u32 4294901760, %v4450_v10 }
 0xb4d   :  { %v3958_v48 = vand.u32 4294901760, %v3907_v7 }
 0xb4f   :  { %v3959_v30 = vsub.f32 %v3907_v7, %v3958_v48  ;;  %4064 = vmatmul.f32.vlgmr.msrb.gmra.mxu1 %v3958_v48  ;;  %v7250_v7 = vsub.f32 %v4451_v8, %v7239_v42 }
 0xb50   :  { %4600 = vmatpush.msrb.mxu1 %v7230_v4 }
 0xb51   :  { %4118 = vmatmul.f32.vlgmr.msra.gmra.mxu2 %v3959_v30  ;;  %v3960_v18 = vand.u32 4294901760, %v3959_v30 }
 0xb52   :  { %4602 = vmatpush.msrb.mxu1 %v7236_v16 }
 0xb53   :  { %4157 = vmatmul.f32.vlgmr.msra.gmra.mxu3 %v3960_v18  ;;  %v3961_v14 = vsub.f32 %v3959_v30, %v3960_v18  ;;  %v4508_v30 = vand.u32 4294901760, %v7244_v3  ;;  %v4514_v18 = vand.u32 4294901760, %v7250_v7 }
 0xb54   :  { %4604 = vmatpush.msrb.mxu1 %v7239_v42 }
 0xb55   :  { %v3962_v11 = vand.u32 4294901760, %v3961_v14  ;;  %v4449_v14 = vld [vmem:[#allocation2 + $0x438] sm:$0xff] }
 0xb56   :  { %4606 = vmatpush.msrb.mxu1 %v7247_v44 }
 0xb57   :  { %3963 = vmatmul.f32.vlgmr.msrb.gmra.mxu0 %v3962_v11  ;;  %4263 = vmatmul.f32.vlgmr.msra.gmra.mxu1 %v3958_v48 }
 0xb58   :  { %4563 = vmatpush.msrb.mxu0 %v7234_v47 }
 0xb5a   :  { %4566 = vmatpush.msrb.mxu0 %v7244_v3 }
 0xb5c   :  { %4569 = vmatpush.msrb.mxu0 %v7250_v7 }
 0xb5f   :  { %4226 = vmatmul.f32.vlgmr.msra.gmra.mxu0 %v3958_v48  ;;  %v4503_v48 = vsub.f32 %v7234_v47, %v4502_v53 }
 0xb61   :  { %v4504_v11 = vand.u32 4294901760, %v4503_v48 }
 0xbcc   :  { %v4065_v24 = vpop.f32.mrf.mxu1 }
 0xbd4   :  { %v3964_v63 = vpop.f32.mrf.mxu0  ;;  %v4119_v54 = vpop.f32.mrf.mxu2 }
 0xbd5   :  { %v3965_v46 = vadd.f32 %v4754_v62, %v3964_v63  ;;  %v4264_v1 = vpop.f32.mrf.mxu1  ;;  %v4509_v62 = vsub.f32 %v7244_v3, %v4508_v30  ;;  %v4519_v63 = vsub.f32 %v4450_v10, %v7247_v44 }
 0xbd6   :  { %v4158_v60 = vpop.f32.mrf.mxu3 }
 0xbd7   :  { %v4066_v41 = vadd.f32 %v4065_v24, %v3965_v46  ;;  %v7261_v24 = vand.u32 4294901760, %v4449_v14  ;;  %v4515_v46 = vsub.f32 %v7250_v7, %v4514_v18  ;;  %4572 = vmatpush.msrb.mxu0 %v4519_v63 }
 0xbd9   :  { %v4120_v52 = vadd.f32 %v4119_v54, %v4066_v41  ;;  %v4448_v41 = vld [vmem:[#allocation2 + $0x430] sm:$0xff]  ;;  %v4510_v54 = vand.u32 4294901760, %v4509_v62  ;;  %4608 = vmatpush.msrb.mxu1 %v7261_v24 }
 0xbdb   :  { %v4159_v57 = vadd.f32 %v4158_v60, %v4120_v52  ;;  %v4520_v52 = vand.u32 4294901760, %v4519_v63  ;;  %v7268_v60 = vand.u32 4294901760, %v4448_v41 }
 0xbdc   :  { %v4227_v33 = vpop.f32.mrf.mxu0 }
 0xbdd   :  { %v4228_v43 = vadd.f32 %v4227_v33, %v4159_v57  ;;  %v4525_v57 = vsub.f32 %v4449_v14, %v7261_v24  ;;  %v4516_v33 = vand.u32 4294901760, %v4515_v46  ;;  %4610 = vmatpush.msrb.mxu1 %v7268_v60 }
 0xbdf   :  { %v4265_v2 = vadd.f32 %v4264_v1, %v4228_v43  ;;  %v4447_v43 = vld [vmem:[#allocation2 + $0x428] sm:$0xff]  ;;  %v4521_v1 = vsub.f32 %v4519_v63, %v4520_v52  ;;  %4575 = vmatpush.msrb.mxu0 %v4525_v57 }
 0xbe1   :  { %v4267_v22 = vadd.f32 %v4265_v2, %v6877_v38  ;;  %v4526_v2 = vand.u32 4294901760, %v4525_v57 }
 0xbe3   :  { %v4270_v19 = vsel %vm7416_vm11, %v4267_v22, 0.0 }
 0xbe4   :  { %4271 = vadd.xlane.f32.xlu0 %v4270_v19  ;;  %v4531_v19 = vsub.f32 %v4448_v41, %v7268_v60 }
 0xbe6   :  { %4578 = vmatpush.msrb.mxu0 %v4531_v19 }
 0xc57   :  { %v4272_v49 = vpop.xlane.xlu0 %4271 }
 0xc58   :  { %v4273_v45 = vmul.f32 %v4272_v49, %v7380_v61  ;;  %v4446_v49 = vld [vmem:[#allocation2 + $0x420] sm:$0xff] }
 0xc5a   :  { %v4274_v39 = vsub.f32 %v4267_v22, %v4273_v45  ;;  %v4479_v22 = vand.u32 4294901760, %v4447_v43  ;;  %v4522_v45 = vand.u32 4294901760, %v4521_v1 }
 0xc5c   :  { %v4275_v59 = vmul.f32 %v4274_v39, %v4274_v39  ;;  %4612 = vmatpush.msrb.mxu1 %v4479_v22 }
 0xc5e   :  { %v4276_v26 = vsel %vm7417_vm3, %v4275_v59, 0.0  ;;  %v4532_v59 = vand.u32 4294901760, %v4531_v19 }
 0xc5f   :  { %4277 = vadd.xlane.f32.xlu2 %v4276_v26  ;;  %v4481_v26 = vand.u32 4294901760, %v4446_v49 }
 0xc61   :  { %v4543_v21 = vsub.f32 %v4446_v49, %v4481_v26  ;;  %4614 = vmatpush.msrb.mxu1 %v4481_v26 }
 0xcd2   :  { %v4278_v34 = vpop.xlane.xlu2 %4277 }
 0xcd3   :  { %v4279_v58 = vmul.f32 %v4278_v34, %v7380_v61  ;;  %v4537_v34 = vsub.f32 %v4447_v43, %v4479_v22 }
 0xcd5   :  { %v4280_v29 = vadd.f32 1e-06, %v4279_v58  ;;  %4581 = vmatpush.msrb.mxu0 %v4537_v34 }
 0xcd7   :  { %4806 = vrsqrt.f32 %v4280_v29  ;;  %vm4287_vm0 = vweird.f32 %v4280_v29  ;;  %4584 = vmatpush.msrb.mxu0 %v4543_v21 }
 0xcdd   :  { %v4807_v38 = vpop.eup %4806 }
 0xcde   :  { %v4282_v17 = vmul.f32 %v4807_v38, %v4280_v29  ;;  %vm4288_vm13 = vweird.f32 %v4807_v38  ;;  %v4533_v29 = vsub.f32 %v4531_v19, %v4532_v59 }
 0xcdf   :  { %vm4289_vm14 = vmor %vm4287_vm0, %vm4288_vm13 }
 0xce0   :  { %v4283_v0 = vmul.f32 %v4807_v38, %v4282_v17  ;;  %v4534_v17 = vand.u32 4294901760, %v4533_v29 }
 0xce2   :  { %v4284_v5 = vmul.f32 0.5, %v4283_v0 }
 0xce4   :  { %v4285_v20 = vsub.f32 1.5, %v4284_v5 }
 0xce6   :  { %v4286_v56 = vmul.f32 %v4807_v38, %v4285_v20 }
 0xce8   :  { %v4290_v28 = vsel %vm4289_vm14, %v4807_v38, %v4286_v56  ;;  %v4538_v38 = vand.u32 4294901760, %v4537_v34 }
 0xce9   :  { %v4291_v61 = vmul.f32 %v4290_v28, %v4274_v39  ;;  %v4527_v39 = vsub.f32 %v4525_v57, %v4526_v2 }
 0xcea   :  { %v4539_v0 = vsub.f32 %v4537_v34, %v4538_v38 }
 0xceb   :  { %v4293_v50 = vmul.f32 %v4755_v37, %v4291_v61  ;;  %v4528_v58 = vand.u32 4294901760, %v4527_v39 }
 0xced   :  { %v4295_v31 = vadd.f32 %v4756_v36, %v4293_v50 }
 0xcef   :  { %v4315_v6 = vand.u32 4294901760, %v4295_v31 }
 0xcf1   :  { %4316 = vmatpush.msrb.mxu2 %v4315_v6  ;;  %v4342_v15 = vsub.f32 %v4295_v31, %v4315_v6 }
 0xcf2   :  { %4322 = vmatmul.f32.vlgmr.msrb.gmra.mxu2 %v4321_v25 }
 0xcf3   :  { %4369 = vmatpush.msra.mxu2 %v4342_v15  ;;  %v4343_v32 = vand.u32 4294901760, %v4342_v15 }
 0xcf5   :  { %4418 = vmatpush.msrb.mxu2 %v4343_v32  ;;  %v4344_v51 = vsub.f32 %v4342_v15, %v4343_v32 }
 0xcf7   :  { %v4345_v35 = vand.u32 4294901760, %v4344_v51 }
 0xcf9   :  { %4346 = vmatpush.msrb.mxu3 %v4345_v35 }
 0xcfa   :  { %4372 = vmatmul.f32.vlgmr.msra.gmra.mxu2 %v4318_v40  ;;  %4348 = vmatmul.f32.vlgmr.msrb.gmra.mxu3 %v4317_v55  ;;  %v4540_v40 = vand.u32 4294901760, %v4539_v0 }
 0xcfb   :  { %4392 = vmatpush.msra.mxu3 %v4315_v6  ;;  %4468 = vmatpush.msra.mxu2 %v7230_v4 }
 0xcfd   :  { %4440 = vmatpush.msrb.mxu3 %v4315_v6  ;;  %4470 = vmatpush.msra.mxu2 %v7236_v16 }
 0xcff   :  { %4472 = vmatpush.msra.mxu2 %v7239_v42 }
 0xd01   :  { %4474 = vmatpush.msra.mxu2 %v7247_v44 }
 0xd02   :  { %4420 = vmatmul.f32.vlgmr.msrb.gmra.mxu2 %v4317_v55  ;;  %4396 = vmatmul.f32.vlgmr.msra.gmra.mxu3 %v4319_v27 }
 0xd03   :  { %4505 = vmatpush.msra.mxu3 %v4504_v11  ;;  %4476 = vmatpush.msra.mxu2 %v7261_v24 }
 0xd05   :  { %4511 = vmatpush.msra.mxu3 %v4510_v54  ;;  %4478 = vmatpush.msra.mxu2 %v7268_v60 }
 0xd07   :  { %4517 = vmatpush.msra.mxu3 %v4516_v33  ;;  %4480 = vmatpush.msra.mxu2 %v4479_v22 }
 0xd09   :  { %4523 = vmatpush.msra.mxu3 %v4522_v45  ;;  %4482 = vmatpush.msra.mxu2 %v4481_v26 }
 0xd0a   :  { %4442 = vmatmul.f32.vlgmr.msrb.gmra.mxu3 %v4317_v55  ;;  %v4544_v55 = vand.u32 4294901760, %v4543_v21 }
 0xd0b   :  { %4633 = vmatpush.msrb.mxu2 %v4502_v53  ;;  %4529 = vmatpush.msra.mxu3 %v4528_v58 }
 0xd0c   :  { %v4545_v5 = vsub.f32 %v4543_v21, %v4544_v55 }
 0xd0d   :  { %4637 = vmatpush.msrb.mxu2 %v4508_v30  ;;  %4535 = vmatpush.msra.mxu3 %v4534_v17 }
 0xd0e   :  { %v4546_v20 = vand.u32 4294901760, %v4545_v5 }
 0xd0f   :  { %4641 = vmatpush.msrb.mxu2 %v4514_v18  ;;  %4541 = vmatpush.msra.mxu3 %v4540_v40 }
 0xd11   :  { %4645 = vmatpush.msrb.mxu2 %v4520_v52  ;;  %4547 = vmatpush.msra.mxu3 %v4546_v20 }
 0xd13   :  { %4649 = vmatpush.msrb.mxu2 %v4526_v2  ;;  %4676 = vmatpush.msrb.mxu3 %v7230_v4  ;;  %v4757_v4 = vld [vmem:[#allocation2 + $0x460] ss:$0 sm:$0xff] }
 0xd15   :  { %4653 = vmatpush.msrb.mxu2 %v4532_v59  ;;  %4678 = vmatpush.msrb.mxu3 %v7236_v16 }
 0xd17   :  { %4657 = vmatpush.msrb.mxu2 %v4538_v38  ;;  %4680 = vmatpush.msrb.mxu3 %v7239_v42 }
 0xd19   :  { %4661 = vmatpush.msrb.mxu2 %v4544_v55  ;;  %4682 = vmatpush.msrb.mxu3 %v7247_v44 }
 0xd1b   :  { %4684 = vmatpush.msrb.mxu3 %v7261_v24 }
 0xd1d   :  { %4686 = vmatpush.msrb.mxu3 %v7268_v60 }
 0xd1f   :  { %4688 = vmatpush.msrb.mxu3 %v4479_v22 }
 0xd21   :  { %4690 = vmatpush.msrb.mxu3 %v4481_v26 }
 0xd75   :  { %v4323_v13 = vpop.f32.mrf.mxu2 }
 0xd7d   :  { %v4349_v56 = vpop.f32.mrf.mxu3  ;;  %v4373_v27 = vpop.f32.mrf.mxu2 }
 0xd7e   :  { %v4350_v37 = vadd.f32 %v4349_v56, %v4323_v13 }
 0xd80   :  { %v4374_v61 = vadd.f32 %v4373_v27, %v4350_v37 }
 0xd85   :  { %v4397_v28 = vpop.f32.mrf.mxu3  ;;  %v4421_v23 = vpop.f32.mrf.mxu2 }
 0xd86   :  { %v4398_v36 = vadd.f32 %v4397_v28, %v4374_v61 }
 0xd88   :  { %v4422_v50 = vadd.f32 %v4421_v23, %v4398_v36 }
 0xd8d   :  { %v4443_v31 = vpop.f32.mrf.mxu3 }
 0xd8e   :  { %v4444_v25 = vadd.f32 %v4443_v31, %v4422_v50 }
 0xd90   :  { %v4457_v6 = vsel %vm7419_vm15, %v4444_v25, 0 }
 0xd91   :  { %v4483_v15 = vand.u32 4294901760, %v4457_v6 }
 0xd93   :  { %v4484_v32 = vsub.f32 %v4457_v6, %v4483_v15  ;;  %4549 = vmatmul.f32.vlgmr.msra.gmra.mxu3 %v4483_v15 }
 0xd95   :  { %v4485_v51 = vand.u32 4294901760, %v4484_v32  ;;  %4587 = vmatmul.f32.vlgmr.msrb.gmra.mxu0 %v4484_v32 }
 0xd97   :  { %v4486_v35 = vsub.f32 %v4484_v32, %v4485_v51  ;;  %4618 = vmatmul.f32.vlgmr.msrb.gmra.mxu1 %v4485_v51 }
 0xd99   :  { %v4487_v12 = vand.u32 4294901760, %v4486_v35 }
 0xd9b   :  { %4488 = vmatmul.f32.vlgmr.msra.gmra.mxu2 %v4487_v12  ;;  %4692 = vmatmul.f32.vlgmr.msrb.gmra.mxu3 %v4483_v15 }
 0xda3   :  { %4663 = vmatmul.f32.vlgmr.msrb.gmra.mxu2 %v4483_v15 }
 0xe12   :  { %v4588_v42 = vpop.f32.mrf.mxu0 }
 0xe14   :  { %v4619_v3 = vpop.f32.mrf.mxu1 }
 0xe16   :  { %v4550_v47 = vpop.f32.mrf.mxu3 }
 0xe1e   :  { %v4489_v9 = vpop.f32.mrf.mxu2  ;;  %v4693_v48 = vpop.f32.mrf.mxu3 }
 0xe1f   :  { %v4490_v16 = vadd.f32 %v4757_v4, %v4489_v9 }
 0xe21   :  { %v4551_v8 = vadd.f32 %v4550_v47, %v4490_v16 }
 0xe23   :  { %v4589_v53 = vadd.f32 %v4588_v42, %v4551_v8 }
 0xe25   :  { %v4620_v10 = vadd.f32 %v4619_v3, %v4589_v53 }
 0xe26   :  { %v4664_v44 = vpop.f32.mrf.mxu2 }
 0xe27   :  { %v4665_v7 = vadd.f32 %v4664_v44, %v4620_v10 }
 0xe29   :  { %v4694_v30 = vadd.f32 %v4693_v48, %v4665_v7 }
 0xe2b   :  { %4696 = vst [vmem:[#allocation5] sm:$0x3] %v4694_v30 }
 0xe2c   :  { %4707 = dma.vmem_to_hbm [thread:$0]  %s4703_s19, 32, %s4705_s22, [#allocation4]  }
 0xe2d   :  { %4858 = dma.done.wait [#allocation4], 32  }
 0xe2e   :  { %4859 = vsyncadd [#allocation4], 4294967264 }
 0xe2f   :  { %4712 = vsyncpa [#allocation3], 1 }
 0xe30   :  { %4713 = vsyncpa [#allocation4], 1 }

</bundles_post_ra>
